<compile_context>
chip_gen: v7x
topology: tpu7x:2x2x1
jax: 0.10.0
libtpu: 0.0.40
codegen_flags: <defaults>
</compile_context>

<pallas_src>
import functools

import jax
import jax.numpy as jnp
import numpy as np
from jax.experimental import pallas as pl
from jax.experimental.pallas import tpu as pltpu


# ---------------------------------------------------------------------------
# In-kernel helper: one LSTM layer (hoisted input projection + serial
# recurrence, fully unrolled). Returns (seq, h_last) as values.
# ---------------------------------------------------------------------------
def _lstm_layer(x_flat, w_ih, w_hh, b, *, T, B, relu):
    """x_flat: (T*B, Din) time-major flat. Returns ((T*B, H), (B, H))."""
    f32 = jnp.float32
    H = w_hh.shape[0]
    # Hoisted batched input projection: one MXU matmul over all timesteps.
    gx = jnp.dot(x_flat, w_ih, preferred_element_type=f32) + b
    h = jnp.zeros((B, H), f32)
    c = jnp.zeros((B, H), f32)
    hs = []
    for t in range(T):
        g = gx[t * B:(t + 1) * B, :] + jnp.dot(
            h, w_hh, preferred_element_type=f32)
        i_g = jax.nn.sigmoid(g[:, 0 * H:1 * H])
        f_g = jax.nn.sigmoid(g[:, 1 * H:2 * H])
        g_g = jnp.tanh(g[:, 2 * H:3 * H])
        o_g = jax.nn.sigmoid(g[:, 3 * H:4 * H])
        c = f_g * c + i_g * g_g
        h = o_g * jnp.tanh(c)
        hs.append(h)
    seq = jnp.concatenate(hs, axis=0)                # (T*B, H), one stack
    if relu:
        seq = jnp.maximum(seq, 0.0)
    return seq, h


# ---------------------------------------------------------------------------
# Fused VAE forward kernel
# ---------------------------------------------------------------------------
def vae_fused_kernel(
        # inputs
        x_ref, eps_ref,
        wih1, whh1, b1, wih2, whh2, b2, wih3, whh3, b3,
        wm, bm, wv, bv,
        wih4, whh4, b4, wih5, whh5, b5,
        wfc, bfc,
        # outputs
        y_ref, mean_ref, logv_ref,
        *, T, B):
    f32 = jnp.float32

    # ---- encoder -----------------------------------------------------------
    a1, _ = _lstm_layer(x_ref[...], wih1[...], whh1[...], b1[...],
                        T=T, B=B, relu=True)
    a2, _ = _lstm_layer(a1, wih2[...], whh2[...], b2[...],
                        T=T, B=B, relu=True)
    _, hn = _lstm_layer(a2, wih3[...], whh3[...], b3[...],
                        T=T, B=B, relu=False)                      # (B, H4)

    # ---- latent heads + reparameterization ---------------------------------
    mean = jnp.dot(hn, wm[...], preferred_element_type=f32) + bm[...]
    logv = jnp.dot(hn, wv[...], preferred_element_type=f32) + bv[...]
    mean_ref[...] = mean
    logv_ref[...] = logv
    std = jnp.exp(0.5 * logv)                                      # (B, H4)
    # Single vectorized reparameterization over all (t, b): tile along time.
    z = jnp.tile(mean, (T, 1)) + eps_ref[...] * jnp.tile(std, (T, 1))

    # ---- decoder -----------------------------------------------------------
    a3, _ = _lstm_layer(z, wih4[...], whh4[...], b4[...],
                        T=T, B=B, relu=True)
    a4, _ = _lstm_layer(a3, wih5[...], whh5[...], b5[...],
                        T=T, B=B, relu=True)

    # ---- fused time-distributed FC -----------------------------------------
    y_ref[...] = jnp.dot(a4, wfc[...],
                         preferred_element_type=f32) + bfc[...]


# ---------------------------------------------------------------------------
# Wrapper
# ---------------------------------------------------------------------------
def vae_forward(x, eps, params):
    """x: (B, T, vec_len), eps: (B, T, hidden//4) — batch-first like PyTorch.

    Returns (fc_out, mean, log_var) with shapes matching the PyTorch module:
    (B, T, vec_len), (B, T, H//4), (B, T, H//4).
    """
    B, T, Vin = x.shape
    H4 = params["ec_lstm3"]["w_hh"].shape[0]
    Vout = params["fc"]["w"].shape[1]

    # Time-major flat layout: one transpose in, one out.
    x_flat = jnp.swapaxes(x, 0, 1).reshape(T * B, Vin)
    eps_flat = jnp.swapaxes(eps, 0, 1).reshape(T * B, H4)

    weights = []
    for name in ("ec_lstm1", "ec_lstm2", "ec_lstm3"):
        p = params[name]
        weights += [p["w_ih"], p["w_hh"], p["b"]]
    weights += [params["mean_fc"]["w"], params["mean_fc"]["b"],
                params["logv_fc"]["w"], params["logv_fc"]["b"]]
    for name in ("dc_lstm1", "dc_lstm2"):
        p = params[name]
        weights += [p["w_ih"], p["w_hh"], p["b"]]
    weights += [params["fc"]["w"], params["fc"]["b"]]

    vmem = pl.BlockSpec(memory_space=pltpu.MemorySpace.VMEM)
    n_in = 2 + len(weights)

    y_flat, mean, logv = pl.pallas_call(
        functools.partial(vae_fused_kernel, T=T, B=B),
        out_shape=(
            jax.ShapeDtypeStruct((T * B, Vout), jnp.float32),
            jax.ShapeDtypeStruct((B, H4), jnp.float32),
            jax.ShapeDtypeStruct((B, H4), jnp.float32),
        ),
        in_specs=[vmem] * n_in,
        out_specs=(vmem, vmem, vmem),
    )(x_flat, eps_flat, *weights)

    y = jnp.swapaxes(y_flat.reshape(T, B, Vout), 0, 1)          # (B, T, Vout)
    mean_rep = jnp.broadcast_to(mean[:, None, :], (B, T, H4))   # == repeat(hn)
    logv_rep = jnp.broadcast_to(logv[:, None, :], (B, T, H4))
    return y, mean_rep, logv_rep


# ---------------------------------------------------------------------------
# Deterministic parameter construction
# ---------------------------------------------------------------------------
def init_params(key, vec_len, hidden):
    dims = {
        "ec_lstm1": (vec_len, hidden),
        "ec_lstm2": (hidden, hidden // 2),
        "ec_lstm3": (hidden // 2, hidden // 4),
        "dc_lstm1": (hidden // 4, hidden // 2),
        "dc_lstm2": (hidden // 2, hidden),
    }
    params = {}
    for name, (din, h) in dims.items():
        key, k1, k2, k3 = jax.random.split(key, 4)
        bound = 1.0 / np.sqrt(h)
        params[name] = {
            "w_ih": jax.random.uniform(k1, (din, 4 * h), jnp.float32,
                                       -bound, bound),
            "w_hh": jax.random.uniform(k2, (h, 4 * h), jnp.float32,
                                       -bound, bound),
            "b": jax.random.uniform(k3, (1, 4 * h), jnp.float32,
                                    -bound, bound),
        }
    h4 = hidden // 4
    for name in ("mean_fc", "logv_fc"):
        key, k1, k2 = jax.random.split(key, 3)
        bound = 1.0 / np.sqrt(h4)
        params[name] = {
            "w": jax.random.uniform(k1, (h4, h4), jnp.float32, -bound, bound),
            "b": jax.random.uniform(k2, (1, h4), jnp.float32, -bound, bound),
        }
    key, k1, k2 = jax.random.split(key, 3)
    bound = 1.0 / np.sqrt(hidden)
    params["fc"] = {
        "w": jax.random.uniform(k1, (hidden, vec_len), jnp.float32,
                                -bound, bound),
        "b": jax.random.uniform(k2, (1, vec_len), jnp.float32, -bound, bound),
    }
    return params


# ---------------------------------------------------------------------------
# Pure-JAX reference (for correctness check)
# ---------------------------------------------------------------------------
def lstm_ref(x_bt, w_ih, w_hh, b):
    B, T, _ = x_bt.shape
    H = w_hh.shape[0]

    def step(carry, xt):
        h, c = carry
        gates = xt @ w_ih + h @ w_hh + b[0]
        i = jax.nn.sigmoid(gates[:, :H])
        f = jax.nn.sigmoid(gates[:, H:2 * H])
        g = jnp.tanh(gates[:, 2 * H:3 * H])
        o = jax.nn.sigmoid(gates[:, 3 * H:])
        c = f * c + i * g
        h = o * jnp.tanh(c)
        return (h, c), h

    init = (jnp.zeros((B, H)), jnp.zeros((B, H)))
    (hT, _), hs = jax.lax.scan(step, init, jnp.swapaxes(x_bt, 0, 1))
    return jnp.swapaxes(hs, 0, 1), hT


def vae_forward_ref(x, eps, params):
    B, T, _ = x.shape
    out, _ = lstm_ref(x, **params["ec_lstm1"]); out = jnp.maximum(out, 0.0)
    out, _ = lstm_ref(out, **params["ec_lstm2"]); out = jnp.maximum(out, 0.0)
    _, hn = lstm_ref(out, **params["ec_lstm3"])
    H4 = hn.shape[-1]
    hn_rep = jnp.broadcast_to(hn[:, None, :], (B, T, H4))
    mean = hn_rep @ params["mean_fc"]["w"] + params["mean_fc"]["b"][0]
    logv = hn_rep @ params["logv_fc"]["w"] + params["logv_fc"]["b"][0]
    std = jnp.exp(0.5 * logv)
    z = mean + eps * std
    out, _ = lstm_ref(z, **params["dc_lstm1"]); out = jnp.maximum(out, 0.0)
    out, _ = lstm_ref(out, **params["dc_lstm2"]); out = jnp.maximum(out, 0.0)
    fc = params["fc"]
    y = out.reshape(-1, out.shape[-1]) @ fc["w"] + fc["b"][0]
    return y.reshape(B, T, -1), mean, logv


# ---------------------------------------------------------------------------
if __name__ == "__main__":
    SEQ_LEN = 8
    VEC_LEN = 4
    HIDDEN = 32
    BATCH = 2

    key = jax.random.PRNGKey(0)
    key, pkey, xkey, ekey = jax.random.split(key, 4)
    params = init_params(pkey, VEC_LEN, HIDDEN)
    x = jax.random.normal(xkey, (BATCH, SEQ_LEN, VEC_LEN), jnp.float32)
    eps = jax.random.normal(ekey, (BATCH, SEQ_LEN, HIDDEN // 4), jnp.float32)

    y, mean, logv = jax.block_until_ready(vae_forward(x, eps, params))
    y_r, mean_r, logv_r = jax.block_until_ready(vae_forward_ref(x, eps, params))

    assert y.shape == (BATCH, SEQ_LEN, VEC_LEN), y.shape
    assert mean.shape == (BATCH, SEQ_LEN, HIDDEN // 4), mean.shape
    assert logv.shape == (BATCH, SEQ_LEN, HIDDEN // 4), logv.shape
    np.testing.assert_allclose(np.asarray(y), np.asarray(y_r),
                               atol=2e-4, rtol=2e-4)
    np.testing.assert_allclose(np.asarray(mean), np.asarray(mean_r),
                               atol=2e-4, rtol=2e-4)
    np.testing.assert_allclose(np.asarray(logv), np.asarray(logv_r),
                               atol=2e-4, rtol=2e-4)
    print("KERNEL_OK")
</pallas_src>

<mosaic_0001>
module attributes {stable_mosaic.version = 11 : i64} {
  func.func @vae_fused_kernel(%arg0: memref<16x4xf32, #tpu.memory_space<vmem>>, %arg1: memref<16x8xf32, #tpu.memory_space<vmem>>, %arg2: memref<4x128xf32, #tpu.memory_space<vmem>>, %arg3: memref<32x128xf32, #tpu.memory_space<vmem>>, %arg4: memref<1x128xf32, #tpu.memory_space<vmem>>, %arg5: memref<32x64xf32, #tpu.memory_space<vmem>>, %arg6: memref<16x64xf32, #tpu.memory_space<vmem>>, %arg7: memref<1x64xf32, #tpu.memory_space<vmem>>, %arg8: memref<16x32xf32, #tpu.memory_space<vmem>>, %arg9: memref<8x32xf32, #tpu.memory_space<vmem>>, %arg10: memref<1x32xf32, #tpu.memory_space<vmem>>, %arg11: memref<8x8xf32, #tpu.memory_space<vmem>>, %arg12: memref<1x8xf32, #tpu.memory_space<vmem>>, %arg13: memref<8x8xf32, #tpu.memory_space<vmem>>, %arg14: memref<1x8xf32, #tpu.memory_space<vmem>>, %arg15: memref<8x64xf32, #tpu.memory_space<vmem>>, %arg16: memref<16x64xf32, #tpu.memory_space<vmem>>, %arg17: memref<1x64xf32, #tpu.memory_space<vmem>>, %arg18: memref<16x128xf32, #tpu.memory_space<vmem>>, %arg19: memref<32x128xf32, #tpu.memory_space<vmem>>, %arg20: memref<1x128xf32, #tpu.memory_space<vmem>>, %arg21: memref<32x4xf32, #tpu.memory_space<vmem>>, %arg22: memref<1x4xf32, #tpu.memory_space<vmem>>, %arg23: memref<16x4xf32, #tpu.memory_space<vmem>>, %arg24: memref<2x8xf32, #tpu.memory_space<vmem>>, %arg25: memref<2x8xf32, #tpu.memory_space<vmem>>) attributes {dimension_semantics = [], scalar_prefetch = 0 : i64, scratch_operands = 0 : i64, tpu.core_type = #tpu.core_type<tc>} {
    %c0 = arith.constant 0 : index
    %c0_0 = arith.constant 0 : index
    %0 = vector.load %arg0[%c0, %c0_0] : memref<16x4xf32, #tpu.memory_space<vmem>>, vector<16x4xf32>
    %c0_1 = arith.constant 0 : index
    %c0_2 = arith.constant 0 : index
    %1 = vector.load %arg2[%c0_1, %c0_2] : memref<4x128xf32, #tpu.memory_space<vmem>>, vector<4x128xf32>
    %c0_3 = arith.constant 0 : index
    %c0_4 = arith.constant 0 : index
    %2 = vector.load %arg3[%c0_3, %c0_4] : memref<32x128xf32, #tpu.memory_space<vmem>>, vector<32x128xf32>
    %c0_5 = arith.constant 0 : index
    %c0_6 = arith.constant 0 : index
    %3 = vector.load %arg4[%c0_5, %c0_6] : memref<1x128xf32, #tpu.memory_space<vmem>>, vector<1x128xf32>
    %cst = arith.constant dense<0.000000e+00> : vector<16x128xf32>
    %4 = tpu.matmul %0, %1, %cst {dimension_numbers = #tpu.dot_dimension_numbers<[1], [0], [0], [1], [0, 0, 1, 1], [], []>} : vector<16x4xf32>, vector<4x128xf32>, vector<16x128xf32> -> vector<16x128xf32>
    %5 = vector.broadcast %3 : vector<1x128xf32> to vector<16x128xf32>
    %6 = arith.addf %4, %5 : vector<16x128xf32>
    %cst_7 = arith.constant 0.000000e+00 : f32
    %7 = vector.broadcast %cst_7 : f32 to vector<2x32xf32>
    %cst_8 = arith.constant 0.000000e+00 : f32
    %8 = vector.broadcast %cst_8 : f32 to vector<2x32xf32>
    %9 = vector.extract_strided_slice %6 {offsets = [0, 0], sizes = [2, 128], strides = [1, 1]} : vector<16x128xf32> to vector<2x128xf32>
    %cst_9 = arith.constant dense<0.000000e+00> : vector<2x128xf32>
    %10 = tpu.matmul %7, %2, %cst_9 {dimension_numbers = #tpu.dot_dimension_numbers<[1], [0], [0], [1], [0, 0, 1, 1], [], []>} : vector<2x32xf32>, vector<32x128xf32>, vector<2x128xf32> -> vector<2x128xf32>
    %11 = arith.addf %9, %10 : vector<2x128xf32>
    %12 = vector.extract_strided_slice %11 {offsets = [0, 0], sizes = [2, 32], strides = [1, 1]} : vector<2x128xf32> to vector<2x32xf32>
    %13 = arith.negf %12 : vector<2x32xf32>
    %14 = math.exp %13 : vector<2x32xf32>
    %cst_10 = arith.constant 1.000000e+00 : f32
    %15 = vector.broadcast %cst_10 : f32 to vector<2x32xf32>
    %16 = arith.addf %15, %14 : vector<2x32xf32>
    %17 = arith.divf %15, %16 : vector<2x32xf32>
    %18 = vector.extract_strided_slice %11 {offsets = [0, 32], sizes = [2, 32], strides = [1, 1]} : vector<2x128xf32> to vector<2x32xf32>
    %19 = arith.negf %18 : vector<2x32xf32>
    %20 = math.exp %19 : vector<2x32xf32>
    %cst_11 = arith.constant 1.000000e+00 : f32
    %21 = vector.broadcast %cst_11 : f32 to vector<2x32xf32>
    %22 = arith.addf %21, %20 : vector<2x32xf32>
    %23 = arith.divf %21, %22 : vector<2x32xf32>
    %24 = vector.extract_strided_slice %11 {offsets = [0, 64], sizes = [2, 32], strides = [1, 1]} : vector<2x128xf32> to vector<2x32xf32>
    %25 = math.tanh %24 : vector<2x32xf32>
    %26 = vector.extract_strided_slice %11 {offsets = [0, 96], sizes = [2, 32], strides = [1, 1]} : vector<2x128xf32> to vector<2x32xf32>
    %27 = arith.negf %26 : vector<2x32xf32>
    %28 = math.exp %27 : vector<2x32xf32>
    %cst_12 = arith.constant 1.000000e+00 : f32
    %29 = vector.broadcast %cst_12 : f32 to vector<2x32xf32>
    %30 = arith.addf %29, %28 : vector<2x32xf32>
    %31 = arith.divf %29, %30 : vector<2x32xf32>
    %32 = arith.mulf %23, %8 : vector<2x32xf32>
    %33 = arith.mulf %17, %25 : vector<2x32xf32>
    %34 = arith.addf %32, %33 : vector<2x32xf32>
    %35 = math.tanh %34 : vector<2x32xf32>
    %36 = arith.mulf %31, %35 : vector<2x32xf32>
    %37 = vector.extract_strided_slice %6 {offsets = [2, 0], sizes = [2, 128], strides = [1, 1]} : vector<16x128xf32> to vector<2x128xf32>
    %cst_13 = arith.constant dense<0.000000e+00> : vector<2x128xf32>
    %38 = tpu.matmul %36, %2, %cst_13 {dimension_numbers = #tpu.dot_dimension_numbers<[1], [0], [0], [1], [0, 0, 1, 1], [], []>} : vector<2x32xf32>, vector<32x128xf32>, vector<2x128xf32> -> vector<2x128xf32>
    %39 = arith.addf %37, %38 : vector<2x128xf32>
    %40 = vector.extract_strided_slice %39 {offsets = [0, 0], sizes = [2, 32], strides = [1, 1]} : vector<2x128xf32> to vector<2x32xf32>
    %41 = arith.negf %40 : vector<2x32xf32>
    %42 = math.exp %41 : vector<2x32xf32>
    %cst_14 = arith.constant 1.000000e+00 : f32
    %43 = vector.broadcast %cst_14 : f32 to vector<2x32xf32>
    %44 = arith.addf %43, %42 : vector<2x32xf32>
    %45 = arith.divf %43, %44 : vector<2x32xf32>
    %46 = vector.extract_strided_slice %39 {offsets = [0, 32], sizes = [2, 32], strides = [1, 1]} : vector<2x128xf32> to vector<2x32xf32>
    %47 = arith.negf %46 : vector<2x32xf32>
    %48 = math.exp %47 : vector<2x32xf32>
    %cst_15 = arith.constant 1.000000e+00 : f32
    %49 = vector.broadcast %cst_15 : f32 to vector<2x32xf32>
    %50 = arith.addf %49, %48 : vector<2x32xf32>
    %51 = arith.divf %49, %50 : vector<2x32xf32>
    %52 = vector.extract_strided_slice %39 {offsets = [0, 64], sizes = [2, 32], strides = [1, 1]} : vector<2x128xf32> to vector<2x32xf32>
    %53 = math.tanh %52 : vector<2x32xf32>
    %54 = vector.extract_strided_slice %39 {offsets = [0, 96], sizes = [2, 32], strides = [1, 1]} : vector<2x128xf32> to vector<2x32xf32>
    %55 = arith.negf %54 : vector<2x32xf32>
    %56 = math.exp %55 : vector<2x32xf32>
    %cst_16 = arith.constant 1.000000e+00 : f32
    %57 = vector.broadcast %cst_16 : f32 to vector<2x32xf32>
    %58 = arith.addf %57, %56 : vector<2x32xf32>
    %59 = arith.divf %57, %58 : vector<2x32xf32>
    %60 = arith.mulf %51, %34 : vector<2x32xf32>
    %61 = arith.mulf %45, %53 : vector<2x32xf32>
    %62 = arith.addf %60, %61 : vector<2x32xf32>
    %63 = math.tanh %62 : vector<2x32xf32>
    %64 = arith.mulf %59, %63 : vector<2x32xf32>
    %65 = vector.extract_strided_slice %6 {offsets = [4, 0], sizes = [2, 128], strides = [1, 1]} : vector<16x128xf32> to vector<2x128xf32>
    %cst_17 = arith.constant dense<0.000000e+00> : vector<2x128xf32>
    %66 = tpu.matmul %64, %2, %cst_17 {dimension_numbers = #tpu.dot_dimension_numbers<[1], [0], [0], [1], [0, 0, 1, 1], [], []>} : vector<2x32xf32>, vector<32x128xf32>, vector<2x128xf32> -> vector<2x128xf32>
    %67 = arith.addf %65, %66 : vector<2x128xf32>
    %68 = vector.extract_strided_slice %67 {offsets = [0, 0], sizes = [2, 32], strides = [1, 1]} : vector<2x128xf32> to vector<2x32xf32>
    %69 = arith.negf %68 : vector<2x32xf32>
    %70 = math.exp %69 : vector<2x32xf32>
    %cst_18 = arith.constant 1.000000e+00 : f32
    %71 = vector.broadcast %cst_18 : f32 to vector<2x32xf32>
    %72 = arith.addf %71, %70 : vector<2x32xf32>
    %73 = arith.divf %71, %72 : vector<2x32xf32>
    %74 = vector.extract_strided_slice %67 {offsets = [0, 32], sizes = [2, 32], strides = [1, 1]} : vector<2x128xf32> to vector<2x32xf32>
    %75 = arith.negf %74 : vector<2x32xf32>
    %76 = math.exp %75 : vector<2x32xf32>
    %cst_19 = arith.constant 1.000000e+00 : f32
    %77 = vector.broadcast %cst_19 : f32 to vector<2x32xf32>
    %78 = arith.addf %77, %76 : vector<2x32xf32>
    %79 = arith.divf %77, %78 : vector<2x32xf32>
    %80 = vector.extract_strided_slice %67 {offsets = [0, 64], sizes = [2, 32], strides = [1, 1]} : vector<2x128xf32> to vector<2x32xf32>
    %81 = math.tanh %80 : vector<2x32xf32>
    %82 = vector.extract_strided_slice %67 {offsets = [0, 96], sizes = [2, 32], strides = [1, 1]} : vector<2x128xf32> to vector<2x32xf32>
    %83 = arith.negf %82 : vector<2x32xf32>
    %84 = math.exp %83 : vector<2x32xf32>
    %cst_20 = arith.constant 1.000000e+00 : f32
    %85 = vector.broadcast %cst_20 : f32 to vector<2x32xf32>
    %86 = arith.addf %85, %84 : vector<2x32xf32>
    %87 = arith.divf %85, %86 : vector<2x32xf32>
    %88 = arith.mulf %79, %62 : vector<2x32xf32>
    %89 = arith.mulf %73, %81 : vector<2x32xf32>
    %90 = arith.addf %88, %89 : vector<2x32xf32>
    %91 = math.tanh %90 : vector<2x32xf32>
    %92 = arith.mulf %87, %91 : vector<2x32xf32>
    %93 = vector.extract_strided_slice %6 {offsets = [6, 0], sizes = [2, 128], strides = [1, 1]} : vector<16x128xf32> to vector<2x128xf32>
    %cst_21 = arith.constant dense<0.000000e+00> : vector<2x128xf32>
    %94 = tpu.matmul %92, %2, %cst_21 {dimension_numbers = #tpu.dot_dimension_numbers<[1], [0], [0], [1], [0, 0, 1, 1], [], []>} : vector<2x32xf32>, vector<32x128xf32>, vector<2x128xf32> -> vector<2x128xf32>
    %95 = arith.addf %93, %94 : vector<2x128xf32>
    %96 = vector.extract_strided_slice %95 {offsets = [0, 0], sizes = [2, 32], strides = [1, 1]} : vector<2x128xf32> to vector<2x32xf32>
    %97 = arith.negf %96 : vector<2x32xf32>
    %98 = math.exp %97 : vector<2x32xf32>
    %cst_22 = arith.constant 1.000000e+00 : f32
    %99 = vector.broadcast %cst_22 : f32 to vector<2x32xf32>
    %100 = arith.addf %99, %98 : vector<2x32xf32>
    %101 = arith.divf %99, %100 : vector<2x32xf32>
    %102 = vector.extract_strided_slice %95 {offsets = [0, 32], sizes = [2, 32], strides = [1, 1]} : vector<2x128xf32> to vector<2x32xf32>
    %103 = arith.negf %102 : vector<2x32xf32>
    %104 = math.exp %103 : vector<2x32xf32>
    %cst_23 = arith.constant 1.000000e+00 : f32
    %105 = vector.broadcast %cst_23 : f32 to vector<2x32xf32>
    %106 = arith.addf %105, %104 : vector<2x32xf32>
    %107 = arith.divf %105, %106 : vector<2x32xf32>
    %108 = vector.extract_strided_slice %95 {offsets = [0, 64], sizes = [2, 32], strides = [1, 1]} : vector<2x128xf32> to vector<2x32xf32>
    %109 = math.tanh %108 : vector<2x32xf32>
    %110 = vector.extract_strided_slice %95 {offsets = [0, 96], sizes = [2, 32], strides = [1, 1]} : vector<2x128xf32> to vector<2x32xf32>
    %111 = arith.negf %110 : vector<2x32xf32>
    %112 = math.exp %111 : vector<2x32xf32>
    %cst_24 = arith.constant 1.000000e+00 : f32
    %113 = vector.broadcast %cst_24 : f32 to vector<2x32xf32>
    %114 = arith.addf %113, %112 : vector<2x32xf32>
    %115 = arith.divf %113, %114 : vector<2x32xf32>
    %116 = arith.mulf %107, %90 : vector<2x32xf32>
    %117 = arith.mulf %101, %109 : vector<2x32xf32>
    %118 = arith.addf %116, %117 : vector<2x32xf32>
    %119 = math.tanh %118 : vector<2x32xf32>
    %120 = arith.mulf %115, %119 : vector<2x32xf32>
    %121 = vector.extract_strided_slice %6 {offsets = [8, 0], sizes = [2, 128], strides = [1, 1]} : vector<16x128xf32> to vector<2x128xf32>
    %cst_25 = arith.constant dense<0.000000e+00> : vector<2x128xf32>
    %122 = tpu.matmul %120, %2, %cst_25 {dimension_numbers = #tpu.dot_dimension_numbers<[1], [0], [0], [1], [0, 0, 1, 1], [], []>} : vector<2x32xf32>, vector<32x128xf32>, vector<2x128xf32> -> vector<2x128xf32>
    %123 = arith.addf %121, %122 : vector<2x128xf32>
    %124 = vector.extract_strided_slice %123 {offsets = [0, 0], sizes = [2, 32], strides = [1, 1]} : vector<2x128xf32> to vector<2x32xf32>
    %125 = arith.negf %124 : vector<2x32xf32>
    %126 = math.exp %125 : vector<2x32xf32>
    %cst_26 = arith.constant 1.000000e+00 : f32
    %127 = vector.broadcast %cst_26 : f32 to vector<2x32xf32>
    %128 = arith.addf %127, %126 : vector<2x32xf32>
    %129 = arith.divf %127, %128 : vector<2x32xf32>
    %130 = vector.extract_strided_slice %123 {offsets = [0, 32], sizes = [2, 32], strides = [1, 1]} : vector<2x128xf32> to vector<2x32xf32>
    %131 = arith.negf %130 : vector<2x32xf32>
    %132 = math.exp %131 : vector<2x32xf32>
    %cst_27 = arith.constant 1.000000e+00 : f32
    %133 = vector.broadcast %cst_27 : f32 to vector<2x32xf32>
    %134 = arith.addf %133, %132 : vector<2x32xf32>
    %135 = arith.divf %133, %134 : vector<2x32xf32>
    %136 = vector.extract_strided_slice %123 {offsets = [0, 64], sizes = [2, 32], strides = [1, 1]} : vector<2x128xf32> to vector<2x32xf32>
    %137 = math.tanh %136 : vector<2x32xf32>
    %138 = vector.extract_strided_slice %123 {offsets = [0, 96], sizes = [2, 32], strides = [1, 1]} : vector<2x128xf32> to vector<2x32xf32>
    %139 = arith.negf %138 : vector<2x32xf32>
    %140 = math.exp %139 : vector<2x32xf32>
    %cst_28 = arith.constant 1.000000e+00 : f32
    %141 = vector.broadcast %cst_28 : f32 to vector<2x32xf32>
    %142 = arith.addf %141, %140 : vector<2x32xf32>
    %143 = arith.divf %141, %142 : vector<2x32xf32>
    %144 = arith.mulf %135, %118 : vector<2x32xf32>
    %145 = arith.mulf %129, %137 : vector<2x32xf32>
    %146 = arith.addf %144, %145 : vector<2x32xf32>
    %147 = math.tanh %146 : vector<2x32xf32>
    %148 = arith.mulf %143, %147 : vector<2x32xf32>
    %149 = vector.extract_strided_slice %6 {offsets = [10, 0], sizes = [2, 128], strides = [1, 1]} : vector<16x128xf32> to vector<2x128xf32>
    %cst_29 = arith.constant dense<0.000000e+00> : vector<2x128xf32>
    %150 = tpu.matmul %148, %2, %cst_29 {dimension_numbers = #tpu.dot_dimension_numbers<[1], [0], [0], [1], [0, 0, 1, 1], [], []>} : vector<2x32xf32>, vector<32x128xf32>, vector<2x128xf32> -> vector<2x128xf32>
    %151 = arith.addf %149, %150 : vector<2x128xf32>
    %152 = vector.extract_strided_slice %151 {offsets = [0, 0], sizes = [2, 32], strides = [1, 1]} : vector<2x128xf32> to vector<2x32xf32>
    %153 = arith.negf %152 : vector<2x32xf32>
    %154 = math.exp %153 : vector<2x32xf32>
    %cst_30 = arith.constant 1.000000e+00 : f32
    %155 = vector.broadcast %cst_30 : f32 to vector<2x32xf32>
    %156 = arith.addf %155, %154 : vector<2x32xf32>
    %157 = arith.divf %155, %156 : vector<2x32xf32>
    %158 = vector.extract_strided_slice %151 {offsets = [0, 32], sizes = [2, 32], strides = [1, 1]} : vector<2x128xf32> to vector<2x32xf32>
    %159 = arith.negf %158 : vector<2x32xf32>
    %160 = math.exp %159 : vector<2x32xf32>
    %cst_31 = arith.constant 1.000000e+00 : f32
    %161 = vector.broadcast %cst_31 : f32 to vector<2x32xf32>
    %162 = arith.addf %161, %160 : vector<2x32xf32>
    %163 = arith.divf %161, %162 : vector<2x32xf32>
    %164 = vector.extract_strided_slice %151 {offsets = [0, 64], sizes = [2, 32], strides = [1, 1]} : vector<2x128xf32> to vector<2x32xf32>
    %165 = math.tanh %164 : vector<2x32xf32>
    %166 = vector.extract_strided_slice %151 {offsets = [0, 96], sizes = [2, 32], strides = [1, 1]} : vector<2x128xf32> to vector<2x32xf32>
    %167 = arith.negf %166 : vector<2x32xf32>
    %168 = math.exp %167 : vector<2x32xf32>
    %cst_32 = arith.constant 1.000000e+00 : f32
    %169 = vector.broadcast %cst_32 : f32 to vector<2x32xf32>
    %170 = arith.addf %169, %168 : vector<2x32xf32>
    %171 = arith.divf %169, %170 : vector<2x32xf32>
    %172 = arith.mulf %163, %146 : vector<2x32xf32>
    %173 = arith.mulf %157, %165 : vector<2x32xf32>
    %174 = arith.addf %172, %173 : vector<2x32xf32>
    %175 = math.tanh %174 : vector<2x32xf32>
    %176 = arith.mulf %171, %175 : vector<2x32xf32>
    %177 = vector.extract_strided_slice %6 {offsets = [12, 0], sizes = [2, 128], strides = [1, 1]} : vector<16x128xf32> to vector<2x128xf32>
    %cst_33 = arith.constant dense<0.000000e+00> : vector<2x128xf32>
    %178 = tpu.matmul %176, %2, %cst_33 {dimension_numbers = #tpu.dot_dimension_numbers<[1], [0], [0], [1], [0, 0, 1, 1], [], []>} : vector<2x32xf32>, vector<32x128xf32>, vector<2x128xf32> -> vector<2x128xf32>
    %179 = arith.addf %177, %178 : vector<2x128xf32>
    %180 = vector.extract_strided_slice %179 {offsets = [0, 0], sizes = [2, 32], strides = [1, 1]} : vector<2x128xf32> to vector<2x32xf32>
    %181 = arith.negf %180 : vector<2x32xf32>
    %182 = math.exp %181 : vector<2x32xf32>
    %cst_34 = arith.constant 1.000000e+00 : f32
    %183 = vector.broadcast %cst_34 : f32 to vector<2x32xf32>
    %184 = arith.addf %183, %182 : vector<2x32xf32>
    %185 = arith.divf %183, %184 : vector<2x32xf32>
    %186 = vector.extract_strided_slice %179 {offsets = [0, 32], sizes = [2, 32], strides = [1, 1]} : vector<2x128xf32> to vector<2x32xf32>
    %187 = arith.negf %186 : vector<2x32xf32>
    %188 = math.exp %187 : vector<2x32xf32>
    %cst_35 = arith.constant 1.000000e+00 : f32
    %189 = vector.broadcast %cst_35 : f32 to vector<2x32xf32>
    %190 = arith.addf %189, %188 : vector<2x32xf32>
    %191 = arith.divf %189, %190 : vector<2x32xf32>
    %192 = vector.extract_strided_slice %179 {offsets = [0, 64], sizes = [2, 32], strides = [1, 1]} : vector<2x128xf32> to vector<2x32xf32>
    %193 = math.tanh %192 : vector<2x32xf32>
    %194 = vector.extract_strided_slice %179 {offsets = [0, 96], sizes = [2, 32], strides = [1, 1]} : vector<2x128xf32> to vector<2x32xf32>
    %195 = arith.negf %194 : vector<2x32xf32>
    %196 = math.exp %195 : vector<2x32xf32>
    %cst_36 = arith.constant 1.000000e+00 : f32
    %197 = vector.broadcast %cst_36 : f32 to vector<2x32xf32>
    %198 = arith.addf %197, %196 : vector<2x32xf32>
    %199 = arith.divf %197, %198 : vector<2x32xf32>
    %200 = arith.mulf %191, %174 : vector<2x32xf32>
    %201 = arith.mulf %185, %193 : vector<2x32xf32>
    %202 = arith.addf %200, %201 : vector<2x32xf32>
    %203 = math.tanh %202 : vector<2x32xf32>
    %204 = arith.mulf %199, %203 : vector<2x32xf32>
    %205 = vector.extract_strided_slice %6 {offsets = [14, 0], sizes = [2, 128], strides = [1, 1]} : vector<16x128xf32> to vector<2x128xf32>
    %cst_37 = arith.constant dense<0.000000e+00> : vector<2x128xf32>
    %206 = tpu.matmul %204, %2, %cst_37 {dimension_numbers = #tpu.dot_dimension_numbers<[1], [0], [0], [1], [0, 0, 1, 1], [], []>} : vector<2x32xf32>, vector<32x128xf32>, vector<2x128xf32> -> vector<2x128xf32>
    %207 = arith.addf %205, %206 : vector<2x128xf32>
    %208 = vector.extract_strided_slice %207 {offsets = [0, 0], sizes = [2, 32], strides = [1, 1]} : vector<2x128xf32> to vector<2x32xf32>
    %209 = arith.negf %208 : vector<2x32xf32>
    %210 = math.exp %209 : vector<2x32xf32>
    %cst_38 = arith.constant 1.000000e+00 : f32
    %211 = vector.broadcast %cst_38 : f32 to vector<2x32xf32>
    %212 = arith.addf %211, %210 : vector<2x32xf32>
    %213 = arith.divf %211, %212 : vector<2x32xf32>
    %214 = vector.extract_strided_slice %207 {offsets = [0, 32], sizes = [2, 32], strides = [1, 1]} : vector<2x128xf32> to vector<2x32xf32>
    %215 = arith.negf %214 : vector<2x32xf32>
    %216 = math.exp %215 : vector<2x32xf32>
    %cst_39 = arith.constant 1.000000e+00 : f32
    %217 = vector.broadcast %cst_39 : f32 to vector<2x32xf32>
    %218 = arith.addf %217, %216 : vector<2x32xf32>
    %219 = arith.divf %217, %218 : vector<2x32xf32>
    %220 = vector.extract_strided_slice %207 {offsets = [0, 64], sizes = [2, 32], strides = [1, 1]} : vector<2x128xf32> to vector<2x32xf32>
    %221 = math.tanh %220 : vector<2x32xf32>
    %222 = vector.extract_strided_slice %207 {offsets = [0, 96], sizes = [2, 32], strides = [1, 1]} : vector<2x128xf32> to vector<2x32xf32>
    %223 = arith.negf %222 : vector<2x32xf32>
    %224 = math.exp %223 : vector<2x32xf32>
    %cst_40 = arith.constant 1.000000e+00 : f32
    %225 = vector.broadcast %cst_40 : f32 to vector<2x32xf32>
    %226 = arith.addf %225, %224 : vector<2x32xf32>
    %227 = arith.divf %225, %226 : vector<2x32xf32>
    %228 = arith.mulf %219, %202 : vector<2x32xf32>
    %229 = arith.mulf %213, %221 : vector<2x32xf32>
    %230 = arith.addf %228, %229 : vector<2x32xf32>
    %231 = math.tanh %230 : vector<2x32xf32>
    %232 = arith.mulf %227, %231 : vector<2x32xf32>
    %233 = tpu.concatenate %36, %64, %92, %120, %148, %176, %204, %232 in 0 : vector<2x32xf32>, vector<2x32xf32>, vector<2x32xf32>, vector<2x32xf32>, vector<2x32xf32>, vector<2x32xf32>, vector<2x32xf32>, vector<2x32xf32> -> vector<16x32xf32>
    %cst_41 = arith.constant 0.000000e+00 : f32
    %234 = vector.broadcast %cst_41 : f32 to vector<16x32xf32>
    %235 = arith.maximumf %233, %234 : vector<16x32xf32>
    %c0_42 = arith.constant 0 : index
    %c0_43 = arith.constant 0 : index
    %236 = vector.load %arg5[%c0_42, %c0_43] : memref<32x64xf32, #tpu.memory_space<vmem>>, vector<32x64xf32>
    %c0_44 = arith.constant 0 : index
    %c0_45 = arith.constant 0 : index
    %237 = vector.load %arg6[%c0_44, %c0_45] : memref<16x64xf32, #tpu.memory_space<vmem>>, vector<16x64xf32>
    %c0_46 = arith.constant 0 : index
    %c0_47 = arith.constant 0 : index
    %238 = vector.load %arg7[%c0_46, %c0_47] : memref<1x64xf32, #tpu.memory_space<vmem>>, vector<1x64xf32>
    %cst_48 = arith.constant dense<0.000000e+00> : vector<16x64xf32>
    %239 = tpu.matmul %235, %236, %cst_48 {dimension_numbers = #tpu.dot_dimension_numbers<[1], [0], [0], [1], [0, 0, 1, 1], [], []>} : vector<16x32xf32>, vector<32x64xf32>, vector<16x64xf32> -> vector<16x64xf32>
    %240 = vector.broadcast %238 : vector<1x64xf32> to vector<16x64xf32>
    %241 = arith.addf %239, %240 : vector<16x64xf32>
    %cst_49 = arith.constant 0.000000e+00 : f32
    %242 = vector.broadcast %cst_49 : f32 to vector<2x16xf32>
    %cst_50 = arith.constant 0.000000e+00 : f32
    %243 = vector.broadcast %cst_50 : f32 to vector<2x16xf32>
    %244 = vector.extract_strided_slice %241 {offsets = [0, 0], sizes = [2, 64], strides = [1, 1]} : vector<16x64xf32> to vector<2x64xf32>
    %cst_51 = arith.constant dense<0.000000e+00> : vector<2x64xf32>
    %245 = tpu.matmul %242, %237, %cst_51 {dimension_numbers = #tpu.dot_dimension_numbers<[1], [0], [0], [1], [0, 0, 1, 1], [], []>} : vector<2x16xf32>, vector<16x64xf32>, vector<2x64xf32> -> vector<2x64xf32>
    %246 = arith.addf %244, %245 : vector<2x64xf32>
    %247 = vector.extract_strided_slice %246 {offsets = [0, 0], sizes = [2, 16], strides = [1, 1]} : vector<2x64xf32> to vector<2x16xf32>
    %248 = arith.negf %247 : vector<2x16xf32>
    %249 = math.exp %248 : vector<2x16xf32>
    %cst_52 = arith.constant 1.000000e+00 : f32
    %250 = vector.broadcast %cst_52 : f32 to vector<2x16xf32>
    %251 = arith.addf %250, %249 : vector<2x16xf32>
    %252 = arith.divf %250, %251 : vector<2x16xf32>
    %253 = vector.extract_strided_slice %246 {offsets = [0, 16], sizes = [2, 16], strides = [1, 1]} : vector<2x64xf32> to vector<2x16xf32>
    %254 = arith.negf %253 : vector<2x16xf32>
    %255 = math.exp %254 : vector<2x16xf32>
    %cst_53 = arith.constant 1.000000e+00 : f32
    %256 = vector.broadcast %cst_53 : f32 to vector<2x16xf32>
    %257 = arith.addf %256, %255 : vector<2x16xf32>
    %258 = arith.divf %256, %257 : vector<2x16xf32>
    %259 = vector.extract_strided_slice %246 {offsets = [0, 32], sizes = [2, 16], strides = [1, 1]} : vector<2x64xf32> to vector<2x16xf32>
    %260 = math.tanh %259 : vector<2x16xf32>
    %261 = vector.extract_strided_slice %246 {offsets = [0, 48], sizes = [2, 16], strides = [1, 1]} : vector<2x64xf32> to vector<2x16xf32>
    %262 = arith.negf %261 : vector<2x16xf32>
    %263 = math.exp %262 : vector<2x16xf32>
    %cst_54 = arith.constant 1.000000e+00 : f32
    %264 = vector.broadcast %cst_54 : f32 to vector<2x16xf32>
    %265 = arith.addf %264, %263 : vector<2x16xf32>
    %266 = arith.divf %264, %265 : vector<2x16xf32>
    %267 = arith.mulf %258, %243 : vector<2x16xf32>
    %268 = arith.mulf %252, %260 : vector<2x16xf32>
    %269 = arith.addf %267, %268 : vector<2x16xf32>
    %270 = math.tanh %269 : vector<2x16xf32>
    %271 = arith.mulf %266, %270 : vector<2x16xf32>
    %272 = vector.extract_strided_slice %241 {offsets = [2, 0], sizes = [2, 64], strides = [1, 1]} : vector<16x64xf32> to vector<2x64xf32>
    %cst_55 = arith.constant dense<0.000000e+00> : vector<2x64xf32>
    %273 = tpu.matmul %271, %237, %cst_55 {dimension_numbers = #tpu.dot_dimension_numbers<[1], [0], [0], [1], [0, 0, 1, 1], [], []>} : vector<2x16xf32>, vector<16x64xf32>, vector<2x64xf32> -> vector<2x64xf32>
    %274 = arith.addf %272, %273 : vector<2x64xf32>
    %275 = vector.extract_strided_slice %274 {offsets = [0, 0], sizes = [2, 16], strides = [1, 1]} : vector<2x64xf32> to vector<2x16xf32>
    %276 = arith.negf %275 : vector<2x16xf32>
    %277 = math.exp %276 : vector<2x16xf32>
    %cst_56 = arith.constant 1.000000e+00 : f32
    %278 = vector.broadcast %cst_56 : f32 to vector<2x16xf32>
    %279 = arith.addf %278, %277 : vector<2x16xf32>
    %280 = arith.divf %278, %279 : vector<2x16xf32>
    %281 = vector.extract_strided_slice %274 {offsets = [0, 16], sizes = [2, 16], strides = [1, 1]} : vector<2x64xf32> to vector<2x16xf32>
    %282 = arith.negf %281 : vector<2x16xf32>
    %283 = math.exp %282 : vector<2x16xf32>
    %cst_57 = arith.constant 1.000000e+00 : f32
    %284 = vector.broadcast %cst_57 : f32 to vector<2x16xf32>
    %285 = arith.addf %284, %283 : vector<2x16xf32>
    %286 = arith.divf %284, %285 : vector<2x16xf32>
    %287 = vector.extract_strided_slice %274 {offsets = [0, 32], sizes = [2, 16], strides = [1, 1]} : vector<2x64xf32> to vector<2x16xf32>
    %288 = math.tanh %287 : vector<2x16xf32>
    %289 = vector.extract_strided_slice %274 {offsets = [0, 48], sizes = [2, 16], strides = [1, 1]} : vector<2x64xf32> to vector<2x16xf32>
    %290 = arith.negf %289 : vector<2x16xf32>
    %291 = math.exp %290 : vector<2x16xf32>
    %cst_58 = arith.constant 1.000000e+00 : f32
    %292 = vector.broadcast %cst_58 : f32 to vector<2x16xf32>
    %293 = arith.addf %292, %291 : vector<2x16xf32>
    %294 = arith.divf %292, %293 : vector<2x16xf32>
    %295 = arith.mulf %286, %269 : vector<2x16xf32>
    %296 = arith.mulf %280, %288 : vector<2x16xf32>
    %297 = arith.addf %295, %296 : vector<2x16xf32>
    %298 = math.tanh %297 : vector<2x16xf32>
    %299 = arith.mulf %294, %298 : vector<2x16xf32>
    %300 = vector.extract_strided_slice %241 {offsets = [4, 0], sizes = [2, 64], strides = [1, 1]} : vector<16x64xf32> to vector<2x64xf32>
    %cst_59 = arith.constant dense<0.000000e+00> : vector<2x64xf32>
    %301 = tpu.matmul %299, %237, %cst_59 {dimension_numbers = #tpu.dot_dimension_numbers<[1], [0], [0], [1], [0, 0, 1, 1], [], []>} : vector<2x16xf32>, vector<16x64xf32>, vector<2x64xf32> -> vector<2x64xf32>
    %302 = arith.addf %300, %301 : vector<2x64xf32>
    %303 = vector.extract_strided_slice %302 {offsets = [0, 0], sizes = [2, 16], strides = [1, 1]} : vector<2x64xf32> to vector<2x16xf32>
    %304 = arith.negf %303 : vector<2x16xf32>
    %305 = math.exp %304 : vector<2x16xf32>
    %cst_60 = arith.constant 1.000000e+00 : f32
    %306 = vector.broadcast %cst_60 : f32 to vector<2x16xf32>
    %307 = arith.addf %306, %305 : vector<2x16xf32>
    %308 = arith.divf %306, %307 : vector<2x16xf32>
    %309 = vector.extract_strided_slice %302 {offsets = [0, 16], sizes = [2, 16], strides = [1, 1]} : vector<2x64xf32> to vector<2x16xf32>
    %310 = arith.negf %309 : vector<2x16xf32>
    %311 = math.exp %310 : vector<2x16xf32>
    %cst_61 = arith.constant 1.000000e+00 : f32
    %312 = vector.broadcast %cst_61 : f32 to vector<2x16xf32>
    %313 = arith.addf %312, %311 : vector<2x16xf32>
    %314 = arith.divf %312, %313 : vector<2x16xf32>
    %315 = vector.extract_strided_slice %302 {offsets = [0, 32], sizes = [2, 16], strides = [1, 1]} : vector<2x64xf32> to vector<2x16xf32>
    %316 = math.tanh %315 : vector<2x16xf32>
    %317 = vector.extract_strided_slice %302 {offsets = [0, 48], sizes = [2, 16], strides = [1, 1]} : vector<2x64xf32> to vector<2x16xf32>
    %318 = arith.negf %317 : vector<2x16xf32>
    %319 = math.exp %318 : vector<2x16xf32>
    %cst_62 = arith.constant 1.000000e+00 : f32
    %320 = vector.broadcast %cst_62 : f32 to vector<2x16xf32>
    %321 = arith.addf %320, %319 : vector<2x16xf32>
    %322 = arith.divf %320, %321 : vector<2x16xf32>
    %323 = arith.mulf %314, %297 : vector<2x16xf32>
    %324 = arith.mulf %308, %316 : vector<2x16xf32>
    %325 = arith.addf %323, %324 : vector<2x16xf32>
    %326 = math.tanh %325 : vector<2x16xf32>
    %327 = arith.mulf %322, %326 : vector<2x16xf32>
    %328 = vector.extract_strided_slice %241 {offsets = [6, 0], sizes = [2, 64], strides = [1, 1]} : vector<16x64xf32> to vector<2x64xf32>
    %cst_63 = arith.constant dense<0.000000e+00> : vector<2x64xf32>
    %329 = tpu.matmul %327, %237, %cst_63 {dimension_numbers = #tpu.dot_dimension_numbers<[1], [0], [0], [1], [0, 0, 1, 1], [], []>} : vector<2x16xf32>, vector<16x64xf32>, vector<2x64xf32> -> vector<2x64xf32>
    %330 = arith.addf %328, %329 : vector<2x64xf32>
    %331 = vector.extract_strided_slice %330 {offsets = [0, 0], sizes = [2, 16], strides = [1, 1]} : vector<2x64xf32> to vector<2x16xf32>
    %332 = arith.negf %331 : vector<2x16xf32>
    %333 = math.exp %332 : vector<2x16xf32>
    %cst_64 = arith.constant 1.000000e+00 : f32
    %334 = vector.broadcast %cst_64 : f32 to vector<2x16xf32>
    %335 = arith.addf %334, %333 : vector<2x16xf32>
    %336 = arith.divf %334, %335 : vector<2x16xf32>
    %337 = vector.extract_strided_slice %330 {offsets = [0, 16], sizes = [2, 16], strides = [1, 1]} : vector<2x64xf32> to vector<2x16xf32>
    %338 = arith.negf %337 : vector<2x16xf32>
    %339 = math.exp %338 : vector<2x16xf32>
    %cst_65 = arith.constant 1.000000e+00 : f32
    %340 = vector.broadcast %cst_65 : f32 to vector<2x16xf32>
    %341 = arith.addf %340, %339 : vector<2x16xf32>
    %342 = arith.divf %340, %341 : vector<2x16xf32>
    %343 = vector.extract_strided_slice %330 {offsets = [0, 32], sizes = [2, 16], strides = [1, 1]} : vector<2x64xf32> to vector<2x16xf32>
    %344 = math.tanh %343 : vector<2x16xf32>
    %345 = vector.extract_strided_slice %330 {offsets = [0, 48], sizes = [2, 16], strides = [1, 1]} : vector<2x64xf32> to vector<2x16xf32>
    %346 = arith.negf %345 : vector<2x16xf32>
    %347 = math.exp %346 : vector<2x16xf32>
    %cst_66 = arith.constant 1.000000e+00 : f32
    %348 = vector.broadcast %cst_66 : f32 to vector<2x16xf32>
    %349 = arith.addf %348, %347 : vector<2x16xf32>
    %350 = arith.divf %348, %349 : vector<2x16xf32>
    %351 = arith.mulf %342, %325 : vector<2x16xf32>
    %352 = arith.mulf %336, %344 : vector<2x16xf32>
    %353 = arith.addf %351, %352 : vector<2x16xf32>
    %354 = math.tanh %353 : vector<2x16xf32>
    %355 = arith.mulf %350, %354 : vector<2x16xf32>
    %356 = vector.extract_strided_slice %241 {offsets = [8, 0], sizes = [2, 64], strides = [1, 1]} : vector<16x64xf32> to vector<2x64xf32>
    %cst_67 = arith.constant dense<0.000000e+00> : vector<2x64xf32>
    %357 = tpu.matmul %355, %237, %cst_67 {dimension_numbers = #tpu.dot_dimension_numbers<[1], [0], [0], [1], [0, 0, 1, 1], [], []>} : vector<2x16xf32>, vector<16x64xf32>, vector<2x64xf32> -> vector<2x64xf32>
    %358 = arith.addf %356, %357 : vector<2x64xf32>
    %359 = vector.extract_strided_slice %358 {offsets = [0, 0], sizes = [2, 16], strides = [1, 1]} : vector<2x64xf32> to vector<2x16xf32>
    %360 = arith.negf %359 : vector<2x16xf32>
    %361 = math.exp %360 : vector<2x16xf32>
    %cst_68 = arith.constant 1.000000e+00 : f32
    %362 = vector.broadcast %cst_68 : f32 to vector<2x16xf32>
    %363 = arith.addf %362, %361 : vector<2x16xf32>
    %364 = arith.divf %362, %363 : vector<2x16xf32>
    %365 = vector.extract_strided_slice %358 {offsets = [0, 16], sizes = [2, 16], strides = [1, 1]} : vector<2x64xf32> to vector<2x16xf32>
    %366 = arith.negf %365 : vector<2x16xf32>
    %367 = math.exp %366 : vector<2x16xf32>
    %cst_69 = arith.constant 1.000000e+00 : f32
    %368 = vector.broadcast %cst_69 : f32 to vector<2x16xf32>
    %369 = arith.addf %368, %367 : vector<2x16xf32>
    %370 = arith.divf %368, %369 : vector<2x16xf32>
    %371 = vector.extract_strided_slice %358 {offsets = [0, 32], sizes = [2, 16], strides = [1, 1]} : vector<2x64xf32> to vector<2x16xf32>
    %372 = math.tanh %371 : vector<2x16xf32>
    %373 = vector.extract_strided_slice %358 {offsets = [0, 48], sizes = [2, 16], strides = [1, 1]} : vector<2x64xf32> to vector<2x16xf32>
    %374 = arith.negf %373 : vector<2x16xf32>
    %375 = math.exp %374 : vector<2x16xf32>
    %cst_70 = arith.constant 1.000000e+00 : f32
    %376 = vector.broadcast %cst_70 : f32 to vector<2x16xf32>
    %377 = arith.addf %376, %375 : vector<2x16xf32>
    %378 = arith.divf %376, %377 : vector<2x16xf32>
    %379 = arith.mulf %370, %353 : vector<2x16xf32>
    %380 = arith.mulf %364, %372 : vector<2x16xf32>
    %381 = arith.addf %379, %380 : vector<2x16xf32>
    %382 = math.tanh %381 : vector<2x16xf32>
    %383 = arith.mulf %378, %382 : vector<2x16xf32>
    %384 = vector.extract_strided_slice %241 {offsets = [10, 0], sizes = [2, 64], strides = [1, 1]} : vector<16x64xf32> to vector<2x64xf32>
    %cst_71 = arith.constant dense<0.000000e+00> : vector<2x64xf32>
    %385 = tpu.matmul %383, %237, %cst_71 {dimension_numbers = #tpu.dot_dimension_numbers<[1], [0], [0], [1], [0, 0, 1, 1], [], []>} : vector<2x16xf32>, vector<16x64xf32>, vector<2x64xf32> -> vector<2x64xf32>
    %386 = arith.addf %384, %385 : vector<2x64xf32>
    %387 = vector.extract_strided_slice %386 {offsets = [0, 0], sizes = [2, 16], strides = [1, 1]} : vector<2x64xf32> to vector<2x16xf32>
    %388 = arith.negf %387 : vector<2x16xf32>
    %389 = math.exp %388 : vector<2x16xf32>
    %cst_72 = arith.constant 1.000000e+00 : f32
    %390 = vector.broadcast %cst_72 : f32 to vector<2x16xf32>
    %391 = arith.addf %390, %389 : vector<2x16xf32>
    %392 = arith.divf %390, %391 : vector<2x16xf32>
    %393 = vector.extract_strided_slice %386 {offsets = [0, 16], sizes = [2, 16], strides = [1, 1]} : vector<2x64xf32> to vector<2x16xf32>
    %394 = arith.negf %393 : vector<2x16xf32>
    %395 = math.exp %394 : vector<2x16xf32>
    %cst_73 = arith.constant 1.000000e+00 : f32
    %396 = vector.broadcast %cst_73 : f32 to vector<2x16xf32>
    %397 = arith.addf %396, %395 : vector<2x16xf32>
    %398 = arith.divf %396, %397 : vector<2x16xf32>
    %399 = vector.extract_strided_slice %386 {offsets = [0, 32], sizes = [2, 16], strides = [1, 1]} : vector<2x64xf32> to vector<2x16xf32>
    %400 = math.tanh %399 : vector<2x16xf32>
    %401 = vector.extract_strided_slice %386 {offsets = [0, 48], sizes = [2, 16], strides = [1, 1]} : vector<2x64xf32> to vector<2x16xf32>
    %402 = arith.negf %401 : vector<2x16xf32>
    %403 = math.exp %402 : vector<2x16xf32>
    %cst_74 = arith.constant 1.000000e+00 : f32
    %404 = vector.broadcast %cst_74 : f32 to vector<2x16xf32>
    %405 = arith.addf %404, %403 : vector<2x16xf32>
    %406 = arith.divf %404, %405 : vector<2x16xf32>
    %407 = arith.mulf %398, %381 : vector<2x16xf32>
    %408 = arith.mulf %392, %400 : vector<2x16xf32>
    %409 = arith.addf %407, %408 : vector<2x16xf32>
    %410 = math.tanh %409 : vector<2x16xf32>
    %411 = arith.mulf %406, %410 : vector<2x16xf32>
    %412 = vector.extract_strided_slice %241 {offsets = [12, 0], sizes = [2, 64], strides = [1, 1]} : vector<16x64xf32> to vector<2x64xf32>
    %cst_75 = arith.constant dense<0.000000e+00> : vector<2x64xf32>
    %413 = tpu.matmul %411, %237, %cst_75 {dimension_numbers = #tpu.dot_dimension_numbers<[1], [0], [0], [1], [0, 0, 1, 1], [], []>} : vector<2x16xf32>, vector<16x64xf32>, vector<2x64xf32> -> vector<2x64xf32>
    %414 = arith.addf %412, %413 : vector<2x64xf32>
    %415 = vector.extract_strided_slice %414 {offsets = [0, 0], sizes = [2, 16], strides = [1, 1]} : vector<2x64xf32> to vector<2x16xf32>
    %416 = arith.negf %415 : vector<2x16xf32>
    %417 = math.exp %416 : vector<2x16xf32>
    %cst_76 = arith.constant 1.000000e+00 : f32
    %418 = vector.broadcast %cst_76 : f32 to vector<2x16xf32>
    %419 = arith.addf %418, %417 : vector<2x16xf32>
    %420 = arith.divf %418, %419 : vector<2x16xf32>
    %421 = vector.extract_strided_slice %414 {offsets = [0, 16], sizes = [2, 16], strides = [1, 1]} : vector<2x64xf32> to vector<2x16xf32>
    %422 = arith.negf %421 : vector<2x16xf32>
    %423 = math.exp %422 : vector<2x16xf32>
    %cst_77 = arith.constant 1.000000e+00 : f32
    %424 = vector.broadcast %cst_77 : f32 to vector<2x16xf32>
    %425 = arith.addf %424, %423 : vector<2x16xf32>
    %426 = arith.divf %424, %425 : vector<2x16xf32>
    %427 = vector.extract_strided_slice %414 {offsets = [0, 32], sizes = [2, 16], strides = [1, 1]} : vector<2x64xf32> to vector<2x16xf32>
    %428 = math.tanh %427 : vector<2x16xf32>
    %429 = vector.extract_strided_slice %414 {offsets = [0, 48], sizes = [2, 16], strides = [1, 1]} : vector<2x64xf32> to vector<2x16xf32>
    %430 = arith.negf %429 : vector<2x16xf32>
    %431 = math.exp %430 : vector<2x16xf32>
    %cst_78 = arith.constant 1.000000e+00 : f32
    %432 = vector.broadcast %cst_78 : f32 to vector<2x16xf32>
    %433 = arith.addf %432, %431 : vector<2x16xf32>
    %434 = arith.divf %432, %433 : vector<2x16xf32>
    %435 = arith.mulf %426, %409 : vector<2x16xf32>
    %436 = arith.mulf %420, %428 : vector<2x16xf32>
    %437 = arith.addf %435, %436 : vector<2x16xf32>
    %438 = math.tanh %437 : vector<2x16xf32>
    %439 = arith.mulf %434, %438 : vector<2x16xf32>
    %440 = vector.extract_strided_slice %241 {offsets = [14, 0], sizes = [2, 64], strides = [1, 1]} : vector<16x64xf32> to vector<2x64xf32>
    %cst_79 = arith.constant dense<0.000000e+00> : vector<2x64xf32>
    %441 = tpu.matmul %439, %237, %cst_79 {dimension_numbers = #tpu.dot_dimension_numbers<[1], [0], [0], [1], [0, 0, 1, 1], [], []>} : vector<2x16xf32>, vector<16x64xf32>, vector<2x64xf32> -> vector<2x64xf32>
    %442 = arith.addf %440, %441 : vector<2x64xf32>
    %443 = vector.extract_strided_slice %442 {offsets = [0, 0], sizes = [2, 16], strides = [1, 1]} : vector<2x64xf32> to vector<2x16xf32>
    %444 = arith.negf %443 : vector<2x16xf32>
    %445 = math.exp %444 : vector<2x16xf32>
    %cst_80 = arith.constant 1.000000e+00 : f32
    %446 = vector.broadcast %cst_80 : f32 to vector<2x16xf32>
    %447 = arith.addf %446, %445 : vector<2x16xf32>
    %448 = arith.divf %446, %447 : vector<2x16xf32>
    %449 = vector.extract_strided_slice %442 {offsets = [0, 16], sizes = [2, 16], strides = [1, 1]} : vector<2x64xf32> to vector<2x16xf32>
    %450 = arith.negf %449 : vector<2x16xf32>
    %451 = math.exp %450 : vector<2x16xf32>
    %cst_81 = arith.constant 1.000000e+00 : f32
    %452 = vector.broadcast %cst_81 : f32 to vector<2x16xf32>
    %453 = arith.addf %452, %451 : vector<2x16xf32>
    %454 = arith.divf %452, %453 : vector<2x16xf32>
    %455 = vector.extract_strided_slice %442 {offsets = [0, 32], sizes = [2, 16], strides = [1, 1]} : vector<2x64xf32> to vector<2x16xf32>
    %456 = math.tanh %455 : vector<2x16xf32>
    %457 = vector.extract_strided_slice %442 {offsets = [0, 48], sizes = [2, 16], strides = [1, 1]} : vector<2x64xf32> to vector<2x16xf32>
    %458 = arith.negf %457 : vector<2x16xf32>
    %459 = math.exp %458 : vector<2x16xf32>
    %cst_82 = arith.constant 1.000000e+00 : f32
    %460 = vector.broadcast %cst_82 : f32 to vector<2x16xf32>
    %461 = arith.addf %460, %459 : vector<2x16xf32>
    %462 = arith.divf %460, %461 : vector<2x16xf32>
    %463 = arith.mulf %454, %437 : vector<2x16xf32>
    %464 = arith.mulf %448, %456 : vector<2x16xf32>
    %465 = arith.addf %463, %464 : vector<2x16xf32>
    %466 = math.tanh %465 : vector<2x16xf32>
    %467 = arith.mulf %462, %466 : vector<2x16xf32>
    %468 = tpu.concatenate %271, %299, %327, %355, %383, %411, %439, %467 in 0 : vector<2x16xf32>, vector<2x16xf32>, vector<2x16xf32>, vector<2x16xf32>, vector<2x16xf32>, vector<2x16xf32>, vector<2x16xf32>, vector<2x16xf32> -> vector<16x16xf32>
    %cst_83 = arith.constant 0.000000e+00 : f32
    %469 = vector.broadcast %cst_83 : f32 to vector<16x16xf32>
    %470 = arith.maximumf %468, %469 : vector<16x16xf32>
    %c0_84 = arith.constant 0 : index
    %c0_85 = arith.constant 0 : index
    %471 = vector.load %arg8[%c0_84, %c0_85] : memref<16x32xf32, #tpu.memory_space<vmem>>, vector<16x32xf32>
    %c0_86 = arith.constant 0 : index
    %c0_87 = arith.constant 0 : index
    %472 = vector.load %arg9[%c0_86, %c0_87] : memref<8x32xf32, #tpu.memory_space<vmem>>, vector<8x32xf32>
    %c0_88 = arith.constant 0 : index
    %c0_89 = arith.constant 0 : index
    %473 = vector.load %arg10[%c0_88, %c0_89] : memref<1x32xf32, #tpu.memory_space<vmem>>, vector<1x32xf32>
    %cst_90 = arith.constant dense<0.000000e+00> : vector<16x32xf32>
    %474 = tpu.matmul %470, %471, %cst_90 {dimension_numbers = #tpu.dot_dimension_numbers<[1], [0], [0], [1], [0, 0, 1, 1], [], []>} : vector<16x16xf32>, vector<16x32xf32>, vector<16x32xf32> -> vector<16x32xf32>
    %475 = vector.broadcast %473 : vector<1x32xf32> to vector<16x32xf32>
    %476 = arith.addf %474, %475 : vector<16x32xf32>
    %cst_91 = arith.constant 0.000000e+00 : f32
    %477 = vector.broadcast %cst_91 : f32 to vector<2x8xf32>
    %cst_92 = arith.constant 0.000000e+00 : f32
    %478 = vector.broadcast %cst_92 : f32 to vector<2x8xf32>
    %479 = vector.extract_strided_slice %476 {offsets = [0, 0], sizes = [2, 32], strides = [1, 1]} : vector<16x32xf32> to vector<2x32xf32>
    %cst_93 = arith.constant dense<0.000000e+00> : vector<2x32xf32>
    %480 = tpu.matmul %477, %472, %cst_93 {dimension_numbers = #tpu.dot_dimension_numbers<[1], [0], [0], [1], [0, 0, 1, 1], [], []>} : vector<2x8xf32>, vector<8x32xf32>, vector<2x32xf32> -> vector<2x32xf32>
    %481 = arith.addf %479, %480 : vector<2x32xf32>
    %482 = vector.extract_strided_slice %481 {offsets = [0, 0], sizes = [2, 8], strides = [1, 1]} : vector<2x32xf32> to vector<2x8xf32>
    %483 = arith.negf %482 : vector<2x8xf32>
    %484 = math.exp %483 : vector<2x8xf32>
    %cst_94 = arith.constant 1.000000e+00 : f32
    %485 = vector.broadcast %cst_94 : f32 to vector<2x8xf32>
    %486 = arith.addf %485, %484 : vector<2x8xf32>
    %487 = arith.divf %485, %486 : vector<2x8xf32>
    %488 = vector.extract_strided_slice %481 {offsets = [0, 8], sizes = [2, 8], strides = [1, 1]} : vector<2x32xf32> to vector<2x8xf32>
    %489 = arith.negf %488 : vector<2x8xf32>
    %490 = math.exp %489 : vector<2x8xf32>
    %cst_95 = arith.constant 1.000000e+00 : f32
    %491 = vector.broadcast %cst_95 : f32 to vector<2x8xf32>
    %492 = arith.addf %491, %490 : vector<2x8xf32>
    %493 = arith.divf %491, %492 : vector<2x8xf32>
    %494 = vector.extract_strided_slice %481 {offsets = [0, 16], sizes = [2, 8], strides = [1, 1]} : vector<2x32xf32> to vector<2x8xf32>
    %495 = math.tanh %494 : vector<2x8xf32>
    %496 = vector.extract_strided_slice %481 {offsets = [0, 24], sizes = [2, 8], strides = [1, 1]} : vector<2x32xf32> to vector<2x8xf32>
    %497 = arith.negf %496 : vector<2x8xf32>
    %498 = math.exp %497 : vector<2x8xf32>
    %cst_96 = arith.constant 1.000000e+00 : f32
    %499 = vector.broadcast %cst_96 : f32 to vector<2x8xf32>
    %500 = arith.addf %499, %498 : vector<2x8xf32>
    %501 = arith.divf %499, %500 : vector<2x8xf32>
    %502 = arith.mulf %493, %478 : vector<2x8xf32>
    %503 = arith.mulf %487, %495 : vector<2x8xf32>
    %504 = arith.addf %502, %503 : vector<2x8xf32>
    %505 = math.tanh %504 : vector<2x8xf32>
    %506 = arith.mulf %501, %505 : vector<2x8xf32>
    %507 = vector.extract_strided_slice %476 {offsets = [2, 0], sizes = [2, 32], strides = [1, 1]} : vector<16x32xf32> to vector<2x32xf32>
    %cst_97 = arith.constant dense<0.000000e+00> : vector<2x32xf32>
    %508 = tpu.matmul %506, %472, %cst_97 {dimension_numbers = #tpu.dot_dimension_numbers<[1], [0], [0], [1], [0, 0, 1, 1], [], []>} : vector<2x8xf32>, vector<8x32xf32>, vector<2x32xf32> -> vector<2x32xf32>
    %509 = arith.addf %507, %508 : vector<2x32xf32>
    %510 = vector.extract_strided_slice %509 {offsets = [0, 0], sizes = [2, 8], strides = [1, 1]} : vector<2x32xf32> to vector<2x8xf32>
    %511 = arith.negf %510 : vector<2x8xf32>
    %512 = math.exp %511 : vector<2x8xf32>
    %cst_98 = arith.constant 1.000000e+00 : f32
    %513 = vector.broadcast %cst_98 : f32 to vector<2x8xf32>
    %514 = arith.addf %513, %512 : vector<2x8xf32>
    %515 = arith.divf %513, %514 : vector<2x8xf32>
    %516 = vector.extract_strided_slice %509 {offsets = [0, 8], sizes = [2, 8], strides = [1, 1]} : vector<2x32xf32> to vector<2x8xf32>
    %517 = arith.negf %516 : vector<2x8xf32>
    %518 = math.exp %517 : vector<2x8xf32>
    %cst_99 = arith.constant 1.000000e+00 : f32
    %519 = vector.broadcast %cst_99 : f32 to vector<2x8xf32>
    %520 = arith.addf %519, %518 : vector<2x8xf32>
    %521 = arith.divf %519, %520 : vector<2x8xf32>
    %522 = vector.extract_strided_slice %509 {offsets = [0, 16], sizes = [2, 8], strides = [1, 1]} : vector<2x32xf32> to vector<2x8xf32>
    %523 = math.tanh %522 : vector<2x8xf32>
    %524 = vector.extract_strided_slice %509 {offsets = [0, 24], sizes = [2, 8], strides = [1, 1]} : vector<2x32xf32> to vector<2x8xf32>
    %525 = arith.negf %524 : vector<2x8xf32>
    %526 = math.exp %525 : vector<2x8xf32>
    %cst_100 = arith.constant 1.000000e+00 : f32
    %527 = vector.broadcast %cst_100 : f32 to vector<2x8xf32>
    %528 = arith.addf %527, %526 : vector<2x8xf32>
    %529 = arith.divf %527, %528 : vector<2x8xf32>
    %530 = arith.mulf %521, %504 : vector<2x8xf32>
    %531 = arith.mulf %515, %523 : vector<2x8xf32>
    %532 = arith.addf %530, %531 : vector<2x8xf32>
    %533 = math.tanh %532 : vector<2x8xf32>
    %534 = arith.mulf %529, %533 : vector<2x8xf32>
    %535 = vector.extract_strided_slice %476 {offsets = [4, 0], sizes = [2, 32], strides = [1, 1]} : vector<16x32xf32> to vector<2x32xf32>
    %cst_101 = arith.constant dense<0.000000e+00> : vector<2x32xf32>
    %536 = tpu.matmul %534, %472, %cst_101 {dimension_numbers = #tpu.dot_dimension_numbers<[1], [0], [0], [1], [0, 0, 1, 1], [], []>} : vector<2x8xf32>, vector<8x32xf32>, vector<2x32xf32> -> vector<2x32xf32>
    %537 = arith.addf %535, %536 : vector<2x32xf32>
    %538 = vector.extract_strided_slice %537 {offsets = [0, 0], sizes = [2, 8], strides = [1, 1]} : vector<2x32xf32> to vector<2x8xf32>
    %539 = arith.negf %538 : vector<2x8xf32>
    %540 = math.exp %539 : vector<2x8xf32>
    %cst_102 = arith.constant 1.000000e+00 : f32
    %541 = vector.broadcast %cst_102 : f32 to vector<2x8xf32>
    %542 = arith.addf %541, %540 : vector<2x8xf32>
    %543 = arith.divf %541, %542 : vector<2x8xf32>
    %544 = vector.extract_strided_slice %537 {offsets = [0, 8], sizes = [2, 8], strides = [1, 1]} : vector<2x32xf32> to vector<2x8xf32>
    %545 = arith.negf %544 : vector<2x8xf32>
    %546 = math.exp %545 : vector<2x8xf32>
    %cst_103 = arith.constant 1.000000e+00 : f32
    %547 = vector.broadcast %cst_103 : f32 to vector<2x8xf32>
    %548 = arith.addf %547, %546 : vector<2x8xf32>
    %549 = arith.divf %547, %548 : vector<2x8xf32>
    %550 = vector.extract_strided_slice %537 {offsets = [0, 16], sizes = [2, 8], strides = [1, 1]} : vector<2x32xf32> to vector<2x8xf32>
    %551 = math.tanh %550 : vector<2x8xf32>
    %552 = vector.extract_strided_slice %537 {offsets = [0, 24], sizes = [2, 8], strides = [1, 1]} : vector<2x32xf32> to vector<2x8xf32>
    %553 = arith.negf %552 : vector<2x8xf32>
    %554 = math.exp %553 : vector<2x8xf32>
    %cst_104 = arith.constant 1.000000e+00 : f32
    %555 = vector.broadcast %cst_104 : f32 to vector<2x8xf32>
    %556 = arith.addf %555, %554 : vector<2x8xf32>
    %557 = arith.divf %555, %556 : vector<2x8xf32>
    %558 = arith.mulf %549, %532 : vector<2x8xf32>
    %559 = arith.mulf %543, %551 : vector<2x8xf32>
    %560 = arith.addf %558, %559 : vector<2x8xf32>
    %561 = math.tanh %560 : vector<2x8xf32>
    %562 = arith.mulf %557, %561 : vector<2x8xf32>
    %563 = vector.extract_strided_slice %476 {offsets = [6, 0], sizes = [2, 32], strides = [1, 1]} : vector<16x32xf32> to vector<2x32xf32>
    %cst_105 = arith.constant dense<0.000000e+00> : vector<2x32xf32>
    %564 = tpu.matmul %562, %472, %cst_105 {dimension_numbers = #tpu.dot_dimension_numbers<[1], [0], [0], [1], [0, 0, 1, 1], [], []>} : vector<2x8xf32>, vector<8x32xf32>, vector<2x32xf32> -> vector<2x32xf32>
    %565 = arith.addf %563, %564 : vector<2x32xf32>
    %566 = vector.extract_strided_slice %565 {offsets = [0, 0], sizes = [2, 8], strides = [1, 1]} : vector<2x32xf32> to vector<2x8xf32>
    %567 = arith.negf %566 : vector<2x8xf32>
    %568 = math.exp %567 : vector<2x8xf32>
    %cst_106 = arith.constant 1.000000e+00 : f32
    %569 = vector.broadcast %cst_106 : f32 to vector<2x8xf32>
    %570 = arith.addf %569, %568 : vector<2x8xf32>
    %571 = arith.divf %569, %570 : vector<2x8xf32>
    %572 = vector.extract_strided_slice %565 {offsets = [0, 8], sizes = [2, 8], strides = [1, 1]} : vector<2x32xf32> to vector<2x8xf32>
    %573 = arith.negf %572 : vector<2x8xf32>
    %574 = math.exp %573 : vector<2x8xf32>
    %cst_107 = arith.constant 1.000000e+00 : f32
    %575 = vector.broadcast %cst_107 : f32 to vector<2x8xf32>
    %576 = arith.addf %575, %574 : vector<2x8xf32>
    %577 = arith.divf %575, %576 : vector<2x8xf32>
    %578 = vector.extract_strided_slice %565 {offsets = [0, 16], sizes = [2, 8], strides = [1, 1]} : vector<2x32xf32> to vector<2x8xf32>
    %579 = math.tanh %578 : vector<2x8xf32>
    %580 = vector.extract_strided_slice %565 {offsets = [0, 24], sizes = [2, 8], strides = [1, 1]} : vector<2x32xf32> to vector<2x8xf32>
    %581 = arith.negf %580 : vector<2x8xf32>
    %582 = math.exp %581 : vector<2x8xf32>
    %cst_108 = arith.constant 1.000000e+00 : f32
    %583 = vector.broadcast %cst_108 : f32 to vector<2x8xf32>
    %584 = arith.addf %583, %582 : vector<2x8xf32>
    %585 = arith.divf %583, %584 : vector<2x8xf32>
    %586 = arith.mulf %577, %560 : vector<2x8xf32>
    %587 = arith.mulf %571, %579 : vector<2x8xf32>
    %588 = arith.addf %586, %587 : vector<2x8xf32>
    %589 = math.tanh %588 : vector<2x8xf32>
    %590 = arith.mulf %585, %589 : vector<2x8xf32>
    %591 = vector.extract_strided_slice %476 {offsets = [8, 0], sizes = [2, 32], strides = [1, 1]} : vector<16x32xf32> to vector<2x32xf32>
    %cst_109 = arith.constant dense<0.000000e+00> : vector<2x32xf32>
    %592 = tpu.matmul %590, %472, %cst_109 {dimension_numbers = #tpu.dot_dimension_numbers<[1], [0], [0], [1], [0, 0, 1, 1], [], []>} : vector<2x8xf32>, vector<8x32xf32>, vector<2x32xf32> -> vector<2x32xf32>
    %593 = arith.addf %591, %592 : vector<2x32xf32>
    %594 = vector.extract_strided_slice %593 {offsets = [0, 0], sizes = [2, 8], strides = [1, 1]} : vector<2x32xf32> to vector<2x8xf32>
    %595 = arith.negf %594 : vector<2x8xf32>
    %596 = math.exp %595 : vector<2x8xf32>
    %cst_110 = arith.constant 1.000000e+00 : f32
    %597 = vector.broadcast %cst_110 : f32 to vector<2x8xf32>
    %598 = arith.addf %597, %596 : vector<2x8xf32>
    %599 = arith.divf %597, %598 : vector<2x8xf32>
    %600 = vector.extract_strided_slice %593 {offsets = [0, 8], sizes = [2, 8], strides = [1, 1]} : vector<2x32xf32> to vector<2x8xf32>
    %601 = arith.negf %600 : vector<2x8xf32>
    %602 = math.exp %601 : vector<2x8xf32>
    %cst_111 = arith.constant 1.000000e+00 : f32
    %603 = vector.broadcast %cst_111 : f32 to vector<2x8xf32>
    %604 = arith.addf %603, %602 : vector<2x8xf32>
    %605 = arith.divf %603, %604 : vector<2x8xf32>
    %606 = vector.extract_strided_slice %593 {offsets = [0, 16], sizes = [2, 8], strides = [1, 1]} : vector<2x32xf32> to vector<2x8xf32>
    %607 = math.tanh %606 : vector<2x8xf32>
    %608 = vector.extract_strided_slice %593 {offsets = [0, 24], sizes = [2, 8], strides = [1, 1]} : vector<2x32xf32> to vector<2x8xf32>
    %609 = arith.negf %608 : vector<2x8xf32>
    %610 = math.exp %609 : vector<2x8xf32>
    %cst_112 = arith.constant 1.000000e+00 : f32
    %611 = vector.broadcast %cst_112 : f32 to vector<2x8xf32>
    %612 = arith.addf %611, %610 : vector<2x8xf32>
    %613 = arith.divf %611, %612 : vector<2x8xf32>
    %614 = arith.mulf %605, %588 : vector<2x8xf32>
    %615 = arith.mulf %599, %607 : vector<2x8xf32>
    %616 = arith.addf %614, %615 : vector<2x8xf32>
    %617 = math.tanh %616 : vector<2x8xf32>
    %618 = arith.mulf %613, %617 : vector<2x8xf32>
    %619 = vector.extract_strided_slice %476 {offsets = [10, 0], sizes = [2, 32], strides = [1, 1]} : vector<16x32xf32> to vector<2x32xf32>
    %cst_113 = arith.constant dense<0.000000e+00> : vector<2x32xf32>
    %620 = tpu.matmul %618, %472, %cst_113 {dimension_numbers = #tpu.dot_dimension_numbers<[1], [0], [0], [1], [0, 0, 1, 1], [], []>} : vector<2x8xf32>, vector<8x32xf32>, vector<2x32xf32> -> vector<2x32xf32>
    %621 = arith.addf %619, %620 : vector<2x32xf32>
    %622 = vector.extract_strided_slice %621 {offsets = [0, 0], sizes = [2, 8], strides = [1, 1]} : vector<2x32xf32> to vector<2x8xf32>
    %623 = arith.negf %622 : vector<2x8xf32>
    %624 = math.exp %623 : vector<2x8xf32>
    %cst_114 = arith.constant 1.000000e+00 : f32
    %625 = vector.broadcast %cst_114 : f32 to vector<2x8xf32>
    %626 = arith.addf %625, %624 : vector<2x8xf32>
    %627 = arith.divf %625, %626 : vector<2x8xf32>
    %628 = vector.extract_strided_slice %621 {offsets = [0, 8], sizes = [2, 8], strides = [1, 1]} : vector<2x32xf32> to vector<2x8xf32>
    %629 = arith.negf %628 : vector<2x8xf32>
    %630 = math.exp %629 : vector<2x8xf32>
    %cst_115 = arith.constant 1.000000e+00 : f32
    %631 = vector.broadcast %cst_115 : f32 to vector<2x8xf32>
    %632 = arith.addf %631, %630 : vector<2x8xf32>
    %633 = arith.divf %631, %632 : vector<2x8xf32>
    %634 = vector.extract_strided_slice %621 {offsets = [0, 16], sizes = [2, 8], strides = [1, 1]} : vector<2x32xf32> to vector<2x8xf32>
    %635 = math.tanh %634 : vector<2x8xf32>
    %636 = vector.extract_strided_slice %621 {offsets = [0, 24], sizes = [2, 8], strides = [1, 1]} : vector<2x32xf32> to vector<2x8xf32>
    %637 = arith.negf %636 : vector<2x8xf32>
    %638 = math.exp %637 : vector<2x8xf32>
    %cst_116 = arith.constant 1.000000e+00 : f32
    %639 = vector.broadcast %cst_116 : f32 to vector<2x8xf32>
    %640 = arith.addf %639, %638 : vector<2x8xf32>
    %641 = arith.divf %639, %640 : vector<2x8xf32>
    %642 = arith.mulf %633, %616 : vector<2x8xf32>
    %643 = arith.mulf %627, %635 : vector<2x8xf32>
    %644 = arith.addf %642, %643 : vector<2x8xf32>
    %645 = math.tanh %644 : vector<2x8xf32>
    %646 = arith.mulf %641, %645 : vector<2x8xf32>
    %647 = vector.extract_strided_slice %476 {offsets = [12, 0], sizes = [2, 32], strides = [1, 1]} : vector<16x32xf32> to vector<2x32xf32>
    %cst_117 = arith.constant dense<0.000000e+00> : vector<2x32xf32>
    %648 = tpu.matmul %646, %472, %cst_117 {dimension_numbers = #tpu.dot_dimension_numbers<[1], [0], [0], [1], [0, 0, 1, 1], [], []>} : vector<2x8xf32>, vector<8x32xf32>, vector<2x32xf32> -> vector<2x32xf32>
    %649 = arith.addf %647, %648 : vector<2x32xf32>
    %650 = vector.extract_strided_slice %649 {offsets = [0, 0], sizes = [2, 8], strides = [1, 1]} : vector<2x32xf32> to vector<2x8xf32>
    %651 = arith.negf %650 : vector<2x8xf32>
    %652 = math.exp %651 : vector<2x8xf32>
    %cst_118 = arith.constant 1.000000e+00 : f32
    %653 = vector.broadcast %cst_118 : f32 to vector<2x8xf32>
    %654 = arith.addf %653, %652 : vector<2x8xf32>
    %655 = arith.divf %653, %654 : vector<2x8xf32>
    %656 = vector.extract_strided_slice %649 {offsets = [0, 8], sizes = [2, 8], strides = [1, 1]} : vector<2x32xf32> to vector<2x8xf32>
    %657 = arith.negf %656 : vector<2x8xf32>
    %658 = math.exp %657 : vector<2x8xf32>
    %cst_119 = arith.constant 1.000000e+00 : f32
    %659 = vector.broadcast %cst_119 : f32 to vector<2x8xf32>
    %660 = arith.addf %659, %658 : vector<2x8xf32>
    %661 = arith.divf %659, %660 : vector<2x8xf32>
    %662 = vector.extract_strided_slice %649 {offsets = [0, 16], sizes = [2, 8], strides = [1, 1]} : vector<2x32xf32> to vector<2x8xf32>
    %663 = math.tanh %662 : vector<2x8xf32>
    %664 = vector.extract_strided_slice %649 {offsets = [0, 24], sizes = [2, 8], strides = [1, 1]} : vector<2x32xf32> to vector<2x8xf32>
    %665 = arith.negf %664 : vector<2x8xf32>
    %666 = math.exp %665 : vector<2x8xf32>
    %cst_120 = arith.constant 1.000000e+00 : f32
    %667 = vector.broadcast %cst_120 : f32 to vector<2x8xf32>
    %668 = arith.addf %667, %666 : vector<2x8xf32>
    %669 = arith.divf %667, %668 : vector<2x8xf32>
    %670 = arith.mulf %661, %644 : vector<2x8xf32>
    %671 = arith.mulf %655, %663 : vector<2x8xf32>
    %672 = arith.addf %670, %671 : vector<2x8xf32>
    %673 = math.tanh %672 : vector<2x8xf32>
    %674 = arith.mulf %669, %673 : vector<2x8xf32>
    %675 = vector.extract_strided_slice %476 {offsets = [14, 0], sizes = [2, 32], strides = [1, 1]} : vector<16x32xf32> to vector<2x32xf32>
    %cst_121 = arith.constant dense<0.000000e+00> : vector<2x32xf32>
    %676 = tpu.matmul %674, %472, %cst_121 {dimension_numbers = #tpu.dot_dimension_numbers<[1], [0], [0], [1], [0, 0, 1, 1], [], []>} : vector<2x8xf32>, vector<8x32xf32>, vector<2x32xf32> -> vector<2x32xf32>
    %677 = arith.addf %675, %676 : vector<2x32xf32>
    %678 = vector.extract_strided_slice %677 {offsets = [0, 0], sizes = [2, 8], strides = [1, 1]} : vector<2x32xf32> to vector<2x8xf32>
    %679 = arith.negf %678 : vector<2x8xf32>
    %680 = math.exp %679 : vector<2x8xf32>
    %cst_122 = arith.constant 1.000000e+00 : f32
    %681 = vector.broadcast %cst_122 : f32 to vector<2x8xf32>
    %682 = arith.addf %681, %680 : vector<2x8xf32>
    %683 = arith.divf %681, %682 : vector<2x8xf32>
    %684 = vector.extract_strided_slice %677 {offsets = [0, 8], sizes = [2, 8], strides = [1, 1]} : vector<2x32xf32> to vector<2x8xf32>
    %685 = arith.negf %684 : vector<2x8xf32>
    %686 = math.exp %685 : vector<2x8xf32>
    %cst_123 = arith.constant 1.000000e+00 : f32
    %687 = vector.broadcast %cst_123 : f32 to vector<2x8xf32>
    %688 = arith.addf %687, %686 : vector<2x8xf32>
    %689 = arith.divf %687, %688 : vector<2x8xf32>
    %690 = vector.extract_strided_slice %677 {offsets = [0, 16], sizes = [2, 8], strides = [1, 1]} : vector<2x32xf32> to vector<2x8xf32>
    %691 = math.tanh %690 : vector<2x8xf32>
    %692 = vector.extract_strided_slice %677 {offsets = [0, 24], sizes = [2, 8], strides = [1, 1]} : vector<2x32xf32> to vector<2x8xf32>
    %693 = arith.negf %692 : vector<2x8xf32>
    %694 = math.exp %693 : vector<2x8xf32>
    %cst_124 = arith.constant 1.000000e+00 : f32
    %695 = vector.broadcast %cst_124 : f32 to vector<2x8xf32>
    %696 = arith.addf %695, %694 : vector<2x8xf32>
    %697 = arith.divf %695, %696 : vector<2x8xf32>
    %698 = arith.mulf %689, %672 : vector<2x8xf32>
    %699 = arith.mulf %683, %691 : vector<2x8xf32>
    %700 = arith.addf %698, %699 : vector<2x8xf32>
    %701 = math.tanh %700 : vector<2x8xf32>
    %702 = arith.mulf %697, %701 : vector<2x8xf32>
    %c0_125 = arith.constant 0 : index
    %c0_126 = arith.constant 0 : index
    %703 = vector.load %arg11[%c0_125, %c0_126] : memref<8x8xf32, #tpu.memory_space<vmem>>, vector<8x8xf32>
    %cst_127 = arith.constant dense<0.000000e+00> : vector<2x8xf32>
    %704 = tpu.matmul %702, %703, %cst_127 {dimension_numbers = #tpu.dot_dimension_numbers<[1], [0], [0], [1], [0, 0, 1, 1], [], []>} : vector<2x8xf32>, vector<8x8xf32>, vector<2x8xf32> -> vector<2x8xf32>
    %c0_128 = arith.constant 0 : index
    %c0_129 = arith.constant 0 : index
    %705 = vector.load %arg12[%c0_128, %c0_129] : memref<1x8xf32, #tpu.memory_space<vmem>>, vector<1x8xf32>
    %706 = vector.broadcast %705 : vector<1x8xf32> to vector<2x8xf32>
    %707 = arith.addf %704, %706 : vector<2x8xf32>
    %c0_130 = arith.constant 0 : index
    %c0_131 = arith.constant 0 : index
    %708 = vector.load %arg13[%c0_130, %c0_131] : memref<8x8xf32, #tpu.memory_space<vmem>>, vector<8x8xf32>
    %cst_132 = arith.constant dense<0.000000e+00> : vector<2x8xf32>
    %709 = tpu.matmul %702, %708, %cst_132 {dimension_numbers = #tpu.dot_dimension_numbers<[1], [0], [0], [1], [0, 0, 1, 1], [], []>} : vector<2x8xf32>, vector<8x8xf32>, vector<2x8xf32> -> vector<2x8xf32>
    %c0_133 = arith.constant 0 : index
    %c0_134 = arith.constant 0 : index
    %710 = vector.load %arg14[%c0_133, %c0_134] : memref<1x8xf32, #tpu.memory_space<vmem>>, vector<1x8xf32>
    %711 = vector.broadcast %710 : vector<1x8xf32> to vector<2x8xf32>
    %712 = arith.addf %709, %711 : vector<2x8xf32>
    %c0_135 = arith.constant 0 : index
    %c0_136 = arith.constant 0 : index
    %713 = vector.load %arg24[%c0_135, %c0_136] : memref<2x8xf32, #tpu.memory_space<vmem>>, vector<2x8xf32>
    tpu.vector_store %arg24[%c0_135, %c0_136], %707 {strides = array<i32>} : memref<2x8xf32, #tpu.memory_space<vmem>>, vector<2x8xf32>,
    %c0_137 = arith.constant 0 : index
    %c0_138 = arith.constant 0 : index
    %714 = vector.load %arg25[%c0_137, %c0_138] : memref<2x8xf32, #tpu.memory_space<vmem>>, vector<2x8xf32>
    tpu.vector_store %arg25[%c0_137, %c0_138], %712 {strides = array<i32>} : memref<2x8xf32, #tpu.memory_space<vmem>>, vector<2x8xf32>,
    %cst_139 = arith.constant 5.000000e-01 : f32
    %715 = vector.broadcast %cst_139 : f32 to vector<2x8xf32>
    %716 = arith.mulf %715, %712 : vector<2x8xf32>
    %717 = math.exp %716 : vector<2x8xf32>
    %718 = tpu.concatenate %707, %707, %707, %707, %707, %707, %707, %707 in 0 : vector<2x8xf32>, vector<2x8xf32>, vector<2x8xf32>, vector<2x8xf32>, vector<2x8xf32>, vector<2x8xf32>, vector<2x8xf32>, vector<2x8xf32> -> vector<16x8xf32>
    %c0_140 = arith.constant 0 : index
    %c0_141 = arith.constant 0 : index
    %719 = vector.load %arg1[%c0_140, %c0_141] : memref<16x8xf32, #tpu.memory_space<vmem>>, vector<16x8xf32>
    %720 = tpu.concatenate %717, %717, %717, %717, %717, %717, %717, %717 in 0 : vector<2x8xf32>, vector<2x8xf32>, vector<2x8xf32>, vector<2x8xf32>, vector<2x8xf32>, vector<2x8xf32>, vector<2x8xf32>, vector<2x8xf32> -> vector<16x8xf32>
    %721 = arith.mulf %719, %720 : vector<16x8xf32>
    %722 = arith.addf %718, %721 : vector<16x8xf32>
    %c0_142 = arith.constant 0 : index
    %c0_143 = arith.constant 0 : index
    %723 = vector.load %arg15[%c0_142, %c0_143] : memref<8x64xf32, #tpu.memory_space<vmem>>, vector<8x64xf32>
    %c0_144 = arith.constant 0 : index
    %c0_145 = arith.constant 0 : index
    %724 = vector.load %arg16[%c0_144, %c0_145] : memref<16x64xf32, #tpu.memory_space<vmem>>, vector<16x64xf32>
    %c0_146 = arith.constant 0 : index
    %c0_147 = arith.constant 0 : index
    %725 = vector.load %arg17[%c0_146, %c0_147] : memref<1x64xf32, #tpu.memory_space<vmem>>, vector<1x64xf32>
    %cst_148 = arith.constant dense<0.000000e+00> : vector<16x64xf32>
    %726 = tpu.matmul %722, %723, %cst_148 {dimension_numbers = #tpu.dot_dimension_numbers<[1], [0], [0], [1], [0, 0, 1, 1], [], []>} : vector<16x8xf32>, vector<8x64xf32>, vector<16x64xf32> -> vector<16x64xf32>
    %727 = vector.broadcast %725 : vector<1x64xf32> to vector<16x64xf32>
    %728 = arith.addf %726, %727 : vector<16x64xf32>
    %cst_149 = arith.constant 0.000000e+00 : f32
    %729 = vector.broadcast %cst_149 : f32 to vector<2x16xf32>
    %cst_150 = arith.constant 0.000000e+00 : f32
    %730 = vector.broadcast %cst_150 : f32 to vector<2x16xf32>
    %731 = vector.extract_strided_slice %728 {offsets = [0, 0], sizes = [2, 64], strides = [1, 1]} : vector<16x64xf32> to vector<2x64xf32>
    %cst_151 = arith.constant dense<0.000000e+00> : vector<2x64xf32>
    %732 = tpu.matmul %729, %724, %cst_151 {dimension_numbers = #tpu.dot_dimension_numbers<[1], [0], [0], [1], [0, 0, 1, 1], [], []>} : vector<2x16xf32>, vector<16x64xf32>, vector<2x64xf32> -> vector<2x64xf32>
    %733 = arith.addf %731, %732 : vector<2x64xf32>
    %734 = vector.extract_strided_slice %733 {offsets = [0, 0], sizes = [2, 16], strides = [1, 1]} : vector<2x64xf32> to vector<2x16xf32>
    %735 = arith.negf %734 : vector<2x16xf32>
    %736 = math.exp %735 : vector<2x16xf32>
    %cst_152 = arith.constant 1.000000e+00 : f32
    %737 = vector.broadcast %cst_152 : f32 to vector<2x16xf32>
    %738 = arith.addf %737, %736 : vector<2x16xf32>
    %739 = arith.divf %737, %738 : vector<2x16xf32>
    %740 = vector.extract_strided_slice %733 {offsets = [0, 16], sizes = [2, 16], strides = [1, 1]} : vector<2x64xf32> to vector<2x16xf32>
    %741 = arith.negf %740 : vector<2x16xf32>
    %742 = math.exp %741 : vector<2x16xf32>
    %cst_153 = arith.constant 1.000000e+00 : f32
    %743 = vector.broadcast %cst_153 : f32 to vector<2x16xf32>
    %744 = arith.addf %743, %742 : vector<2x16xf32>
    %745 = arith.divf %743, %744 : vector<2x16xf32>
    %746 = vector.extract_strided_slice %733 {offsets = [0, 32], sizes = [2, 16], strides = [1, 1]} : vector<2x64xf32> to vector<2x16xf32>
    %747 = math.tanh %746 : vector<2x16xf32>
    %748 = vector.extract_strided_slice %733 {offsets = [0, 48], sizes = [2, 16], strides = [1, 1]} : vector<2x64xf32> to vector<2x16xf32>
    %749 = arith.negf %748 : vector<2x16xf32>
    %750 = math.exp %749 : vector<2x16xf32>
    %cst_154 = arith.constant 1.000000e+00 : f32
    %751 = vector.broadcast %cst_154 : f32 to vector<2x16xf32>
    %752 = arith.addf %751, %750 : vector<2x16xf32>
    %753 = arith.divf %751, %752 : vector<2x16xf32>
    %754 = arith.mulf %745, %730 : vector<2x16xf32>
    %755 = arith.mulf %739, %747 : vector<2x16xf32>
    %756 = arith.addf %754, %755 : vector<2x16xf32>
    %757 = math.tanh %756 : vector<2x16xf32>
    %758 = arith.mulf %753, %757 : vector<2x16xf32>
    %759 = vector.extract_strided_slice %728 {offsets = [2, 0], sizes = [2, 64], strides = [1, 1]} : vector<16x64xf32> to vector<2x64xf32>
    %cst_155 = arith.constant dense<0.000000e+00> : vector<2x64xf32>
    %760 = tpu.matmul %758, %724, %cst_155 {dimension_numbers = #tpu.dot_dimension_numbers<[1], [0], [0], [1], [0, 0, 1, 1], [], []>} : vector<2x16xf32>, vector<16x64xf32>, vector<2x64xf32> -> vector<2x64xf32>
    %761 = arith.addf %759, %760 : vector<2x64xf32>
    %762 = vector.extract_strided_slice %761 {offsets = [0, 0], sizes = [2, 16], strides = [1, 1]} : vector<2x64xf32> to vector<2x16xf32>
    %763 = arith.negf %762 : vector<2x16xf32>
    %764 = math.exp %763 : vector<2x16xf32>
    %cst_156 = arith.constant 1.000000e+00 : f32
    %765 = vector.broadcast %cst_156 : f32 to vector<2x16xf32>
    %766 = arith.addf %765, %764 : vector<2x16xf32>
    %767 = arith.divf %765, %766 : vector<2x16xf32>
    %768 = vector.extract_strided_slice %761 {offsets = [0, 16], sizes = [2, 16], strides = [1, 1]} : vector<2x64xf32> to vector<2x16xf32>
    %769 = arith.negf %768 : vector<2x16xf32>
    %770 = math.exp %769 : vector<2x16xf32>
    %cst_157 = arith.constant 1.000000e+00 : f32
    %771 = vector.broadcast %cst_157 : f32 to vector<2x16xf32>
    %772 = arith.addf %771, %770 : vector<2x16xf32>
    %773 = arith.divf %771, %772 : vector<2x16xf32>
    %774 = vector.extract_strided_slice %761 {offsets = [0, 32], sizes = [2, 16], strides = [1, 1]} : vector<2x64xf32> to vector<2x16xf32>
    %775 = math.tanh %774 : vector<2x16xf32>
    %776 = vector.extract_strided_slice %761 {offsets = [0, 48], sizes = [2, 16], strides = [1, 1]} : vector<2x64xf32> to vector<2x16xf32>
    %777 = arith.negf %776 : vector<2x16xf32>
    %778 = math.exp %777 : vector<2x16xf32>
    %cst_158 = arith.constant 1.000000e+00 : f32
    %779 = vector.broadcast %cst_158 : f32 to vector<2x16xf32>
    %780 = arith.addf %779, %778 : vector<2x16xf32>
    %781 = arith.divf %779, %780 : vector<2x16xf32>
    %782 = arith.mulf %773, %756 : vector<2x16xf32>
    %783 = arith.mulf %767, %775 : vector<2x16xf32>
    %784 = arith.addf %782, %783 : vector<2x16xf32>
    %785 = math.tanh %784 : vector<2x16xf32>
    %786 = arith.mulf %781, %785 : vector<2x16xf32>
    %787 = vector.extract_strided_slice %728 {offsets = [4, 0], sizes = [2, 64], strides = [1, 1]} : vector<16x64xf32> to vector<2x64xf32>
    %cst_159 = arith.constant dense<0.000000e+00> : vector<2x64xf32>
    %788 = tpu.matmul %786, %724, %cst_159 {dimension_numbers = #tpu.dot_dimension_numbers<[1], [0], [0], [1], [0, 0, 1, 1], [], []>} : vector<2x16xf32>, vector<16x64xf32>, vector<2x64xf32> -> vector<2x64xf32>
    %789 = arith.addf %787, %788 : vector<2x64xf32>
    %790 = vector.extract_strided_slice %789 {offsets = [0, 0], sizes = [2, 16], strides = [1, 1]} : vector<2x64xf32> to vector<2x16xf32>
    %791 = arith.negf %790 : vector<2x16xf32>
    %792 = math.exp %791 : vector<2x16xf32>
    %cst_160 = arith.constant 1.000000e+00 : f32
    %793 = vector.broadcast %cst_160 : f32 to vector<2x16xf32>
    %794 = arith.addf %793, %792 : vector<2x16xf32>
    %795 = arith.divf %793, %794 : vector<2x16xf32>
    %796 = vector.extract_strided_slice %789 {offsets = [0, 16], sizes = [2, 16], strides = [1, 1]} : vector<2x64xf32> to vector<2x16xf32>
    %797 = arith.negf %796 : vector<2x16xf32>
    %798 = math.exp %797 : vector<2x16xf32>
    %cst_161 = arith.constant 1.000000e+00 : f32
    %799 = vector.broadcast %cst_161 : f32 to vector<2x16xf32>
    %800 = arith.addf %799, %798 : vector<2x16xf32>
    %801 = arith.divf %799, %800 : vector<2x16xf32>
    %802 = vector.extract_strided_slice %789 {offsets = [0, 32], sizes = [2, 16], strides = [1, 1]} : vector<2x64xf32> to vector<2x16xf32>
    %803 = math.tanh %802 : vector<2x16xf32>
    %804 = vector.extract_strided_slice %789 {offsets = [0, 48], sizes = [2, 16], strides = [1, 1]} : vector<2x64xf32> to vector<2x16xf32>
    %805 = arith.negf %804 : vector<2x16xf32>
    %806 = math.exp %805 : vector<2x16xf32>
    %cst_162 = arith.constant 1.000000e+00 : f32
    %807 = vector.broadcast %cst_162 : f32 to vector<2x16xf32>
    %808 = arith.addf %807, %806 : vector<2x16xf32>
    %809 = arith.divf %807, %808 : vector<2x16xf32>
    %810 = arith.mulf %801, %784 : vector<2x16xf32>
    %811 = arith.mulf %795, %803 : vector<2x16xf32>
    %812 = arith.addf %810, %811 : vector<2x16xf32>
    %813 = math.tanh %812 : vector<2x16xf32>
    %814 = arith.mulf %809, %813 : vector<2x16xf32>
    %815 = vector.extract_strided_slice %728 {offsets = [6, 0], sizes = [2, 64], strides = [1, 1]} : vector<16x64xf32> to vector<2x64xf32>
    %cst_163 = arith.constant dense<0.000000e+00> : vector<2x64xf32>
    %816 = tpu.matmul %814, %724, %cst_163 {dimension_numbers = #tpu.dot_dimension_numbers<[1], [0], [0], [1], [0, 0, 1, 1], [], []>} : vector<2x16xf32>, vector<16x64xf32>, vector<2x64xf32> -> vector<2x64xf32>
    %817 = arith.addf %815, %816 : vector<2x64xf32>
    %818 = vector.extract_strided_slice %817 {offsets = [0, 0], sizes = [2, 16], strides = [1, 1]} : vector<2x64xf32> to vector<2x16xf32>
    %819 = arith.negf %818 : vector<2x16xf32>
    %820 = math.exp %819 : vector<2x16xf32>
    %cst_164 = arith.constant 1.000000e+00 : f32
    %821 = vector.broadcast %cst_164 : f32 to vector<2x16xf32>
    %822 = arith.addf %821, %820 : vector<2x16xf32>
    %823 = arith.divf %821, %822 : vector<2x16xf32>
    %824 = vector.extract_strided_slice %817 {offsets = [0, 16], sizes = [2, 16], strides = [1, 1]} : vector<2x64xf32> to vector<2x16xf32>
    %825 = arith.negf %824 : vector<2x16xf32>
    %826 = math.exp %825 : vector<2x16xf32>
    %cst_165 = arith.constant 1.000000e+00 : f32
    %827 = vector.broadcast %cst_165 : f32 to vector<2x16xf32>
    %828 = arith.addf %827, %826 : vector<2x16xf32>
    %829 = arith.divf %827, %828 : vector<2x16xf32>
    %830 = vector.extract_strided_slice %817 {offsets = [0, 32], sizes = [2, 16], strides = [1, 1]} : vector<2x64xf32> to vector<2x16xf32>
    %831 = math.tanh %830 : vector<2x16xf32>
    %832 = vector.extract_strided_slice %817 {offsets = [0, 48], sizes = [2, 16], strides = [1, 1]} : vector<2x64xf32> to vector<2x16xf32>
    %833 = arith.negf %832 : vector<2x16xf32>
    %834 = math.exp %833 : vector<2x16xf32>
    %cst_166 = arith.constant 1.000000e+00 : f32
    %835 = vector.broadcast %cst_166 : f32 to vector<2x16xf32>
    %836 = arith.addf %835, %834 : vector<2x16xf32>
    %837 = arith.divf %835, %836 : vector<2x16xf32>
    %838 = arith.mulf %829, %812 : vector<2x16xf32>
    %839 = arith.mulf %823, %831 : vector<2x16xf32>
    %840 = arith.addf %838, %839 : vector<2x16xf32>
    %841 = math.tanh %840 : vector<2x16xf32>
    %842 = arith.mulf %837, %841 : vector<2x16xf32>
    %843 = vector.extract_strided_slice %728 {offsets = [8, 0], sizes = [2, 64], strides = [1, 1]} : vector<16x64xf32> to vector<2x64xf32>
    %cst_167 = arith.constant dense<0.000000e+00> : vector<2x64xf32>
    %844 = tpu.matmul %842, %724, %cst_167 {dimension_numbers = #tpu.dot_dimension_numbers<[1], [0], [0], [1], [0, 0, 1, 1], [], []>} : vector<2x16xf32>, vector<16x64xf32>, vector<2x64xf32> -> vector<2x64xf32>
    %845 = arith.addf %843, %844 : vector<2x64xf32>
    %846 = vector.extract_strided_slice %845 {offsets = [0, 0], sizes = [2, 16], strides = [1, 1]} : vector<2x64xf32> to vector<2x16xf32>
    %847 = arith.negf %846 : vector<2x16xf32>
    %848 = math.exp %847 : vector<2x16xf32>
    %cst_168 = arith.constant 1.000000e+00 : f32
    %849 = vector.broadcast %cst_168 : f32 to vector<2x16xf32>
    %850 = arith.addf %849, %848 : vector<2x16xf32>
    %851 = arith.divf %849, %850 : vector<2x16xf32>
    %852 = vector.extract_strided_slice %845 {offsets = [0, 16], sizes = [2, 16], strides = [1, 1]} : vector<2x64xf32> to vector<2x16xf32>
    %853 = arith.negf %852 : vector<2x16xf32>
    %854 = math.exp %853 : vector<2x16xf32>
    %cst_169 = arith.constant 1.000000e+00 : f32
    %855 = vector.broadcast %cst_169 : f32 to vector<2x16xf32>
    %856 = arith.addf %855, %854 : vector<2x16xf32>
    %857 = arith.divf %855, %856 : vector<2x16xf32>
    %858 = vector.extract_strided_slice %845 {offsets = [0, 32], sizes = [2, 16], strides = [1, 1]} : vector<2x64xf32> to vector<2x16xf32>
    %859 = math.tanh %858 : vector<2x16xf32>
    %860 = vector.extract_strided_slice %845 {offsets = [0, 48], sizes = [2, 16], strides = [1, 1]} : vector<2x64xf32> to vector<2x16xf32>
    %861 = arith.negf %860 : vector<2x16xf32>
    %862 = math.exp %861 : vector<2x16xf32>
    %cst_170 = arith.constant 1.000000e+00 : f32
    %863 = vector.broadcast %cst_170 : f32 to vector<2x16xf32>
    %864 = arith.addf %863, %862 : vector<2x16xf32>
    %865 = arith.divf %863, %864 : vector<2x16xf32>
    %866 = arith.mulf %857, %840 : vector<2x16xf32>
    %867 = arith.mulf %851, %859 : vector<2x16xf32>
    %868 = arith.addf %866, %867 : vector<2x16xf32>
    %869 = math.tanh %868 : vector<2x16xf32>
    %870 = arith.mulf %865, %869 : vector<2x16xf32>
    %871 = vector.extract_strided_slice %728 {offsets = [10, 0], sizes = [2, 64], strides = [1, 1]} : vector<16x64xf32> to vector<2x64xf32>
    %cst_171 = arith.constant dense<0.000000e+00> : vector<2x64xf32>
    %872 = tpu.matmul %870, %724, %cst_171 {dimension_numbers = #tpu.dot_dimension_numbers<[1], [0], [0], [1], [0, 0, 1, 1], [], []>} : vector<2x16xf32>, vector<16x64xf32>, vector<2x64xf32> -> vector<2x64xf32>
    %873 = arith.addf %871, %872 : vector<2x64xf32>
    %874 = vector.extract_strided_slice %873 {offsets = [0, 0], sizes = [2, 16], strides = [1, 1]} : vector<2x64xf32> to vector<2x16xf32>
    %875 = arith.negf %874 : vector<2x16xf32>
    %876 = math.exp %875 : vector<2x16xf32>
    %cst_172 = arith.constant 1.000000e+00 : f32
    %877 = vector.broadcast %cst_172 : f32 to vector<2x16xf32>
    %878 = arith.addf %877, %876 : vector<2x16xf32>
    %879 = arith.divf %877, %878 : vector<2x16xf32>
    %880 = vector.extract_strided_slice %873 {offsets = [0, 16], sizes = [2, 16], strides = [1, 1]} : vector<2x64xf32> to vector<2x16xf32>
    %881 = arith.negf %880 : vector<2x16xf32>
    %882 = math.exp %881 : vector<2x16xf32>
    %cst_173 = arith.constant 1.000000e+00 : f32
    %883 = vector.broadcast %cst_173 : f32 to vector<2x16xf32>
    %884 = arith.addf %883, %882 : vector<2x16xf32>
    %885 = arith.divf %883, %884 : vector<2x16xf32>
    %886 = vector.extract_strided_slice %873 {offsets = [0, 32], sizes = [2, 16], strides = [1, 1]} : vector<2x64xf32> to vector<2x16xf32>
    %887 = math.tanh %886 : vector<2x16xf32>
    %888 = vector.extract_strided_slice %873 {offsets = [0, 48], sizes = [2, 16], strides = [1, 1]} : vector<2x64xf32> to vector<2x16xf32>
    %889 = arith.negf %888 : vector<2x16xf32>
    %890 = math.exp %889 : vector<2x16xf32>
    %cst_174 = arith.constant 1.000000e+00 : f32
    %891 = vector.broadcast %cst_174 : f32 to vector<2x16xf32>
    %892 = arith.addf %891, %890 : vector<2x16xf32>
    %893 = arith.divf %891, %892 : vector<2x16xf32>
    %894 = arith.mulf %885, %868 : vector<2x16xf32>
    %895 = arith.mulf %879, %887 : vector<2x16xf32>
    %896 = arith.addf %894, %895 : vector<2x16xf32>
    %897 = math.tanh %896 : vector<2x16xf32>
    %898 = arith.mulf %893, %897 : vector<2x16xf32>
    %899 = vector.extract_strided_slice %728 {offsets = [12, 0], sizes = [2, 64], strides = [1, 1]} : vector<16x64xf32> to vector<2x64xf32>
    %cst_175 = arith.constant dense<0.000000e+00> : vector<2x64xf32>
    %900 = tpu.matmul %898, %724, %cst_175 {dimension_numbers = #tpu.dot_dimension_numbers<[1], [0], [0], [1], [0, 0, 1, 1], [], []>} : vector<2x16xf32>, vector<16x64xf32>, vector<2x64xf32> -> vector<2x64xf32>
    %901 = arith.addf %899, %900 : vector<2x64xf32>
    %902 = vector.extract_strided_slice %901 {offsets = [0, 0], sizes = [2, 16], strides = [1, 1]} : vector<2x64xf32> to vector<2x16xf32>
    %903 = arith.negf %902 : vector<2x16xf32>
    %904 = math.exp %903 : vector<2x16xf32>
    %cst_176 = arith.constant 1.000000e+00 : f32
    %905 = vector.broadcast %cst_176 : f32 to vector<2x16xf32>
    %906 = arith.addf %905, %904 : vector<2x16xf32>
    %907 = arith.divf %905, %906 : vector<2x16xf32>
    %908 = vector.extract_strided_slice %901 {offsets = [0, 16], sizes = [2, 16], strides = [1, 1]} : vector<2x64xf32> to vector<2x16xf32>
    %909 = arith.negf %908 : vector<2x16xf32>
    %910 = math.exp %909 : vector<2x16xf32>
    %cst_177 = arith.constant 1.000000e+00 : f32
    %911 = vector.broadcast %cst_177 : f32 to vector<2x16xf32>
    %912 = arith.addf %911, %910 : vector<2x16xf32>
    %913 = arith.divf %911, %912 : vector<2x16xf32>
    %914 = vector.extract_strided_slice %901 {offsets = [0, 32], sizes = [2, 16], strides = [1, 1]} : vector<2x64xf32> to vector<2x16xf32>
    %915 = math.tanh %914 : vector<2x16xf32>
    %916 = vector.extract_strided_slice %901 {offsets = [0, 48], sizes = [2, 16], strides = [1, 1]} : vector<2x64xf32> to vector<2x16xf32>
    %917 = arith.negf %916 : vector<2x16xf32>
    %918 = math.exp %917 : vector<2x16xf32>
    %cst_178 = arith.constant 1.000000e+00 : f32
    %919 = vector.broadcast %cst_178 : f32 to vector<2x16xf32>
    %920 = arith.addf %919, %918 : vector<2x16xf32>
    %921 = arith.divf %919, %920 : vector<2x16xf32>
    %922 = arith.mulf %913, %896 : vector<2x16xf32>
    %923 = arith.mulf %907, %915 : vector<2x16xf32>
    %924 = arith.addf %922, %923 : vector<2x16xf32>
    %925 = math.tanh %924 : vector<2x16xf32>
    %926 = arith.mulf %921, %925 : vector<2x16xf32>
    %927 = vector.extract_strided_slice %728 {offsets = [14, 0], sizes = [2, 64], strides = [1, 1]} : vector<16x64xf32> to vector<2x64xf32>
    %cst_179 = arith.constant dense<0.000000e+00> : vector<2x64xf32>
    %928 = tpu.matmul %926, %724, %cst_179 {dimension_numbers = #tpu.dot_dimension_numbers<[1], [0], [0], [1], [0, 0, 1, 1], [], []>} : vector<2x16xf32>, vector<16x64xf32>, vector<2x64xf32> -> vector<2x64xf32>
    %929 = arith.addf %927, %928 : vector<2x64xf32>
    %930 = vector.extract_strided_slice %929 {offsets = [0, 0], sizes = [2, 16], strides = [1, 1]} : vector<2x64xf32> to vector<2x16xf32>
    %931 = arith.negf %930 : vector<2x16xf32>
    %932 = math.exp %931 : vector<2x16xf32>
    %cst_180 = arith.constant 1.000000e+00 : f32
    %933 = vector.broadcast %cst_180 : f32 to vector<2x16xf32>
    %934 = arith.addf %933, %932 : vector<2x16xf32>
    %935 = arith.divf %933, %934 : vector<2x16xf32>
    %936 = vector.extract_strided_slice %929 {offsets = [0, 16], sizes = [2, 16], strides = [1, 1]} : vector<2x64xf32> to vector<2x16xf32>
    %937 = arith.negf %936 : vector<2x16xf32>
    %938 = math.exp %937 : vector<2x16xf32>
    %cst_181 = arith.constant 1.000000e+00 : f32
    %939 = vector.broadcast %cst_181 : f32 to vector<2x16xf32>
    %940 = arith.addf %939, %938 : vector<2x16xf32>
    %941 = arith.divf %939, %940 : vector<2x16xf32>
    %942 = vector.extract_strided_slice %929 {offsets = [0, 32], sizes = [2, 16], strides = [1, 1]} : vector<2x64xf32> to vector<2x16xf32>
    %943 = math.tanh %942 : vector<2x16xf32>
    %944 = vector.extract_strided_slice %929 {offsets = [0, 48], sizes = [2, 16], strides = [1, 1]} : vector<2x64xf32> to vector<2x16xf32>
    %945 = arith.negf %944 : vector<2x16xf32>
    %946 = math.exp %945 : vector<2x16xf32>
    %cst_182 = arith.constant 1.000000e+00 : f32
    %947 = vector.broadcast %cst_182 : f32 to vector<2x16xf32>
    %948 = arith.addf %947, %946 : vector<2x16xf32>
    %949 = arith.divf %947, %948 : vector<2x16xf32>
    %950 = arith.mulf %941, %924 : vector<2x16xf32>
    %951 = arith.mulf %935, %943 : vector<2x16xf32>
    %952 = arith.addf %950, %951 : vector<2x16xf32>
    %953 = math.tanh %952 : vector<2x16xf32>
    %954 = arith.mulf %949, %953 : vector<2x16xf32>
    %955 = tpu.concatenate %758, %786, %814, %842, %870, %898, %926, %954 in 0 : vector<2x16xf32>, vector<2x16xf32>, vector<2x16xf32>, vector<2x16xf32>, vector<2x16xf32>, vector<2x16xf32>, vector<2x16xf32>, vector<2x16xf32> -> vector<16x16xf32>
    %cst_183 = arith.constant 0.000000e+00 : f32
    %956 = vector.broadcast %cst_183 : f32 to vector<16x16xf32>
    %957 = arith.maximumf %955, %956 : vector<16x16xf32>
    %c0_184 = arith.constant 0 : index
    %c0_185 = arith.constant 0 : index
    %958 = vector.load %arg18[%c0_184, %c0_185] : memref<16x128xf32, #tpu.memory_space<vmem>>, vector<16x128xf32>
    %c0_186 = arith.constant 0 : index
    %c0_187 = arith.constant 0 : index
    %959 = vector.load %arg19[%c0_186, %c0_187] : memref<32x128xf32, #tpu.memory_space<vmem>>, vector<32x128xf32>
    %c0_188 = arith.constant 0 : index
    %c0_189 = arith.constant 0 : index
    %960 = vector.load %arg20[%c0_188, %c0_189] : memref<1x128xf32, #tpu.memory_space<vmem>>, vector<1x128xf32>
    %cst_190 = arith.constant dense<0.000000e+00> : vector<16x128xf32>
    %961 = tpu.matmul %957, %958, %cst_190 {dimension_numbers = #tpu.dot_dimension_numbers<[1], [0], [0], [1], [0, 0, 1, 1], [], []>} : vector<16x16xf32>, vector<16x128xf32>, vector<16x128xf32> -> vector<16x128xf32>
    %962 = vector.broadcast %960 : vector<1x128xf32> to vector<16x128xf32>
    %963 = arith.addf %961, %962 : vector<16x128xf32>
    %cst_191 = arith.constant 0.000000e+00 : f32
    %964 = vector.broadcast %cst_191 : f32 to vector<2x32xf32>
    %cst_192 = arith.constant 0.000000e+00 : f32
    %965 = vector.broadcast %cst_192 : f32 to vector<2x32xf32>
    %966 = vector.extract_strided_slice %963 {offsets = [0, 0], sizes = [2, 128], strides = [1, 1]} : vector<16x128xf32> to vector<2x128xf32>
    %cst_193 = arith.constant dense<0.000000e+00> : vector<2x128xf32>
    %967 = tpu.matmul %964, %959, %cst_193 {dimension_numbers = #tpu.dot_dimension_numbers<[1], [0], [0], [1], [0, 0, 1, 1], [], []>} : vector<2x32xf32>, vector<32x128xf32>, vector<2x128xf32> -> vector<2x128xf32>
    %968 = arith.addf %966, %967 : vector<2x128xf32>
    %969 = vector.extract_strided_slice %968 {offsets = [0, 0], sizes = [2, 32], strides = [1, 1]} : vector<2x128xf32> to vector<2x32xf32>
    %970 = arith.negf %969 : vector<2x32xf32>
    %971 = math.exp %970 : vector<2x32xf32>
    %cst_194 = arith.constant 1.000000e+00 : f32
    %972 = vector.broadcast %cst_194 : f32 to vector<2x32xf32>
    %973 = arith.addf %972, %971 : vector<2x32xf32>
    %974 = arith.divf %972, %973 : vector<2x32xf32>
    %975 = vector.extract_strided_slice %968 {offsets = [0, 32], sizes = [2, 32], strides = [1, 1]} : vector<2x128xf32> to vector<2x32xf32>
    %976 = arith.negf %975 : vector<2x32xf32>
    %977 = math.exp %976 : vector<2x32xf32>
    %cst_195 = arith.constant 1.000000e+00 : f32
    %978 = vector.broadcast %cst_195 : f32 to vector<2x32xf32>
    %979 = arith.addf %978, %977 : vector<2x32xf32>
    %980 = arith.divf %978, %979 : vector<2x32xf32>
    %981 = vector.extract_strided_slice %968 {offsets = [0, 64], sizes = [2, 32], strides = [1, 1]} : vector<2x128xf32> to vector<2x32xf32>
    %982 = math.tanh %981 : vector<2x32xf32>
    %983 = vector.extract_strided_slice %968 {offsets = [0, 96], sizes = [2, 32], strides = [1, 1]} : vector<2x128xf32> to vector<2x32xf32>
    %984 = arith.negf %983 : vector<2x32xf32>
    %985 = math.exp %984 : vector<2x32xf32>
    %cst_196 = arith.constant 1.000000e+00 : f32
    %986 = vector.broadcast %cst_196 : f32 to vector<2x32xf32>
    %987 = arith.addf %986, %985 : vector<2x32xf32>
    %988 = arith.divf %986, %987 : vector<2x32xf32>
    %989 = arith.mulf %980, %965 : vector<2x32xf32>
    %990 = arith.mulf %974, %982 : vector<2x32xf32>
    %991 = arith.addf %989, %990 : vector<2x32xf32>
    %992 = math.tanh %991 : vector<2x32xf32>
    %993 = arith.mulf %988, %992 : vector<2x32xf32>
    %994 = vector.extract_strided_slice %963 {offsets = [2, 0], sizes = [2, 128], strides = [1, 1]} : vector<16x128xf32> to vector<2x128xf32>
    %cst_197 = arith.constant dense<0.000000e+00> : vector<2x128xf32>
    %995 = tpu.matmul %993, %959, %cst_197 {dimension_numbers = #tpu.dot_dimension_numbers<[1], [0], [0], [1], [0, 0, 1, 1], [], []>} : vector<2x32xf32>, vector<32x128xf32>, vector<2x128xf32> -> vector<2x128xf32>
    %996 = arith.addf %994, %995 : vector<2x128xf32>
    %997 = vector.extract_strided_slice %996 {offsets = [0, 0], sizes = [2, 32], strides = [1, 1]} : vector<2x128xf32> to vector<2x32xf32>
    %998 = arith.negf %997 : vector<2x32xf32>
    %999 = math.exp %998 : vector<2x32xf32>
    %cst_198 = arith.constant 1.000000e+00 : f32
    %1000 = vector.broadcast %cst_198 : f32 to vector<2x32xf32>
    %1001 = arith.addf %1000, %999 : vector<2x32xf32>
    %1002 = arith.divf %1000, %1001 : vector<2x32xf32>
    %1003 = vector.extract_strided_slice %996 {offsets = [0, 32], sizes = [2, 32], strides = [1, 1]} : vector<2x128xf32> to vector<2x32xf32>
    %1004 = arith.negf %1003 : vector<2x32xf32>
    %1005 = math.exp %1004 : vector<2x32xf32>
    %cst_199 = arith.constant 1.000000e+00 : f32
    %1006 = vector.broadcast %cst_199 : f32 to vector<2x32xf32>
    %1007 = arith.addf %1006, %1005 : vector<2x32xf32>
    %1008 = arith.divf %1006, %1007 : vector<2x32xf32>
    %1009 = vector.extract_strided_slice %996 {offsets = [0, 64], sizes = [2, 32], strides = [1, 1]} : vector<2x128xf32> to vector<2x32xf32>
    %1010 = math.tanh %1009 : vector<2x32xf32>
    %1011 = vector.extract_strided_slice %996 {offsets = [0, 96], sizes = [2, 32], strides = [1, 1]} : vector<2x128xf32> to vector<2x32xf32>
    %1012 = arith.negf %1011 : vector<2x32xf32>
    %1013 = math.exp %1012 : vector<2x32xf32>
    %cst_200 = arith.constant 1.000000e+00 : f32
    %1014 = vector.broadcast %cst_200 : f32 to vector<2x32xf32>
    %1015 = arith.addf %1014, %1013 : vector<2x32xf32>
    %1016 = arith.divf %1014, %1015 : vector<2x32xf32>
    %1017 = arith.mulf %1008, %991 : vector<2x32xf32>
    %1018 = arith.mulf %1002, %1010 : vector<2x32xf32>
    %1019 = arith.addf %1017, %1018 : vector<2x32xf32>
    %1020 = math.tanh %1019 : vector<2x32xf32>
    %1021 = arith.mulf %1016, %1020 : vector<2x32xf32>
    %1022 = vector.extract_strided_slice %963 {offsets = [4, 0], sizes = [2, 128], strides = [1, 1]} : vector<16x128xf32> to vector<2x128xf32>
    %cst_201 = arith.constant dense<0.000000e+00> : vector<2x128xf32>
    %1023 = tpu.matmul %1021, %959, %cst_201 {dimension_numbers = #tpu.dot_dimension_numbers<[1], [0], [0], [1], [0, 0, 1, 1], [], []>} : vector<2x32xf32>, vector<32x128xf32>, vector<2x128xf32> -> vector<2x128xf32>
    %1024 = arith.addf %1022, %1023 : vector<2x128xf32>
    %1025 = vector.extract_strided_slice %1024 {offsets = [0, 0], sizes = [2, 32], strides = [1, 1]} : vector<2x128xf32> to vector<2x32xf32>
    %1026 = arith.negf %1025 : vector<2x32xf32>
    %1027 = math.exp %1026 : vector<2x32xf32>
    %cst_202 = arith.constant 1.000000e+00 : f32
    %1028 = vector.broadcast %cst_202 : f32 to vector<2x32xf32>
    %1029 = arith.addf %1028, %1027 : vector<2x32xf32>
    %1030 = arith.divf %1028, %1029 : vector<2x32xf32>
    %1031 = vector.extract_strided_slice %1024 {offsets = [0, 32], sizes = [2, 32], strides = [1, 1]} : vector<2x128xf32> to vector<2x32xf32>
    %1032 = arith.negf %1031 : vector<2x32xf32>
    %1033 = math.exp %1032 : vector<2x32xf32>
    %cst_203 = arith.constant 1.000000e+00 : f32
    %1034 = vector.broadcast %cst_203 : f32 to vector<2x32xf32>
    %1035 = arith.addf %1034, %1033 : vector<2x32xf32>
    %1036 = arith.divf %1034, %1035 : vector<2x32xf32>
    %1037 = vector.extract_strided_slice %1024 {offsets = [0, 64], sizes = [2, 32], strides = [1, 1]} : vector<2x128xf32> to vector<2x32xf32>
    %1038 = math.tanh %1037 : vector<2x32xf32>
    %1039 = vector.extract_strided_slice %1024 {offsets = [0, 96], sizes = [2, 32], strides = [1, 1]} : vector<2x128xf32> to vector<2x32xf32>
    %1040 = arith.negf %1039 : vector<2x32xf32>
    %1041 = math.exp %1040 : vector<2x32xf32>
    %cst_204 = arith.constant 1.000000e+00 : f32
    %1042 = vector.broadcast %cst_204 : f32 to vector<2x32xf32>
    %1043 = arith.addf %1042, %1041 : vector<2x32xf32>
    %1044 = arith.divf %1042, %1043 : vector<2x32xf32>
    %1045 = arith.mulf %1036, %1019 : vector<2x32xf32>
    %1046 = arith.mulf %1030, %1038 : vector<2x32xf32>
    %1047 = arith.addf %1045, %1046 : vector<2x32xf32>
    %1048 = math.tanh %1047 : vector<2x32xf32>
    %1049 = arith.mulf %1044, %1048 : vector<2x32xf32>
    %1050 = vector.extract_strided_slice %963 {offsets = [6, 0], sizes = [2, 128], strides = [1, 1]} : vector<16x128xf32> to vector<2x128xf32>
    %cst_205 = arith.constant dense<0.000000e+00> : vector<2x128xf32>
    %1051 = tpu.matmul %1049, %959, %cst_205 {dimension_numbers = #tpu.dot_dimension_numbers<[1], [0], [0], [1], [0, 0, 1, 1], [], []>} : vector<2x32xf32>, vector<32x128xf32>, vector<2x128xf32> -> vector<2x128xf32>
    %1052 = arith.addf %1050, %1051 : vector<2x128xf32>
    %1053 = vector.extract_strided_slice %1052 {offsets = [0, 0], sizes = [2, 32], strides = [1, 1]} : vector<2x128xf32> to vector<2x32xf32>
    %1054 = arith.negf %1053 : vector<2x32xf32>
    %1055 = math.exp %1054 : vector<2x32xf32>
    %cst_206 = arith.constant 1.000000e+00 : f32
    %1056 = vector.broadcast %cst_206 : f32 to vector<2x32xf32>
    %1057 = arith.addf %1056, %1055 : vector<2x32xf32>
    %1058 = arith.divf %1056, %1057 : vector<2x32xf32>
    %1059 = vector.extract_strided_slice %1052 {offsets = [0, 32], sizes = [2, 32], strides = [1, 1]} : vector<2x128xf32> to vector<2x32xf32>
    %1060 = arith.negf %1059 : vector<2x32xf32>
    %1061 = math.exp %1060 : vector<2x32xf32>
    %cst_207 = arith.constant 1.000000e+00 : f32
    %1062 = vector.broadcast %cst_207 : f32 to vector<2x32xf32>
    %1063 = arith.addf %1062, %1061 : vector<2x32xf32>
    %1064 = arith.divf %1062, %1063 : vector<2x32xf32>
    %1065 = vector.extract_strided_slice %1052 {offsets = [0, 64], sizes = [2, 32], strides = [1, 1]} : vector<2x128xf32> to vector<2x32xf32>
    %1066 = math.tanh %1065 : vector<2x32xf32>
    %1067 = vector.extract_strided_slice %1052 {offsets = [0, 96], sizes = [2, 32], strides = [1, 1]} : vector<2x128xf32> to vector<2x32xf32>
    %1068 = arith.negf %1067 : vector<2x32xf32>
    %1069 = math.exp %1068 : vector<2x32xf32>
    %cst_208 = arith.constant 1.000000e+00 : f32
    %1070 = vector.broadcast %cst_208 : f32 to vector<2x32xf32>
    %1071 = arith.addf %1070, %1069 : vector<2x32xf32>
    %1072 = arith.divf %1070, %1071 : vector<2x32xf32>
    %1073 = arith.mulf %1064, %1047 : vector<2x32xf32>
    %1074 = arith.mulf %1058, %1066 : vector<2x32xf32>
    %1075 = arith.addf %1073, %1074 : vector<2x32xf32>
    %1076 = math.tanh %1075 : vector<2x32xf32>
    %1077 = arith.mulf %1072, %1076 : vector<2x32xf32>
    %1078 = vector.extract_strided_slice %963 {offsets = [8, 0], sizes = [2, 128], strides = [1, 1]} : vector<16x128xf32> to vector<2x128xf32>
    %cst_209 = arith.constant dense<0.000000e+00> : vector<2x128xf32>
    %1079 = tpu.matmul %1077, %959, %cst_209 {dimension_numbers = #tpu.dot_dimension_numbers<[1], [0], [0], [1], [0, 0, 1, 1], [], []>} : vector<2x32xf32>, vector<32x128xf32>, vector<2x128xf32> -> vector<2x128xf32>
    %1080 = arith.addf %1078, %1079 : vector<2x128xf32>
    %1081 = vector.extract_strided_slice %1080 {offsets = [0, 0], sizes = [2, 32], strides = [1, 1]} : vector<2x128xf32> to vector<2x32xf32>
    %1082 = arith.negf %1081 : vector<2x32xf32>
    %1083 = math.exp %1082 : vector<2x32xf32>
    %cst_210 = arith.constant 1.000000e+00 : f32
    %1084 = vector.broadcast %cst_210 : f32 to vector<2x32xf32>
    %1085 = arith.addf %1084, %1083 : vector<2x32xf32>
    %1086 = arith.divf %1084, %1085 : vector<2x32xf32>
    %1087 = vector.extract_strided_slice %1080 {offsets = [0, 32], sizes = [2, 32], strides = [1, 1]} : vector<2x128xf32> to vector<2x32xf32>
    %1088 = arith.negf %1087 : vector<2x32xf32>
    %1089 = math.exp %1088 : vector<2x32xf32>
    %cst_211 = arith.constant 1.000000e+00 : f32
    %1090 = vector.broadcast %cst_211 : f32 to vector<2x32xf32>
    %1091 = arith.addf %1090, %1089 : vector<2x32xf32>
    %1092 = arith.divf %1090, %1091 : vector<2x32xf32>
    %1093 = vector.extract_strided_slice %1080 {offsets = [0, 64], sizes = [2, 32], strides = [1, 1]} : vector<2x128xf32> to vector<2x32xf32>
    %1094 = math.tanh %1093 : vector<2x32xf32>
    %1095 = vector.extract_strided_slice %1080 {offsets = [0, 96], sizes = [2, 32], strides = [1, 1]} : vector<2x128xf32> to vector<2x32xf32>
    %1096 = arith.negf %1095 : vector<2x32xf32>
    %1097 = math.exp %1096 : vector<2x32xf32>
    %cst_212 = arith.constant 1.000000e+00 : f32
    %1098 = vector.broadcast %cst_212 : f32 to vector<2x32xf32>
    %1099 = arith.addf %1098, %1097 : vector<2x32xf32>
    %1100 = arith.divf %1098, %1099 : vector<2x32xf32>
    %1101 = arith.mulf %1092, %1075 : vector<2x32xf32>
    %1102 = arith.mulf %1086, %1094 : vector<2x32xf32>
    %1103 = arith.addf %1101, %1102 : vector<2x32xf32>
    %1104 = math.tanh %1103 : vector<2x32xf32>
    %1105 = arith.mulf %1100, %1104 : vector<2x32xf32>
    %1106 = vector.extract_strided_slice %963 {offsets = [10, 0], sizes = [2, 128], strides = [1, 1]} : vector<16x128xf32> to vector<2x128xf32>
    %cst_213 = arith.constant dense<0.000000e+00> : vector<2x128xf32>
    %1107 = tpu.matmul %1105, %959, %cst_213 {dimension_numbers = #tpu.dot_dimension_numbers<[1], [0], [0], [1], [0, 0, 1, 1], [], []>} : vector<2x32xf32>, vector<32x128xf32>, vector<2x128xf32> -> vector<2x128xf32>
    %1108 = arith.addf %1106, %1107 : vector<2x128xf32>
    %1109 = vector.extract_strided_slice %1108 {offsets = [0, 0], sizes = [2, 32], strides = [1, 1]} : vector<2x128xf32> to vector<2x32xf32>
    %1110 = arith.negf %1109 : vector<2x32xf32>
    %1111 = math.exp %1110 : vector<2x32xf32>
    %cst_214 = arith.constant 1.000000e+00 : f32
    %1112 = vector.broadcast %cst_214 : f32 to vector<2x32xf32>
    %1113 = arith.addf %1112, %1111 : vector<2x32xf32>
    %1114 = arith.divf %1112, %1113 : vector<2x32xf32>
    %1115 = vector.extract_strided_slice %1108 {offsets = [0, 32], sizes = [2, 32], strides = [1, 1]} : vector<2x128xf32> to vector<2x32xf32>
    %1116 = arith.negf %1115 : vector<2x32xf32>
    %1117 = math.exp %1116 : vector<2x32xf32>
    %cst_215 = arith.constant 1.000000e+00 : f32
    %1118 = vector.broadcast %cst_215 : f32 to vector<2x32xf32>
    %1119 = arith.addf %1118, %1117 : vector<2x32xf32>
    %1120 = arith.divf %1118, %1119 : vector<2x32xf32>
    %1121 = vector.extract_strided_slice %1108 {offsets = [0, 64], sizes = [2, 32], strides = [1, 1]} : vector<2x128xf32> to vector<2x32xf32>
    %1122 = math.tanh %1121 : vector<2x32xf32>
    %1123 = vector.extract_strided_slice %1108 {offsets = [0, 96], sizes = [2, 32], strides = [1, 1]} : vector<2x128xf32> to vector<2x32xf32>
    %1124 = arith.negf %1123 : vector<2x32xf32>
    %1125 = math.exp %1124 : vector<2x32xf32>
    %cst_216 = arith.constant 1.000000e+00 : f32
    %1126 = vector.broadcast %cst_216 : f32 to vector<2x32xf32>
    %1127 = arith.addf %1126, %1125 : vector<2x32xf32>
    %1128 = arith.divf %1126, %1127 : vector<2x32xf32>
    %1129 = arith.mulf %1120, %1103 : vector<2x32xf32>
    %1130 = arith.mulf %1114, %1122 : vector<2x32xf32>
    %1131 = arith.addf %1129, %1130 : vector<2x32xf32>
    %1132 = math.tanh %1131 : vector<2x32xf32>
    %1133 = arith.mulf %1128, %1132 : vector<2x32xf32>
    %1134 = vector.extract_strided_slice %963 {offsets = [12, 0], sizes = [2, 128], strides = [1, 1]} : vector<16x128xf32> to vector<2x128xf32>
    %cst_217 = arith.constant dense<0.000000e+00> : vector<2x128xf32>
    %1135 = tpu.matmul %1133, %959, %cst_217 {dimension_numbers = #tpu.dot_dimension_numbers<[1], [0], [0], [1], [0, 0, 1, 1], [], []>} : vector<2x32xf32>, vector<32x128xf32>, vector<2x128xf32> -> vector<2x128xf32>
    %1136 = arith.addf %1134, %1135 : vector<2x128xf32>
    %1137 = vector.extract_strided_slice %1136 {offsets = [0, 0], sizes = [2, 32], strides = [1, 1]} : vector<2x128xf32> to vector<2x32xf32>
    %1138 = arith.negf %1137 : vector<2x32xf32>
    %1139 = math.exp %1138 : vector<2x32xf32>
    %cst_218 = arith.constant 1.000000e+00 : f32
    %1140 = vector.broadcast %cst_218 : f32 to vector<2x32xf32>
    %1141 = arith.addf %1140, %1139 : vector<2x32xf32>
    %1142 = arith.divf %1140, %1141 : vector<2x32xf32>
    %1143 = vector.extract_strided_slice %1136 {offsets = [0, 32], sizes = [2, 32], strides = [1, 1]} : vector<2x128xf32> to vector<2x32xf32>
    %1144 = arith.negf %1143 : vector<2x32xf32>
    %1145 = math.exp %1144 : vector<2x32xf32>
    %cst_219 = arith.constant 1.000000e+00 : f32
    %1146 = vector.broadcast %cst_219 : f32 to vector<2x32xf32>
    %1147 = arith.addf %1146, %1145 : vector<2x32xf32>
    %1148 = arith.divf %1146, %1147 : vector<2x32xf32>
    %1149 = vector.extract_strided_slice %1136 {offsets = [0, 64], sizes = [2, 32], strides = [1, 1]} : vector<2x128xf32> to vector<2x32xf32>
    %1150 = math.tanh %1149 : vector<2x32xf32>
    %1151 = vector.extract_strided_slice %1136 {offsets = [0, 96], sizes = [2, 32], strides = [1, 1]} : vector<2x128xf32> to vector<2x32xf32>
    %1152 = arith.negf %1151 : vector<2x32xf32>
    %1153 = math.exp %1152 : vector<2x32xf32>
    %cst_220 = arith.constant 1.000000e+00 : f32
    %1154 = vector.broadcast %cst_220 : f32 to vector<2x32xf32>
    %1155 = arith.addf %1154, %1153 : vector<2x32xf32>
    %1156 = arith.divf %1154, %1155 : vector<2x32xf32>
    %1157 = arith.mulf %1148, %1131 : vector<2x32xf32>
    %1158 = arith.mulf %1142, %1150 : vector<2x32xf32>
    %1159 = arith.addf %1157, %1158 : vector<2x32xf32>
    %1160 = math.tanh %1159 : vector<2x32xf32>
    %1161 = arith.mulf %1156, %1160 : vector<2x32xf32>
    %1162 = vector.extract_strided_slice %963 {offsets = [14, 0], sizes = [2, 128], strides = [1, 1]} : vector<16x128xf32> to vector<2x128xf32>
    %cst_221 = arith.constant dense<0.000000e+00> : vector<2x128xf32>
    %1163 = tpu.matmul %1161, %959, %cst_221 {dimension_numbers = #tpu.dot_dimension_numbers<[1], [0], [0], [1], [0, 0, 1, 1], [], []>} : vector<2x32xf32>, vector<32x128xf32>, vector<2x128xf32> -> vector<2x128xf32>
    %1164 = arith.addf %1162, %1163 : vector<2x128xf32>
    %1165 = vector.extract_strided_slice %1164 {offsets = [0, 0], sizes = [2, 32], strides = [1, 1]} : vector<2x128xf32> to vector<2x32xf32>
    %1166 = arith.negf %1165 : vector<2x32xf32>
    %1167 = math.exp %1166 : vector<2x32xf32>
    %cst_222 = arith.constant 1.000000e+00 : f32
    %1168 = vector.broadcast %cst_222 : f32 to vector<2x32xf32>
    %1169 = arith.addf %1168, %1167 : vector<2x32xf32>
    %1170 = arith.divf %1168, %1169 : vector<2x32xf32>
    %1171 = vector.extract_strided_slice %1164 {offsets = [0, 32], sizes = [2, 32], strides = [1, 1]} : vector<2x128xf32> to vector<2x32xf32>
    %1172 = arith.negf %1171 : vector<2x32xf32>
    %1173 = math.exp %1172 : vector<2x32xf32>
    %cst_223 = arith.constant 1.000000e+00 : f32
    %1174 = vector.broadcast %cst_223 : f32 to vector<2x32xf32>
    %1175 = arith.addf %1174, %1173 : vector<2x32xf32>
    %1176 = arith.divf %1174, %1175 : vector<2x32xf32>
    %1177 = vector.extract_strided_slice %1164 {offsets = [0, 64], sizes = [2, 32], strides = [1, 1]} : vector<2x128xf32> to vector<2x32xf32>
    %1178 = math.tanh %1177 : vector<2x32xf32>
    %1179 = vector.extract_strided_slice %1164 {offsets = [0, 96], sizes = [2, 32], strides = [1, 1]} : vector<2x128xf32> to vector<2x32xf32>
    %1180 = arith.negf %1179 : vector<2x32xf32>
    %1181 = math.exp %1180 : vector<2x32xf32>
    %cst_224 = arith.constant 1.000000e+00 : f32
    %1182 = vector.broadcast %cst_224 : f32 to vector<2x32xf32>
    %1183 = arith.addf %1182, %1181 : vector<2x32xf32>
    %1184 = arith.divf %1182, %1183 : vector<2x32xf32>
    %1185 = arith.mulf %1176, %1159 : vector<2x32xf32>
    %1186 = arith.mulf %1170, %1178 : vector<2x32xf32>
    %1187 = arith.addf %1185, %1186 : vector<2x32xf32>
    %1188 = math.tanh %1187 : vector<2x32xf32>
    %1189 = arith.mulf %1184, %1188 : vector<2x32xf32>
    %1190 = tpu.concatenate %993, %1021, %1049, %1077, %1105, %1133, %1161, %1189 in 0 : vector<2x32xf32>, vector<2x32xf32>, vector<2x32xf32>, vector<2x32xf32>, vector<2x32xf32>, vector<2x32xf32>, vector<2x32xf32>, vector<2x32xf32> -> vector<16x32xf32>
    %cst_225 = arith.constant 0.000000e+00 : f32
    %1191 = vector.broadcast %cst_225 : f32 to vector<16x32xf32>
    %1192 = arith.maximumf %1190, %1191 : vector<16x32xf32>
    %c0_226 = arith.constant 0 : index
    %c0_227 = arith.constant 0 : index
    %1193 = vector.load %arg21[%c0_226, %c0_227] : memref<32x4xf32, #tpu.memory_space<vmem>>, vector<32x4xf32>
    %cst_228 = arith.constant dense<0.000000e+00> : vector<16x4xf32>
    %1194 = tpu.matmul %1192, %1193, %cst_228 {dimension_numbers = #tpu.dot_dimension_numbers<[1], [0], [0], [1], [0, 0, 1, 1], [], []>} : vector<16x32xf32>, vector<32x4xf32>, vector<16x4xf32> -> vector<16x4xf32>
    %c0_229 = arith.constant 0 : index
    %c0_230 = arith.constant 0 : index
    %1195 = vector.load %arg22[%c0_229, %c0_230] : memref<1x4xf32, #tpu.memory_space<vmem>>, vector<1x4xf32>
    %1196 = vector.broadcast %1195 : vector<1x4xf32> to vector<16x4xf32>
    %1197 = arith.addf %1194, %1196 : vector<16x4xf32>
    %c0_231 = arith.constant 0 : index
    %c0_232 = arith.constant 0 : index
    %1198 = vector.load %arg23[%c0_231, %c0_232] : memref<16x4xf32, #tpu.memory_space<vmem>>, vector<16x4xf32>
    tpu.vector_store %arg23[%c0_231, %c0_232], %1197 {strides = array<i32>} : memref<16x4xf32, #tpu.memory_space<vmem>>, vector<16x4xf32>,
    return
  }
}

</mosaic_0001>

<bundles_post_ra>
// kernel: tpu_custom_call.1
= control target key start
LH: loop header
LB: loop body
LE: loop exit
PB: predicated region body
PF: predicated region fallthrough
CT: control target
= control target key end

     0   :  { %s7697_s0 = inlined_call_operand.vmem [shape: f32[16,4], index: 0, kind: input, shape index: {}]   ;;  %s7698_s1 = inlined_call_operand.vmem [shape: f32[16,8], index: 1, kind: input, shape index: {}]   ;;  %s7699_s2 = inlined_call_operand.hbm [shape: f32[4,128], index: 2, kind: input, shape index: {}]   ;;  %s7700_s3 = inlined_call_operand.vmem [shape: f32[32,128], index: 3, kind: input, shape index: {}]   ;;  %s7701_s4 = inlined_call_operand.hbm [shape: f32[1,128], index: 4, kind: input, shape index: {}]   ;;  %s7702_s5 = inlined_call_operand.vmem [shape: f32[32,64], index: 5, kind: input, shape index: {}]   ;;  %s7703_s6 = inlined_call_operand.hbm [shape: f32[16,64], index: 6, kind: input, shape index: {}]   ;;  %s7704_s7 = inlined_call_operand.hbm [shape: f32[1,64], index: 7, kind: input, shape index: {}]   ;;  %s7705_s8 = inlined_call_operand.hbm [shape: f32[16,32], index: 8, kind: input, shape index: {}]   ;;  %s7706_s9 = inlined_call_operand.hbm [shape: f32[8,32], index: 9, kind: input, shape index: {}]   ;;  %s7707_s10 = inlined_call_operand.hbm [shape: f32[1,32], index: 10, kind: input, shape index: {}]   ;;  %s7708_s11 = inlined_call_operand.hbm [shape: f32[8,8], index: 11, kind: input, shape index: {}]   ;;  %s7709_s12 = inlined_call_operand.hbm [shape: f32[1,8], index: 12, kind: input, shape index: {}]   ;;  %s7710_s13 = inlined_call_operand.hbm [shape: f32[8,8], index: 13, kind: input, shape index: {}]   ;;  %s7711_s14 = inlined_call_operand.hbm [shape: f32[1,8], index: 14, kind: input, shape index: {}]   ;;  %s7712_s15 = inlined_call_operand.vmem [shape: f32[8,64], index: 15, kind: input, shape index: {}]   ;;  %s7713_s16 = inlined_call_operand.vmem [shape: f32[16,64], index: 16, kind: input, shape index: {}]   ;;  %s7714_s17 = inlined_call_operand.vmem [shape: f32[1,64], index: 17, kind: input, shape index: {}]   ;;  %s7715_s18 = inlined_call_operand.vmem [shape: f32[16,128], index: 18, kind: input, shape index: {}]   ;;  %s7716_s19 = inlined_call_operand.vmem [shape: f32[32,128], index: 19, kind: input, shape index: {}]   ;;  %s7717_s20 = inlined_call_operand.vmem [shape: f32[1,128], index: 20, kind: input, shape index: {}]   ;;  %s7718_s21 = inlined_call_operand.vmem [shape: f32[32,4], index: 21, kind: input, shape index: {}]   ;;  %s7719_s22 = inlined_call_operand.vmem [shape: f32[1,4], index: 22, kind: input, shape index: {}]   ;;  %s7720_s23 = inlined_call_operand.vmem [shape: f32[16,4], index: 23, kind: output, shape index: {0}]   ;;  %s7721_s24 = inlined_call_operand.hbm [shape: f32[2,8], index: 24, kind: output, shape index: {1}]   ;;  %s7722_s25 = inlined_call_operand.hbm [shape: f32[2,8], index: 25, kind: output, shape index: {2}]  }
   0x1   :  { %7734 = sst [smem:[#allocation31_spill]] %s7697_s0 }
   0x2   :  { %7735 = sst [smem:[#allocation32_spill]] %s7698_s1 }
   0x3   :  { %7736 = sst [smem:[#allocation33_spill]] %s7699_s2 }
   0x4   :  { %7737 = sst [smem:[#allocation34_spill]] %s7700_s3 }
   0x5   :  { %7738 = sst [smem:[#allocation35_spill]] %s7701_s4 }
   0x6   :  { %7739 = sst [smem:[#allocation36_spill]] %s7702_s5 }
   0x7   :  { %7740 = sst [smem:[#allocation37_spill]] %s7703_s6 }
   0x8   :  { %7741 = sst [smem:[#allocation38_spill]] %s7704_s7 }
   0x9   :  { %7742 = sst [smem:[#allocation39_spill]] %s7705_s8 }
   0xa   :  { %7743 = sst [smem:[#allocation40_spill]] %s7706_s9 }
   0xb   :  { %7744 = sst [smem:[#allocation41_spill]] %s7720_s23 }
   0xc   :  { %31 = vsyncpa [#allocation3], 0 }
   0xd   :  { %32 = vsyncpa [#allocation6], 0 }
   0xe   :  { %33 = vsyncpa [#allocation9], 0 }
   0xf   :  { %34 = vsyncpa [#allocation12], 0 }
  0x10   :  { %35 = vsyncpa [#allocation15], 0 }
  0x11   :  { %36 = vsyncpa [#allocation18], 0 }
  0x12   :  { %37 = vsyncpa [#allocation4], 0 }
  0x13   :  { %38 = vsyncpa [#allocation22], 0  ;;  %s6734_s29 = smov [#allocation5]   ;;  %s6735_s6 = smov [#allocation8]  }
  0x14   :  { %s61_s2 = sshll.u32 %s6734_s29, 4  ;;  %s85_s30 = sshll.u32 %s6735_s6, 4  ;;  %s62_s2 = int_to_ptr.vmem [resolvable:$true] %s61_s2  ;;  %s86_s30 = int_to_ptr.vmem [resolvable:$true] %s85_s30 }
  0x15   :  { %s7745_s26 = sld [smem:[#allocation35_spill]] }
  0x1b   :  { %s6432_s1 = scalar_lea.hbm %s7745_s26, 16 }
  0x1c   :  { %p6433_p0 = scmp.ne.s32.totalorder %s7745_s26, %s6432_s1  ;;  %p6436_p1 = scmp.lt.u32.totalorder %s6432_s1, %s7745_s26 }
  0x1e   :  { %p6438_p2 = pnand %p6436_p1, %p6433_p0 }
  0x20   :  { %6441 = shalt.err (!%p6438_p2)
}
  0x21   :  { %s6442_s9 = scalar_lea.vmem %s62_s2, 16  ;;  %s6446_s5 = scalar_lea.vmem %s62_s2, 32 }
  0x22   :  { %p6443_p3 = scmp.ne.s32.totalorder %s62_s2, %s6442_s9  ;;  %p6447_p4 = scmp.lt.s32.totalorder %s62_s2, %s62_s2 }
  0x23   :  { %p6448_p5 = scmp.lt.s32.totalorder %s6446_s5, %s6442_s9 }
  0x25   :  { %p6449_p6 = por %p6448_p5, %p6447_p4 }
  0x27   :  { %p6450_p7 = pnand %p6449_p6, %p6443_p3 }
  0x29   :  { %6453 = shalt.err (!%p6450_p7)
}
  0x2a   :  { %64 = dma.hbm_to_vmem [thread:$0]  %s7745_s26, 16, %s62_s2, [#allocation6]  }
  0x2b   :  { %s7746_s3 = sld [smem:[#allocation38_spill]] }
  0x31   :  { %s6454_s8 = scalar_lea.hbm %s7746_s3, 16 }
  0x32   :  { %p6455_p8 = scmp.ne.s32.totalorder %s7746_s3, %s6454_s8  ;;  %p6458_p9 = scmp.lt.u32.totalorder %s6454_s8, %s7746_s3 }
  0x34   :  { %p6460_p10 = pnand %p6458_p9, %p6455_p8 }
  0x36   :  { %6463 = shalt.err (!%p6460_p10)
}
  0x37   :  { %s6464_s9 = scalar_lea.vmem %s86_s30, 16  ;;  %s6468_s5 = scalar_lea.vmem %s86_s30, 32 }
  0x38   :  { %p6465_p11 = scmp.ne.s32.totalorder %s86_s30, %s6464_s9  ;;  %p6469_p12 = scmp.lt.s32.totalorder %s86_s30, %s86_s30 }
  0x39   :  { %p6470_p13 = scmp.lt.s32.totalorder %s6468_s5, %s6464_s9 }
  0x3b   :  { %p6471_p0 = por %p6470_p13, %p6469_p12 }
  0x3d   :  { %p6472_p1 = pnand %p6471_p0, %p6465_p11 }
  0x3f   :  { %6475 = shalt.err (!%p6472_p1)
}
  0x40   :  { %88 = dma.hbm_to_vmem [thread:$0]  %s7746_s3, 16, %s86_s30, [#allocation9]  }
  0x41   :  { %s6736_s0 = smov [#allocation11]   ;;  %s6737_s6 = smov [#allocation14]  }
  0x42   :  { %s107_s29 = sshll.u32 %s6736_s0, 4  ;;  %s127_s7 = sshll.u32 %s6737_s6, 4  ;;  %s108_s29 = int_to_ptr.vmem [resolvable:$true] %s107_s29  ;;  %s128_s7 = int_to_ptr.vmem [resolvable:$true] %s127_s7 }
  0x43   :  { %s7747_s1 = sld [smem:[#allocation40_spill]] }
  0x49   :  { %s6476_s4 = scalar_lea.hbm %s7747_s1, 128 }
  0x4a   :  { %p6477_p2 = scmp.ne.s32.totalorder %s7747_s1, %s6476_s4  ;;  %p6480_p3 = scmp.lt.u32.totalorder %s6476_s4, %s7747_s1 }
  0x4c   :  { %p6482_p4 = pnand %p6480_p3, %p6477_p2 }
  0x4e   :  { %6485 = shalt.err (!%p6482_p4)
}
  0x4f   :  { %s6486_s30 = scalar_lea.vmem %s108_s29, 128  ;;  %p6491_p6 = scmp.lt.s32.totalorder %s108_s29, %s108_s29 }
  0x50   :  { %p6487_p5 = scmp.ne.s32.totalorder %s108_s29, %s6486_s30  ;;  %p6492_p7 = scmp.lt.s32.totalorder %s6486_s30, %s6486_s30 }
  0x52   :  { %p6493_p8 = por %p6492_p7, %p6491_p6 }
  0x54   :  { %p6494_p9 = pnand %p6493_p8, %p6487_p5 }
  0x56   :  { %6497 = shalt.err (!%p6494_p9)
}
  0x57   :  { %110 = dma.hbm_to_vmem [thread:$0]  %s7747_s1, 128, %s108_s29, [#allocation12]  }
  0x58   :  { %s6498_s0 = scalar_lea.hbm %s7708_s11, 128 }
  0x59   :  { %p6499_p10 = scmp.ne.s32.totalorder %s7708_s11, %s6498_s0  ;;  %p6502_p11 = scmp.lt.u32.totalorder %s6498_s0, %s7708_s11 }
  0x5b   :  { %p6504_p12 = pnand %p6502_p11, %p6499_p10 }
  0x5d   :  { %6507 = shalt.err (!%p6504_p12)
}
  0x5e   :  { %s6508_s28 = scalar_lea.vmem %s128_s7, 128  ;;  %p6513_p0 = scmp.lt.s32.totalorder %s128_s7, %s128_s7 }
  0x5f   :  { %p6509_p13 = scmp.ne.s32.totalorder %s128_s7, %s6508_s28  ;;  %p6514_p1 = scmp.lt.s32.totalorder %s6508_s28, %s6508_s28 }
  0x61   :  { %p6515_p2 = por %p6514_p1, %p6513_p0 }
  0x63   :  { %p6516_p3 = pnand %p6515_p2, %p6509_p13 }
  0x65   :  { %6519 = shalt.err (!%p6516_p3)
}
  0x66   :  { %130 = dma.hbm_to_vmem [thread:$0]  %s7708_s11, 128, %s128_s7, [#allocation15]  }
  0x67   :  { %s6738_s9 = smov [#allocation17]   ;;  %s6739_s30 = smov [#allocation2]  }
  0x68   :  { %s147_s5 = sshll.u32 %s6738_s9, 4  ;;  %s49_s3 = sshll.u32 %s6739_s30, 4  ;;  %s148_s5 = int_to_ptr.vmem [resolvable:$true] %s147_s5  ;;  %s50_s3 = int_to_ptr.vmem [resolvable:$true] %s49_s3 }
  0x69   :  { %s6520_s23 = scalar_lea.hbm %s7710_s13, 128 }
  0x6a   :  { %p6521_p4 = scmp.ne.s32.totalorder %s7710_s13, %s6520_s23  ;;  %p6524_p5 = scmp.lt.u32.totalorder %s6520_s23, %s7710_s13 }
  0x6c   :  { %p6526_p6 = pnand %p6524_p5, %p6521_p4 }
  0x6e   :  { %6529 = shalt.err (!%p6526_p6)
}
  0x6f   :  { %s6530_s11 = scalar_lea.vmem %s148_s5, 128  ;;  %p6535_p8 = scmp.lt.s32.totalorder %s148_s5, %s148_s5 }
  0x70   :  { %p6531_p7 = scmp.ne.s32.totalorder %s148_s5, %s6530_s11  ;;  %p6536_p9 = scmp.lt.s32.totalorder %s6530_s11, %s6530_s11 }
  0x72   :  { %p6537_p10 = por %p6536_p9, %p6535_p8 }
  0x74   :  { %p6538_p11 = pnand %p6537_p10, %p6531_p7 }
  0x76   :  { %6541 = shalt.err (!%p6538_p11)
}
  0x77   :  { %150 = dma.hbm_to_vmem [thread:$0]  %s7710_s13, 128, %s148_s5, [#allocation18]  }
  0x78   :  { %s7748_s1 = sld [smem:[#allocation33_spill]] }
  0x7e   :  { %s6542_s9 = scalar_lea.hbm %s7748_s1, 64 }
  0x7f   :  { %p6543_p12 = scmp.ne.s32.totalorder %s7748_s1, %s6542_s9  ;;  %p6546_p13 = scmp.lt.u32.totalorder %s6542_s9, %s7748_s1 }
  0x81   :  { %p6548_p0 = pnand %p6546_p13, %p6543_p12 }
  0x83   :  { %6551 = shalt.err (!%p6548_p0)
}
  0x84   :  { %s6552_s0 = scalar_lea.vmem %s50_s3, 64  ;;  %p6557_p2 = scmp.lt.s32.totalorder %s50_s3, %s50_s3 }
  0x85   :  { %p6553_p1 = scmp.ne.s32.totalorder %s50_s3, %s6552_s0  ;;  %p6558_p3 = scmp.lt.s32.totalorder %s6552_s0, %s6552_s0 }
  0x87   :  { %p6559_p4 = por %p6558_p3, %p6557_p2 }
  0x89   :  { %p6560_p5 = pnand %p6559_p4, %p6553_p1 }
  0x8b   :  { %6563 = shalt.err (!%p6560_p5)
}
  0x8c   :  { %52 = dma.hbm_to_vmem [thread:$0]  %s7748_s1, 64, %s50_s3, [#allocation3]  }
  0x8d   :  { %s6740_s6 = smov [#allocation7]   ;;  %s7749_s7 = sld [smem:[#allocation37_spill]] }
  0x8e   :  { %s72_s8 = sshll.u32 %s6740_s6, 4  ;;  %s73_s8 = int_to_ptr.vmem [resolvable:$true] %s72_s8 }
  0x93   :  { %s6564_s4 = scalar_lea.hbm %s7749_s7, 256 }
  0x94   :  { %p6565_p6 = scmp.ne.s32.totalorder %s7749_s7, %s6564_s4  ;;  %p6568_p7 = scmp.lt.u32.totalorder %s6564_s4, %s7749_s7 }
  0x96   :  { %p6570_p8 = pnand %p6568_p7, %p6565_p6 }
  0x98   :  { %6573 = shalt.err (!%p6570_p8)
}
  0x99   :  { %s6574_s2 = scalar_lea.vmem %s73_s8, 256  ;;  %p6579_p10 = scmp.lt.s32.totalorder %s73_s8, %s73_s8 }
  0x9a   :  { %p6575_p9 = scmp.ne.s32.totalorder %s73_s8, %s6574_s2  ;;  %p6580_p11 = scmp.lt.s32.totalorder %s6574_s2, %s6574_s2 }
  0x9c   :  { %p6581_p12 = por %p6580_p11, %p6579_p10 }
  0x9e   :  { %p6582_p13 = pnand %p6581_p12, %p6575_p9 }
  0xa0   :  { %6585 = shalt.err (!%p6582_p13)
}
  0xa1   :  { %s6741_s3 = smov 128   ;;  %s6742_s1 = smov 8  }
  0xa2   :  { %78 = dma.hbm_to_vmem [thread:$0]  %s7749_s7, 256, %s73_s8, [#allocation6], %s6741_s3, %s6741_s3, %s6742_s1  }
  0xa3   :  { %s6743_s0 = smov [#allocation10]   ;;  %s6744_s5 = smov [#allocation13]  }
  0xa4   :  { %s94_s13 = sshll.u32 %s6743_s0, 4  ;;  %s117_s6 = sshll.u32 %s6744_s5, 4  ;;  %s95_s13 = int_to_ptr.vmem [resolvable:$true] %s94_s13  ;;  %s118_s6 = int_to_ptr.vmem [resolvable:$true] %s117_s6 }
  0xa5   :  { %s7750_s4 = sld [smem:[#allocation39_spill]] }
  0xab   :  { %s6586_s28 = scalar_lea.hbm %s7750_s4, 256 }
  0xac   :  { %p6587_p0 = scmp.ne.s32.totalorder %s7750_s4, %s6586_s28  ;;  %p6590_p1 = scmp.lt.u32.totalorder %s6586_s28, %s7750_s4 }
  0xae   :  { %p6592_p2 = pnand %p6590_p1, %p6587_p0 }
  0xb0   :  { %6595 = shalt.err (!%p6592_p2)
}
  0xb1   :  { %s6596_s8 = scalar_lea.vmem %s95_s13, 256  ;;  %p6601_p4 = scmp.lt.s32.totalorder %s95_s13, %s95_s13 }
  0xb2   :  { %p6597_p3 = scmp.ne.s32.totalorder %s95_s13, %s6596_s8  ;;  %p6602_p5 = scmp.lt.s32.totalorder %s6596_s8, %s6596_s8 }
  0xb4   :  { %p6603_p6 = por %p6602_p5, %p6601_p4 }
  0xb6   :  { %p6604_p7 = pnand %p6603_p6, %p6597_p3 }
  0xb8   :  { %6607 = shalt.err (!%p6604_p7)
}
  0xb9   :  { %100 = dma.hbm_to_vmem [thread:$0]  %s7750_s4, 256, %s95_s13, [#allocation9], %s6741_s3, %s6741_s3, %s6742_s1  }
  0xba   :  { %s6608_s5 = scalar_lea.hbm %s7707_s10, 16 }
  0xbb   :  { %p6609_p8 = scmp.ne.s32.totalorder %s7707_s10, %s6608_s5  ;;  %p6612_p9 = scmp.lt.u32.totalorder %s6608_s5, %s7707_s10 }
  0xbd   :  { %p6614_p10 = pnand %p6612_p9, %p6609_p8 }
  0xbf   :  { %6617 = shalt.err (!%p6614_p10)
}
  0xc0   :  { %s6618_s9 = scalar_lea.vmem %s118_s6, 16  ;;  %s6622_s30 = scalar_lea.vmem %s118_s6, 32 }
  0xc1   :  { %p6619_p11 = scmp.ne.s32.totalorder %s118_s6, %s6618_s9  ;;  %p6623_p12 = scmp.lt.s32.totalorder %s118_s6, %s118_s6 }
  0xc2   :  { %p6624_p13 = scmp.lt.s32.totalorder %s6622_s30, %s6618_s9 }
  0xc4   :  { %p6625_p0 = por %p6624_p13, %p6623_p12 }
  0xc6   :  { %p6626_p1 = pnand %p6625_p0, %p6619_p11 }
  0xc8   :  { %6629 = shalt.err (!%p6626_p1)
}
  0xc9   :  { %120 = dma.hbm_to_vmem [thread:$0]  %s7707_s10, 16, %s118_s6, [#allocation12]  }
  0xca   :  { %s6745_s4 = smov [#allocation16]   ;;  %s6746_s8 = smov [#allocation19]  }
  0xcb   :  { %s137_s2 = sshll.u32 %s6745_s4, 4  ;;  %s157_s7 = sshll.u32 %s6746_s8, 4  ;;  %s138_s2 = int_to_ptr.vmem [resolvable:$true] %s137_s2  ;;  %s158_s7 = int_to_ptr.vmem [resolvable:$true] %s157_s7 }
  0xcc   :  { %s6630_s0 = scalar_lea.hbm %s7709_s12, 16 }
  0xcd   :  { %p6631_p2 = scmp.ne.s32.totalorder %s7709_s12, %s6630_s0  ;;  %p6634_p3 = scmp.lt.u32.totalorder %s6630_s0, %s7709_s12 }
  0xcf   :  { %p6636_p4 = pnand %p6634_p3, %p6631_p2 }
  0xd1   :  { %6639 = shalt.err (!%p6636_p4)
}
  0xd2   :  { %s6640_s10 = scalar_lea.vmem %s138_s2, 16  ;;  %s6644_s6 = scalar_lea.vmem %s138_s2, 32 }
  0xd3   :  { %p6641_p5 = scmp.ne.s32.totalorder %s138_s2, %s6640_s10  ;;  %p6645_p6 = scmp.lt.s32.totalorder %s138_s2, %s138_s2 }
  0xd4   :  { %p6646_p7 = scmp.lt.s32.totalorder %s6644_s6, %s6640_s10 }
  0xd6   :  { %p6647_p8 = por %p6646_p7, %p6645_p6 }
  0xd8   :  { %p6648_p9 = pnand %p6647_p8, %p6641_p5 }
  0xda   :  { %6651 = shalt.err (!%p6648_p9)
}
  0xdb   :  { %140 = dma.hbm_to_vmem [thread:$0]  %s7709_s12, 16, %s138_s2, [#allocation15]  }
  0xdc   :  { %s6652_s13 = scalar_lea.hbm %s7711_s14, 16 }
  0xdd   :  { %p6653_p10 = scmp.ne.s32.totalorder %s7711_s14, %s6652_s13  ;;  %p6656_p11 = scmp.lt.u32.totalorder %s6652_s13, %s7711_s14 }
  0xdf   :  { %p6658_p12 = pnand %p6656_p11, %p6653_p10 }
  0xe1   :  { %6661 = shalt.err (!%p6658_p12)
}
  0xe2   :  { %s6662_s0 = scalar_lea.vmem %s158_s7, 16  ;;  %s6666_s5 = scalar_lea.vmem %s158_s7, 32 }
  0xe3   :  { %p6663_p13 = scmp.ne.s32.totalorder %s158_s7, %s6662_s0  ;;  %p6667_p0 = scmp.lt.s32.totalorder %s158_s7, %s158_s7 }
  0xe4   :  { %p6668_p1 = scmp.lt.s32.totalorder %s6666_s5, %s6662_s0 }
  0xe6   :  { %p6669_p2 = por %p6668_p1, %p6667_p0 }
  0xe8   :  { %p6670_p3 = pnand %p6669_p2, %p6663_p13 }
  0xea   :  { %6673 = shalt.err (!%p6670_p3)
}
  0xeb   :  { %160 = dma.hbm_to_vmem [thread:$0]  %s7711_s14, 16, %s158_s7, [#allocation18]  }
  0xec   :  { %6718 = dma.done.wait [#allocation3], 64  }
  0xed   :  { %6719 = vsyncadd [#allocation3], 4294967232 }
  0xee   :  { %6720 = dma.done.wait [#allocation6], 272  }
  0xef   :  { %6721 = vsyncadd [#allocation6], 4294967024 }
  0xf0   :  { %6722 = dma.done.wait [#allocation9], 272  }
  0xf1   :  { %6723 = vsyncadd [#allocation9], 4294967024 }
  0xf2   :  { %6724 = dma.done.wait [#allocation12], 144  }
  0xf3   :  { %6725 = vsyncadd [#allocation12], 4294967152 }
  0xf4   :  { %6726 = dma.done.wait [#allocation15], 144  }
  0xf5   :  { %6727 = vsyncadd [#allocation15], 4294967152 }
  0xf6   :  { %6728 = dma.done.wait [#allocation18], 144  }
  0xf7   :  { %6729 = vsyncadd [#allocation18], 4294967152  ;;  %v6747_v0 = vmov 0.0|0.0   ;;  %vm6748_vm0 = vmmov 0   ;;  %v6749_v1 = vmov 0.0   ;;  %vm231_vm1 = vcmask 1043456  }
  0xf8   :  { %5923 = vmatprep.subr.bf16.mxu0 %v6747_v0  ;;  %5557 = vmatprep.mubr.msk.f32.mxu0 %vm6748_vm0, %v6749_v1  ;;  %vm224_vm2 = vcmask 31744   ;;  %v212_v2 = vld [vmem:[#allocation2] sm:$0xf]  ;;  %s7751_s27 = sld [smem:[#allocation31_spill]]  ;;  %s7752_s29 = sld [smem:[#allocation34_spill]]  ;;  %vm310_vm3 = vcmask 261120  }
  0xf9   :  { %5533 = vmatprep.subr.msk.mxu1 %vm231_vm1, %v212_v2  ;;  %v5261_v11 = vld [vmem:[#allocation5] ss:$0 sm:$0xff]  ;;  %s6750_s26 = smov 64   ;;  %s6751_s23 = smov 32   ;;  %vm1153_vm4 = vcmask 1041408   ;;  %vm1156_vm5 = vcmask 1045504  }
  0xfa   :  { %5534 = vmatpush3.msk.msra.mxu1 %vm231_vm1, %v212_v2  ;;  %s7753_s12 = sld [smem:[#allocation36_spill]]  ;;  %s6752_s10 = smov 96   ;;  %vm1261_vm6 = vcmask 130048   ;;  %vm2206_vm7 = vcmask 64512   ;;  %vm3210_vm8 = vcmask 58368  }
  0xfb   :  { %5917 = vmatprep.subr.bf16.mxu1 %v6747_v0  ;;  %s6753_s6 = smov 16   ;;  %s6755_s9 = smov 112  }
  0xfc   :  { %s6756_s30 = smov 104   ;;  %s7754_s5 = sld [smem:[#allocation32_spill]] }
  0xfd   :  { %s6757_s2 = smov [#allocation20]   ;;  %s6758_s14 = smov [#allocation21]  }
  0xfe   :  { %v210_v3 = vld [vmem:[%s7751_s27] sm:$0xff]  ;;  %v211_v4 = vld [vmem:[%s7751_s27 + $0x8] sm:$0xff]  ;;  %v215_v7 = vld [vmem:[%s7752_s29 + $0x10] sm:$0xff]  ;;  %s5241_s7 = sshll.u32 %s6758_s14, 4  ;;  %s5242_s7 = int_to_ptr.vmem [resolvable:$true] %s5241_s7 }
  0xff   :  { %5535 = vmatprep.mubr.msk.f32.mxu1 %vm224_vm2, %v210_v3  ;;  %v213_v5 = vld [vmem:[%s7752_s29] sm:$0xff]  ;;  %v214_v6 = vld [vmem:[%s7752_s29 + $0x8] sm:$0xff]  ;;  %v216_v9 = vld [vmem:[%s7752_s29 + $0x18] sm:$0xff]  ;;  %s6754_s29 = smov 80  }
 0x100   :  { %v7044_v8 = vpack.c.bf16 %v214_v6, %v213_v5  ;;  %5536 = vmatmul.mubr.msk.f32.vlgmr.msra.gmra.mrb[0].mxu1 %vm224_vm2, %v211_v4  ;;  %v7052_v10 = vpack.c.bf16 %v216_v9, %v215_v7 }
 0x101   :  { %5546 = vmatprep.mubr.msk.f32.mxu1 %vm6748_vm0, %v6749_v1 }
 0x102   :  { %5919 = vmatpush3.bf16.msra.mxu1 %v7044_v8  ;;  %5925 = vmatpush3.bf16.msra.mxu0 %v7044_v8 }
 0x103   :  { %5920 = vmatprep.subr.bf16.mxu1 %v6747_v0  ;;  %5926 = vmatprep.subr.bf16.mxu0 %v6747_v0 }
 0x106   :  { %5922 = vmatpush3.bf16.msra.mxu1 %v7052_v10  ;;  %5928 = vmatpush3.bf16.msra.mxu0 %v7052_v10 }
 0x107   :  { %5929 = vmatprep.subr.bf16.mxu1 %v6747_v0  ;;  %5935 = vmatprep.subr.bf16.mxu0 %v6747_v0 }
 0x109   :  { %5547 = vmatmul.mubr.f32.vlgmr.msra.gmra.mrb[2].mxu1 %v6749_v1 }
 0x10a   :  { %5931 = vmatpush3.bf16.msra.mxu1 %v7044_v8  ;;  %5568 = vmatprep.mubr.msk.f32.mxu1 %vm6748_vm0, %v6749_v1 }
 0x10b   :  { %5932 = vmatprep.subr.bf16.mxu1 %v6747_v0 }
 0x10e   :  { %5934 = vmatpush3.bf16.msra.mxu1 %v7052_v10 }
 0x10f   :  { %5941 = vmatprep.subr.bf16.mxu1 %v6747_v0 }
 0x1d3   :  { %v5537_v12 = vpop.f32.mrb[0].mxu1 }
 0x1d4   :  { %v7070_v13 = vadd.f32 %v5537_v12, %v5261_v11  ;;  %v301_v14 = vpop.f32.mrb[1].mxu1 }
 0x1d5   :  { %v7072_v15 = vadd.f32 %v5261_v11, %v301_v14 }
 0x1dc   :  { %v380_v16 = vpop.f32.mrb[2].mxu1 }
 0x1dd   :  { %v384_v17 = vadd.f32 %v380_v16, %v7072_v15  ;;  %v5548_v18 = vpop.f32.mrb[3].mxu1 }
 0x1df   :  { %6110 = vtanh.f32 %v384_v17  ;;  %v5265_v20 = vmul.f32 -1.442695, %v384_v17 }
 0x1e1   :  { %6112 = vpow2.f32 %v5265_v20 }
 0x1e9   :  { %v6111_v19 = vpop.eup %6110 }
 0x1ea   :  { %394 = vrot.lane.b32.xlu0 %v6111_v19, %s6750_s26 }
 0x1eb   :  { %v6113_v21 = vpop.eup %6112 }
 0x1ec   :  { %v388_v22 = vadd.f32 1.0, %v6113_v21 }
 0x1ee   :  { %6114 = vrcp.f32 %v388_v22 }
 0x1f8   :  { %v6115_v23 = vpop.eup %6114 }
 0x1f9   :  { %v392_v26 = vmul.f32 0.0, %v6115_v23 }
 0x25c   :  { %v395_v24 = vpop.permute.xlu0 %394 }
 0x25d   :  { %v397_v25 = vmul.f32 %v6115_v23, %v395_v24 }
 0x25f   :  { %399 = vrot.lane.b32.xlu0 %v397_v25, %s6751_s23 }
 0x2d1   :  { %v400_v27 = vpop.permute.xlu0 %399 }
 0x2d2   :  { %v402_v28 = vadd.f32 %v400_v27, %v392_v26 }
 0x2d4   :  { %6116 = vtanh.f32 %v402_v28  ;;  %v496_v44 = vrot.slane %v402_v28, 6 }
 0x2de   :  { %v6117_v29 = vpop.eup %6116 }
 0x2df   :  { %405 = vrot.lane.b32.xlu1 %v6117_v29, %s6750_s26 }
 0x351   :  { %v406_v30 = vpop.permute.xlu1 %405 }
 0x352   :  { %v7078_v31 = vmul.f32 %v6115_v23, %v406_v30 }
 0x354   :  { %410 = vrot.lane.b32.xlu1 %v7078_v31, %s6751_s23 }
 0x3c6   :  { %v411_v32 = vpop.permute.xlu1 %410 }
 0x3c7   :  { %5558 = vmatmul.mubr.msk.f32.vlgmr.msra.gmra.mrb[0].mxu0 %vm310_vm3, %v411_v32 }
 0x3c8   :  { %5937 = vmatpush3.bf16.msra.mxu0 %v7044_v8  ;;  %5579 = vmatprep.mubr.msk.f32.mxu0 %vm6748_vm0, %v6749_v1 }
 0x3c9   :  { %5938 = vmatprep.subr.bf16.mxu0 %v6747_v0 }
 0x3cc   :  { %5940 = vmatpush3.bf16.msra.mxu0 %v7052_v10 }
 0x3cd   :  { %5947 = vmatprep.subr.bf16.mxu0 %v6747_v0 }
 0x49a   :  { %v480_v33 = vpop.f32.mrb[0].mxu0 }
 0x49b   :  { %v485_v34 = vrot.slane %v480_v33, 6  ;;  %v5559_v35 = vpop.f32.mrb[1].mxu0 }
 0x49d   :  { %v487_v36 = vadd.f32 %v485_v34, %v7072_v15 }
 0x49f   :  { %6118 = vtanh.f32 %v487_v36  ;;  %v5267_v38 = vmul.f32 -1.442695, %v487_v36 }
 0x4a1   :  { %6120 = vpow2.f32 %v5267_v38 }
 0x4a9   :  { %v6119_v37 = vpop.eup %6118 }
 0x4aa   :  { %500 = vrot.lane.b32.xlu0 %v6119_v37, %s6750_s26 }
 0x4ab   :  { %v6121_v39 = vpop.eup %6120 }
 0x4ac   :  { %v491_v40 = vadd.f32 1.0, %v6121_v39 }
 0x4ae   :  { %6122 = vrcp.f32 %v491_v40 }
 0x4b8   :  { %v6123_v41 = vpop.eup %6122 }
 0x4b9   :  { %v498_v45 = vmul.f32 %v6123_v41, %v496_v44 }
 0x51c   :  { %v501_v42 = vpop.permute.xlu0 %500 }
 0x51d   :  { %v503_v43 = vmul.f32 %v6123_v41, %v501_v42 }
 0x51f   :  { %505 = vrot.lane.b32.xlu1 %v503_v43, %s6751_s23 }
 0x591   :  { %v506_v46 = vpop.permute.xlu1 %505 }
 0x592   :  { %v508_v47 = vadd.f32 %v506_v46, %v498_v45 }
 0x594   :  { %6124 = vtanh.f32 %v508_v47  ;;  %v603_v2 = vrot.slane %v508_v47, 6 }
 0x59e   :  { %v6125_v48 = vpop.eup %6124 }
 0x59f   :  { %511 = vrot.lane.b32.xlu0 %v6125_v48, %s6750_s26 }
 0x611   :  { %v512_v49 = vpop.permute.xlu0 %511 }
 0x612   :  { %v514_v50 = vmul.f32 %v6123_v41, %v512_v49 }
 0x614   :  { %v516_v51 = vrot.slane %v514_v50, 2  ;;  %v1154_v11 = vsel %vm1153_vm4, %v7078_v31, %v514_v50 }
 0x616   :  { %517 = vrot.lane.b32.xlu1 %v516_v51, %s6751_s23 }
 0x688   :  { %v518_v52 = vpop.permute.xlu1 %517 }
 0x689   :  { %5569 = vmatmul.mubr.msk.f32.vlgmr.msra.gmra.mrb[4].mxu1 %vm310_vm3, %v518_v52 }
 0x68a   :  { %5943 = vmatpush3.bf16.msra.mxu1 %v7044_v8  ;;  %5590 = vmatprep.mubr.msk.f32.mxu1 %vm6748_vm0, %v6749_v1 }
 0x68b   :  { %5944 = vmatprep.subr.bf16.mxu1 %v6747_v0 }
 0x68e   :  { %5946 = vmatpush3.bf16.msra.mxu1 %v7052_v10 }
 0x68f   :  { %5953 = vmatprep.subr.bf16.mxu1 %v6747_v0 }
 0x75c   :  { %v587_v53 = vpop.f32.mrb[4].mxu1 }
 0x75d   :  { %v592_v54 = vrot.slane %v587_v53, 4  ;;  %v5570_v55 = vpop.f32.mrb[5].mxu1 }
 0x75f   :  { %v594_v56 = vadd.f32 %v592_v54, %v7072_v15 }
 0x761   :  { %6126 = vtanh.f32 %v594_v56  ;;  %v5269_v58 = vmul.f32 -1.442695, %v594_v56 }
 0x763   :  { %6128 = vpow2.f32 %v5269_v58 }
 0x76b   :  { %v6127_v57 = vpop.eup %6126 }
 0x76c   :  { %607 = vrot.lane.b32.xlu0 %v6127_v57, %s6750_s26 }
 0x76d   :  { %v6129_v59 = vpop.eup %6128 }
 0x76e   :  { %v598_v60 = vadd.f32 1.0, %v6129_v59 }
 0x770   :  { %6130 = vrcp.f32 %v598_v60 }
 0x77a   :  { %v6131_v61 = vpop.eup %6130 }
 0x77b   :  { %v605_v3 = vmul.f32 %v6131_v61, %v603_v2 }
 0x7de   :  { %v608_v62 = vpop.permute.xlu0 %607 }
 0x7df   :  { %v610_v63 = vmul.f32 %v6131_v61, %v608_v62 }
 0x7e1   :  { %612 = vrot.lane.b32.xlu1 %v610_v63, %s6751_s23 }
 0x853   :  { %v613_v4 = vpop.permute.xlu1 %612 }
 0x854   :  { %v615_v5 = vadd.f32 %v613_v4, %v605_v3 }
 0x856   :  { %6132 = vtanh.f32 %v615_v5  ;;  %v710_v28 = vrot.slane %v615_v5, 6 }
 0x860   :  { %v6133_v6 = vpop.eup %6132 }
 0x861   :  { %618 = vrot.lane.b32.xlu0 %v6133_v6, %s6750_s26 }
 0x8d3   :  { %v619_v7 = vpop.permute.xlu0 %618 }
 0x8d4   :  { %v621_v9 = vmul.f32 %v6131_v61, %v619_v7 }
 0x8d6   :  { %v623_v12 = vrot.slane %v621_v9, 4  ;;  %v1155_v14 = vsel %vm231_vm1, %v1154_v11, %v621_v9 }
 0x8d8   :  { %624 = vrot.lane.b32.xlu1 %v623_v12, %s6751_s23 }
 0x94a   :  { %v625_v16 = vpop.permute.xlu1 %624 }
 0x94b   :  { %5580 = vmatmul.mubr.msk.f32.vlgmr.msra.gmra.mrb[2].mxu0 %vm310_vm3, %v625_v16 }
 0x94c   :  { %5949 = vmatpush3.bf16.msra.mxu0 %v7044_v8  ;;  %5601 = vmatprep.mubr.msk.f32.mxu0 %vm6748_vm0, %v6749_v1 }
 0x94d   :  { %5950 = vmatprep.subr.bf16.mxu0 %v6747_v0 }
 0x950   :  { %5952 = vmatpush3.bf16.msra.mxu0 %v7052_v10 }
 0x951   :  { %5959 = vmatprep.subr.bf16.mxu0 %v6747_v0 }
 0xa1e   :  { %v694_v17 = vpop.f32.mrb[2].mxu0 }
 0xa1f   :  { %v699_v18 = vrot.slane %v694_v17, 2  ;;  %v5581_v19 = vpop.f32.mrb[3].mxu0 }
 0xa21   :  { %v701_v20 = vadd.f32 %v699_v18, %v7072_v15 }
 0xa23   :  { %6134 = vtanh.f32 %v701_v20  ;;  %v5271_v22 = vmul.f32 -1.442695, %v701_v20 }
 0xa25   :  { %6136 = vpow2.f32 %v5271_v22 }
 0xa2d   :  { %v6135_v21 = vpop.eup %6134 }
 0xa2e   :  { %714 = vrot.lane.b32.xlu0 %v6135_v21, %s6750_s26 }
 0xa2f   :  { %v6137_v23 = vpop.eup %6136 }
 0xa30   :  { %v705_v24 = vadd.f32 1.0, %v6137_v23 }
 0xa32   :  { %6138 = vrcp.f32 %v705_v24 }
 0xa3c   :  { %v6139_v25 = vpop.eup %6138 }
 0xa3d   :  { %v712_v29 = vmul.f32 %v6139_v25, %v710_v28 }
 0xaa0   :  { %v715_v26 = vpop.permute.xlu0 %714 }
 0xaa1   :  { %v717_v27 = vmul.f32 %v6139_v25, %v715_v26 }
 0xaa3   :  { %719 = vrot.lane.b32.xlu1 %v717_v27, %s6751_s23 }
 0xb15   :  { %v720_v30 = vpop.permute.xlu1 %719 }
 0xb16   :  { %v722_v31 = vadd.f32 %v720_v30, %v712_v29 }
 0xb18   :  { %6140 = vtanh.f32 %v722_v31  ;;  %v814_v47 = vrot.slane %v722_v31, 6 }
 0xb22   :  { %v6141_v15 = vpop.eup %6140 }
 0xb23   :  { %725 = vrot.lane.b32.xlu0 %v6141_v15, %s6750_s26 }
 0xb95   :  { %v726_v32 = vpop.permute.xlu0 %725 }
 0xb96   :  { %v728_v33 = vmul.f32 %v6139_v25, %v726_v32 }
 0xb98   :  { %v730_v34 = vrot.slane %v728_v33, 6  ;;  %v7121_v35 = vsel %vm1156_vm5, %v1155_v14, %v728_v33 }
 0xb9a   :  { %731 = vrot.lane.b32.xlu1 %v730_v34, %s6751_s23 }
 0xc0c   :  { %v732_v36 = vpop.permute.xlu1 %731 }
 0xc0d   :  { %5591 = vmatmul.mubr.msk.f32.vlgmr.msra.gmra.mrb[6].mxu1 %vm310_vm3, %v732_v36 }
 0xc0e   :  { %5955 = vmatpush3.bf16.msra.mxu1 %v7044_v8  ;;  %5612 = vmatprep.mubr.msk.f32.mxu1 %vm6748_vm0, %v6749_v1 }
 0xc0f   :  { %5956 = vmatprep.subr.bf16.mxu1 %v6747_v0 }
 0xc12   :  { %5958 = vmatpush3.bf16.msra.mxu1 %v7052_v10 }
 0xce0   :  { %v801_v37 = vpop.f32.mrb[6].mxu1 }
 0xce1   :  { %v805_v38 = vadd.f32 %v801_v37, %v7070_v13  ;;  %v5592_v39 = vpop.f32.mrb[7].mxu1 }
 0xce3   :  { %6142 = vtanh.f32 %v805_v38  ;;  %v5273_v41 = vmul.f32 -1.442695, %v805_v38 }
 0xce5   :  { %6144 = vpow2.f32 %v5273_v41 }
 0xced   :  { %v6143_v40 = vpop.eup %6142 }
 0xcee   :  { %818 = vrot.lane.b32.xlu0 %v6143_v40, %s6750_s26 }
 0xcef   :  { %v6145_v42 = vpop.eup %6144 }
 0xcf0   :  { %v809_v43 = vadd.f32 1.0, %v6145_v42 }
 0xcf2   :  { %6146 = vrcp.f32 %v809_v43 }
 0xcfc   :  { %v6147_v44 = vpop.eup %6146 }
 0xcfd   :  { %v816_v48 = vmul.f32 %v6147_v44, %v814_v47 }
 0xd60   :  { %v819_v45 = vpop.permute.xlu0 %818 }
 0xd61   :  { %v821_v46 = vmul.f32 %v6147_v44, %v819_v45 }
 0xd63   :  { %823 = vrot.lane.b32.xlu1 %v821_v46, %s6751_s23 }
 0xdd5   :  { %v824_v49 = vpop.permute.xlu1 %823 }
 0xdd6   :  { %v826_v50 = vadd.f32 %v824_v49, %v816_v48  ;;  %v1161_v48 = vmax.f32 %v7121_v35, 0.0  ;;  %v1165_v35 = vld [vmem:[%s7753_s12 + $0x10] sm:$0xff] }
 0xdd8   :  { %6148 = vtanh.f32 %v826_v50 }
 0xde2   :  { %v6149_v51 = vpop.eup %6148 }
 0xde3   :  { %829 = vrot.lane.b32.xlu0 %v6149_v51, %s6750_s26 }
 0xe55   :  { %v830_v52 = vpop.permute.xlu0 %829 }
 0xe56   :  { %v7134_v53 = vmul.f32 %v6147_v44, %v830_v52 }
 0xe58   :  { %834 = vrot.lane.b32.xlu1 %v7134_v53, %s6751_s23 }
 0xeca   :  { %v835_v54 = vpop.permute.xlu1 %834 }
 0xecb   :  { %5602 = vmatmul.mubr.msk.f32.vlgmr.msra.gmra.mrb[4].mxu0 %vm310_vm3, %v835_v54  ;;  %v1164_v54 = vld [vmem:[%s7753_s12 + $0x8] sm:$0xff] }
 0xecc   :  { %5961 = vmatpush3.bf16.msra.mxu0 %v7044_v8  ;;  %5623 = vmatprep.mubr.msk.f32.mxu0 %vm6748_vm0, %v6749_v1 }
 0xecd   :  { %5962 = vmatprep.subr.bf16.mxu0 %v6747_v0 }
 0xed0   :  { %5964 = vmatpush3.bf16.msra.mxu0 %v7052_v10  ;;  %v920_v10 = vrot.slane %v826_v50, 6 }
 0xed1   :  { %5973 = vmatprep.subr.bf16.mxu0 %v6747_v0 }
 0xf9e   :  { %v904_v55 = vpop.f32.mrb[4].mxu0 }
 0xf9f   :  { %v909_v56 = vrot.slane %v904_v55, 6  ;;  %v5603_v57 = vpop.f32.mrb[5].mxu0 }
 0xfa0   :  { %v1167_v57 = vld [vmem:[#allocation7] sm:$0xff] }
 0xfa1   :  { %v911_v58 = vadd.f32 %v909_v56, %v7070_v13  ;;  %v1166_v56 = vld [vmem:[%s7753_s12 + $0x18] sm:$0xff] }
 0xfa3   :  { %6150 = vtanh.f32 %v911_v58  ;;  %v5275_v60 = vmul.f32 -1.442695, %v911_v58  ;;  %v1168_v58 = vld [vmem:[#allocation7 + $0x8] sm:$0xff] }
 0xfa5   :  { %6152 = vpow2.f32 %v5275_v60  ;;  %v7180_v60 = vpack.c.bf16 %v1168_v58, %v1167_v57 }
 0xfad   :  { %v6151_v59 = vpop.eup %6150 }
 0xfae   :  { %924 = vrot.lane.b32.xlu0 %v6151_v59, %s6750_s26  ;;  %v5969_v59 = vpack.c.bf16 %v1166_v56, %v1165_v35 }
 0xfaf   :  { %v6153_v8 = vpop.eup %6152 }
 0xfb0   :  { %v915_v61 = vadd.f32 1.0, %v6153_v8 }
 0xfb2   :  { %6154 = vrcp.f32 %v915_v61 }
 0xfbc   :  { %v6155_v62 = vpop.eup %6154 }
 0xfbd   :  { %v922_v3 = vmul.f32 %v6155_v62, %v920_v10 }
0x1020   :  { %v925_v63 = vpop.permute.xlu0 %924 }
0x1021   :  { %v927_v2 = vmul.f32 %v6155_v62, %v925_v63 }
0x1023   :  { %929 = vrot.lane.b32.xlu1 %v927_v2, %s6751_s23 }
0x1095   :  { %v930_v4 = vpop.permute.xlu1 %929 }
0x1096   :  { %v932_v5 = vadd.f32 %v930_v4, %v922_v3 }
0x1098   :  { %6156 = vtanh.f32 %v932_v5  ;;  %v1027_v26 = vrot.slane %v932_v5, 6  ;;  %v5280_v5 = vld [vmem:[#allocation8] ss:$0 sm:$0xff] }
0x10a2   :  { %v6157_v6 = vpop.eup %6156 }
0x10a3   :  { %935 = vrot.lane.b32.xlu0 %v6157_v6, %s6750_s26 }
0x1115   :  { %v936_v7 = vpop.permute.xlu0 %935 }
0x1116   :  { %v938_v9 = vmul.f32 %v6155_v62, %v936_v7 }
0x1118   :  { %v940_v11 = vrot.slane %v938_v9, 2  ;;  %v1158_v32 = vsel %vm1153_vm4, %v7134_v53, %v938_v9  ;;  %v1163_v53 = vld [vmem:[%s7753_s12] sm:$0xff] }
0x1119   :  { %v5965_v55 = vpack.c.bf16 %v1164_v54, %v1163_v53 }
0x111a   :  { %941 = vrot.lane.b32.xlu1 %v940_v11, %s6751_s23 }
0x111b   :  { %5966 = vmatprep.subr.bf16.mxu1 %v5965_v55 }
0x118c   :  { %v942_v12 = vpop.permute.xlu1 %941 }
0x118d   :  { %5613 = vmatmul.mubr.msk.f32.vlgmr.msra.gmra.mrb[8].mxu1 %vm310_vm3, %v942_v12 }
0x118e   :  { %5968 = vmatpush3.bf16.msra.mxu1 %v5965_v55 }
0x118f   :  { %5970 = vmatprep.subr.bf16.mxu1 %v5969_v59 }
0x1192   :  { %5972 = vmatpush3.bf16.msra.mxu1 %v5969_v59 }
0x1193   :  { %5979 = vmatprep.subr.bf16.mxu1 %v6747_v0 }
0x1260   :  { %v1011_v14 = vpop.f32.mrb[8].mxu1 }
0x1261   :  { %v1016_v16 = vrot.slane %v1011_v14, 4  ;;  %v5614_v17 = vpop.f32.mrb[9].mxu1 }
0x1263   :  { %v1018_v18 = vadd.f32 %v1016_v16, %v7070_v13 }
0x1265   :  { %6158 = vtanh.f32 %v1018_v18  ;;  %v5277_v20 = vmul.f32 -1.442695, %v1018_v18 }
0x1267   :  { %6160 = vpow2.f32 %v5277_v20 }
0x126f   :  { %v6159_v19 = vpop.eup %6158 }
0x1270   :  { %1031 = vrot.lane.b32.xlu0 %v6159_v19, %s6750_s26 }
0x1271   :  { %v6161_v21 = vpop.eup %6160 }
0x1272   :  { %v1022_v22 = vadd.f32 1.0, %v6161_v21 }
0x1274   :  { %6162 = vrcp.f32 %v1022_v22 }
0x127e   :  { %v6163_v23 = vpop.eup %6162 }
0x127f   :  { %v1029_v27 = vmul.f32 %v6163_v23, %v1027_v26 }
0x12e2   :  { %v1032_v24 = vpop.permute.xlu0 %1031 }
0x12e3   :  { %v1034_v25 = vmul.f32 %v6163_v23, %v1032_v24 }
0x12e5   :  { %1036 = vrot.lane.b32.xlu1 %v1034_v25, %s6751_s23 }
0x1357   :  { %v1037_v28 = vpop.permute.xlu1 %1036 }
0x1358   :  { %v1039_v29 = vadd.f32 %v1037_v28, %v1029_v27 }
0x135a   :  { %6164 = vtanh.f32 %v1039_v29  ;;  %v1134_v49 = vrot.slane %v1039_v29, 6 }
0x1364   :  { %v6165_v30 = vpop.eup %6164 }
0x1365   :  { %1042 = vrot.lane.b32.xlu0 %v6165_v30, %s6750_s26 }
0x13d7   :  { %v1043_v31 = vpop.permute.xlu0 %1042 }
0x13d8   :  { %v1045_v15 = vmul.f32 %v6163_v23, %v1043_v31 }
0x13da   :  { %v1047_v33 = vrot.slane %v1045_v15, 4  ;;  %v1159_v34 = vsel %vm231_vm1, %v1158_v32, %v1045_v15 }
0x13dc   :  { %1048 = vrot.lane.b32.xlu1 %v1047_v33, %s6751_s23 }
0x144e   :  { %v1049_v36 = vpop.permute.xlu1 %1048 }
0x144f   :  { %5624 = vmatmul.mubr.msk.f32.vlgmr.msra.gmra.mrb[6].mxu0 %vm310_vm3, %v1049_v36 }
0x1450   :  { %5641 = vmatprep.mubr.msk.f32.mxu0 %vm6748_vm0, %v6749_v1  ;;  %5975 = vmatpush3.bf16.msra.mxu0 %v7180_v60 }
0x1451   :  { %5976 = vmatprep.subr.bf16.mxu0 %v6747_v0 }
0x1453   :  { %5642 = vmatmul.mubr.f32.vlgmr.msra.gmra.mrb[8].mxu0 %v6749_v1 }
0x1454   :  { %5978 = vmatpush3.bf16.msra.mxu0 %v7180_v60  ;;  %5648 = vmatprep.mubr.msk.f32.mxu0 %vm6748_vm0, %v6749_v1 }
0x1455   :  { %5982 = vmatprep.subr.bf16.mxu0 %v6747_v0 }
0x1522   :  { %v1118_v37 = vpop.f32.mrb[6].mxu0 }
0x1523   :  { %v1123_v38 = vrot.slane %v1118_v37, 2  ;;  %v5625_v39 = vpop.f32.mrb[7].mxu0 }
0x1525   :  { %v1125_v40 = vadd.f32 %v1123_v38, %v7070_v13 }
0x1526   :  { %v1330_v3 = vpop.f32.mrb[8].mxu0 }
0x1527   :  { %6166 = vtanh.f32 %v1125_v40  ;;  %v5279_v42 = vmul.f32 -1.442695, %v1125_v40  ;;  %v5643_v4 = vpop.f32.mrb[9].mxu0 }
0x1529   :  { %6168 = vpow2.f32 %v5279_v42 }
0x1531   :  { %v6167_v41 = vpop.eup %6166 }
0x1532   :  { %1138 = vrot.lane.b32.xlu0 %v6167_v41, %s6750_s26 }
0x1533   :  { %v6169_v43 = vpop.eup %6168 }
0x1534   :  { %v1129_v44 = vadd.f32 1.0, %v6169_v43 }
0x1536   :  { %6170 = vrcp.f32 %v1129_v44 }
0x1540   :  { %v6171_v45 = vpop.eup %6170 }
0x1541   :  { %v1136_v13 = vmul.f32 %v6171_v45, %v1134_v49 }
0x15a4   :  { %v1139_v46 = vpop.permute.xlu0 %1138 }
0x15a5   :  { %v1141_v47 = vmul.f32 %v6171_v45, %v1139_v46 }
0x15a7   :  { %1143 = vrot.lane.b32.xlu1 %v1141_v47, %s6751_s23 }
0x15ab   :  { %1178 = vrot.lane.b32.xlu1 %v1161_v48, %s6751_s23 }
0x1619   :  { %v1144_v50 = vpop.permute.xlu1 %1143 }
0x161a   :  { %v1146_v51 = vadd.f32 %v1144_v50, %v1136_v13 }
0x161c   :  { %6172 = vtanh.f32 %v1146_v51 }
0x161d   :  { %v1179_v52 = vpop.permute.xlu1 %1178 }
0x161e   :  { %5634 = vmatprep.mubr.msk.f32.mxu1 %vm310_vm3, %v1179_v52 }
0x1626   :  { %v6173_v8 = vpop.eup %6172 }
0x1627   :  { %1149 = vrot.lane.b32.xlu0 %v6173_v8, %s6750_s26 }
0x1699   :  { %v1150_v61 = vpop.permute.xlu0 %1149 }
0x169a   :  { %v1152_v62 = vmul.f32 %v6171_v45, %v1150_v61 }
0x169c   :  { %v1160_v63 = vsel %vm1156_vm5, %v1159_v34, %v1152_v62 }
0x169d   :  { %v1162_v2 = vmax.f32 %v1160_v63, 0.0 }
0x169f   :  { %1180 = vrot.lane.b32.xlu0 %v1162_v2, %s6751_s23 }
0x1711   :  { %v1181_v10 = vpop.permute.xlu0 %1180 }
0x1712   :  { %5635 = vmatmul.mubr.msk.f32.vlgmr.msra.gmra.mrb[10].mxu1 %vm310_vm3, %v1181_v10 }
0x1713   :  { %5981 = vmatpush3.bf16.msra.mxu1 %v7180_v60  ;;  %5655 = vmatprep.mubr.msk.f32.mxu1 %vm6748_vm0, %v6749_v1 }
0x1714   :  { %5985 = vmatprep.subr.bf16.mxu1 %v6747_v0 }
0x17e5   :  { %v5636_v6 = vpop.f32.mrb[10].mxu1 }
0x17e6   :  { %v7198_v7 = vadd.f32 %v5636_v6, %v5280_v5  ;;  %v1252_v9 = vpop.f32.mrb[11].mxu1 }
0x17e7   :  { %v7200_v11 = vadd.f32 %v5280_v5, %v1252_v9 }
0x17e9   :  { %v1334_v12 = vadd.f32 %v1330_v3, %v7200_v11 }
0x17eb   :  { %6174 = vtanh.f32 %v1334_v12  ;;  %v5283_v16 = vmul.f32 -1.442695, %v1334_v12 }
0x17ed   :  { %6176 = vpow2.f32 %v5283_v16 }
0x17f5   :  { %v6175_v14 = vpop.eup %6174 }
0x17f6   :  { %1344 = vrot.lane.b32.xlu1 %v6175_v14, %s6752_s10 }
0x17f7   :  { %v6177_v17 = vpop.eup %6176 }
0x17f8   :  { %v1338_v18 = vadd.f32 1.0, %v6177_v17 }
0x17fa   :  { %6178 = vrcp.f32 %v1338_v18 }
0x1804   :  { %v6179_v19 = vpop.eup %6178 }
0x1805   :  { %v1342_v22 = vmul.f32 0.0, %v6179_v19 }
0x1868   :  { %v1345_v20 = vpop.permute.xlu1 %1344 }
0x1869   :  { %v1347_v21 = vmul.f32 %v6179_v19, %v1345_v20 }
0x186b   :  { %1349 = vrot.lane.b32.xlu0 %v1347_v21, %s6753_s6 }
0x18dd   :  { %v1350_v23 = vpop.permute.xlu0 %1349 }
0x18de   :  { %v1352_v24 = vadd.f32 %v1350_v23, %v1342_v22 }
0x18e0   :  { %6180 = vtanh.f32 %v1352_v24  ;;  %v1446_v40 = vrot.slane %v1352_v24, 6 }
0x18ea   :  { %v6181_v25 = vpop.eup %6180 }
0x18eb   :  { %1355 = vrot.lane.b32.xlu1 %v6181_v25, %s6751_s23 }
0x195d   :  { %v1356_v26 = vpop.permute.xlu1 %1355 }
0x195e   :  { %v7206_v27 = vmul.f32 %v6179_v19, %v1356_v26 }
0x1960   :  { %1360 = vrot.lane.b32.xlu0 %v7206_v27, %s6754_s29 }
0x19d2   :  { %v1361_v28 = vpop.permute.xlu0 %1360 }
0x19d3   :  { %5649 = vmatmul.mubr.msk.f32.vlgmr.msra.gmra.mrb[10].mxu0 %vm1261_vm6, %v1361_v28 }
0x19d4   :  { %5984 = vmatpush3.bf16.msra.mxu0 %v7180_v60  ;;  %5662 = vmatprep.mubr.msk.f32.mxu0 %vm6748_vm0, %v6749_v1 }
0x19d5   :  { %5988 = vmatprep.subr.bf16.mxu0 %v6747_v0 }
0x1aa6   :  { %v1430_v29 = vpop.f32.mrb[10].mxu0 }
0x1aa7   :  { %v1435_v30 = vrot.slane %v1430_v29, 6  ;;  %v5650_v31 = vpop.f32.mrb[11].mxu0 }
0x1aa9   :  { %v1437_v15 = vadd.f32 %v1435_v30, %v7200_v11 }
0x1aab   :  { %6182 = vtanh.f32 %v1437_v15  ;;  %v5285_v33 = vmul.f32 -1.442695, %v1437_v15 }
0x1aad   :  { %6184 = vpow2.f32 %v5285_v33 }
0x1ab5   :  { %v6183_v32 = vpop.eup %6182 }
0x1ab6   :  { %1450 = vrot.lane.b32.xlu1 %v6183_v32, %s6752_s10 }
0x1ab7   :  { %v6185_v34 = vpop.eup %6184 }
0x1ab8   :  { %v1441_v36 = vadd.f32 1.0, %v6185_v34 }
0x1aba   :  { %6186 = vrcp.f32 %v1441_v36 }
0x1ac4   :  { %v6187_v37 = vpop.eup %6186 }
0x1ac5   :  { %v1448_v41 = vmul.f32 %v6187_v37, %v1446_v40 }
0x1b28   :  { %v1451_v38 = vpop.permute.xlu1 %1450 }
0x1b29   :  { %v1453_v39 = vmul.f32 %v6187_v37, %v1451_v38 }
0x1b2b   :  { %1455 = vrot.lane.b32.xlu0 %v1453_v39, %s6753_s6 }
0x1b9d   :  { %v1456_v42 = vpop.permute.xlu0 %1455 }
0x1b9e   :  { %v1458_v43 = vadd.f32 %v1456_v42, %v1448_v41 }
0x1ba0   :  { %6188 = vtanh.f32 %v1458_v43  ;;  %v1553_v58 = vrot.slane %v1458_v43, 6 }
0x1baa   :  { %v6189_v44 = vpop.eup %6188 }
0x1bab   :  { %1461 = vrot.lane.b32.xlu1 %v6189_v44, %s6751_s23 }
0x1c1d   :  { %v1462_v45 = vpop.permute.xlu1 %1461 }
0x1c1e   :  { %v1464_v46 = vmul.f32 %v6187_v37, %v1462_v45 }
0x1c20   :  { %v1466_v47 = vrot.slane %v1464_v46, 2  ;;  %v2103_v10 = vsel %vm1153_vm4, %v7206_v27, %v1464_v46 }
0x1c22   :  { %1467 = vrot.lane.b32.xlu0 %v1466_v47, %s6754_s29 }
0x1c94   :  { %v1468_v48 = vpop.permute.xlu0 %1467 }
0x1c95   :  { %5656 = vmatmul.mubr.msk.f32.vlgmr.msra.gmra.mrb[12].mxu1 %vm1261_vm6, %v1468_v48 }
0x1c96   :  { %5987 = vmatpush3.bf16.msra.mxu1 %v7180_v60  ;;  %5669 = vmatprep.mubr.msk.f32.mxu1 %vm6748_vm0, %v6749_v1 }
0x1c97   :  { %5991 = vmatprep.subr.bf16.mxu1 %v6747_v0 }
0x1d68   :  { %v1537_v49 = vpop.f32.mrb[12].mxu1 }
0x1d69   :  { %v1542_v13 = vrot.slane %v1537_v49, 4  ;;  %v5657_v50 = vpop.f32.mrb[13].mxu1 }
0x1d6b   :  { %v1544_v51 = vadd.f32 %v1542_v13, %v7200_v11 }
0x1d6d   :  { %6190 = vtanh.f32 %v1544_v51  ;;  %v5287_v53 = vmul.f32 -1.442695, %v1544_v51 }
0x1d6f   :  { %6192 = vpow2.f32 %v5287_v53 }
0x1d77   :  { %v6191_v52 = vpop.eup %6190 }
0x1d78   :  { %1557 = vrot.lane.b32.xlu1 %v6191_v52, %s6752_s10 }
0x1d79   :  { %v6193_v54 = vpop.eup %6192 }
0x1d7a   :  { %v1548_v35 = vadd.f32 1.0, %v6193_v54 }
0x1d7c   :  { %6194 = vrcp.f32 %v1548_v35 }
0x1d86   :  { %v6195_v55 = vpop.eup %6194 }
0x1d87   :  { %v1555_v59 = vmul.f32 %v6195_v55, %v1553_v58 }
0x1dea   :  { %v1558_v56 = vpop.permute.xlu1 %1557 }
0x1deb   :  { %v1560_v57 = vmul.f32 %v6195_v55, %v1558_v56 }
0x1ded   :  { %1562 = vrot.lane.b32.xlu0 %v1560_v57, %s6753_s6 }
0x1e5f   :  { %v1563_v8 = vpop.permute.xlu0 %1562 }
0x1e60   :  { %v1565_v61 = vadd.f32 %v1563_v8, %v1555_v59 }
0x1e62   :  { %6196 = vtanh.f32 %v1565_v61  ;;  %v1660_v23 = vrot.slane %v1565_v61, 6 }
0x1e6c   :  { %v6197_v62 = vpop.eup %6196 }
0x1e6d   :  { %1568 = vrot.lane.b32.xlu1 %v6197_v62, %s6751_s23 }
0x1edf   :  { %v1569_v63 = vpop.permute.xlu1 %1568 }
0x1ee0   :  { %v1571_v2 = vmul.f32 %v6195_v55, %v1569_v63 }
0x1ee2   :  { %v1573_v3 = vrot.slane %v1571_v2, 4  ;;  %v2104_v4 = vsel %vm231_vm1, %v2103_v10, %v1571_v2 }
0x1ee4   :  { %1574 = vrot.lane.b32.xlu0 %v1573_v3, %s6754_s29 }
0x1f56   :  { %v1575_v5 = vpop.permute.xlu0 %1574 }
0x1f57   :  { %5663 = vmatmul.mubr.msk.f32.vlgmr.msra.gmra.mrb[12].mxu0 %vm1261_vm6, %v1575_v5 }
0x1f58   :  { %5990 = vmatpush3.bf16.msra.mxu0 %v7180_v60  ;;  %5676 = vmatprep.mubr.msk.f32.mxu0 %vm6748_vm0, %v6749_v1 }
0x1f59   :  { %5994 = vmatprep.subr.bf16.mxu0 %v6747_v0 }
0x202a   :  { %v1644_v6 = vpop.f32.mrb[12].mxu0 }
0x202b   :  { %v1649_v9 = vrot.slane %v1644_v6, 2  ;;  %v5664_v12 = vpop.f32.mrb[13].mxu0 }
0x202d   :  { %v1651_v14 = vadd.f32 %v1649_v9, %v7200_v11 }
0x202f   :  { %6198 = vtanh.f32 %v1651_v14  ;;  %v5289_v17 = vmul.f32 -1.442695, %v1651_v14 }
0x2031   :  { %6200 = vpow2.f32 %v5289_v17 }
0x2039   :  { %v6199_v16 = vpop.eup %6198 }
0x203a   :  { %1664 = vrot.lane.b32.xlu1 %v6199_v16, %s6752_s10 }
0x203b   :  { %v6201_v18 = vpop.eup %6200 }
0x203c   :  { %v1655_v19 = vadd.f32 1.0, %v6201_v18 }
0x203e   :  { %6202 = vrcp.f32 %v1655_v19 }
0x2048   :  { %v6203_v20 = vpop.eup %6202 }
0x2049   :  { %v1662_v24 = vmul.f32 %v6203_v20, %v1660_v23 }
0x20ac   :  { %v1665_v21 = vpop.permute.xlu1 %1664 }
0x20ad   :  { %v1667_v22 = vmul.f32 %v6203_v20, %v1665_v21 }
0x20af   :  { %1669 = vrot.lane.b32.xlu0 %v1667_v22, %s6753_s6 }
0x2121   :  { %v1670_v25 = vpop.permute.xlu0 %1669 }
0x2122   :  { %v1672_v26 = vadd.f32 %v1670_v25, %v1662_v24 }
0x2124   :  { %6204 = vtanh.f32 %v1672_v26  ;;  %v1764_v42 = vrot.slane %v1672_v26, 6 }
0x212e   :  { %v6205_v11 = vpop.eup %6204 }
0x212f   :  { %1675 = vrot.lane.b32.xlu1 %v6205_v11, %s6751_s23 }
0x21a1   :  { %v1676_v27 = vpop.permute.xlu1 %1675 }
0x21a2   :  { %v1678_v28 = vmul.f32 %v6203_v20, %v1676_v27 }
0x21a4   :  { %v1680_v29 = vrot.slane %v1678_v28, 6  ;;  %v7243_v30 = vsel %vm1156_vm5, %v2104_v4, %v1678_v28 }
0x21a6   :  { %1681 = vrot.lane.b32.xlu0 %v1680_v29, %s6754_s29 }
0x2218   :  { %v1682_v31 = vpop.permute.xlu0 %1681 }
0x2219   :  { %5670 = vmatmul.mubr.msk.f32.vlgmr.msra.gmra.mrb[14].mxu1 %vm1261_vm6, %v1682_v31 }
0x221a   :  { %5993 = vmatpush3.bf16.msra.mxu1 %v7180_v60  ;;  %5683 = vmatprep.mubr.msk.f32.mxu1 %vm6748_vm0, %v6749_v1 }
0x22ec   :  { %v1751_v15 = vpop.f32.mrb[14].mxu1 }
0x22ed   :  { %v1755_v32 = vadd.f32 %v1751_v15, %v7198_v7  ;;  %v5671_v33 = vpop.f32.mrb[15].mxu1 }
0x22ef   :  { %6206 = vtanh.f32 %v1755_v32  ;;  %v5291_v36 = vmul.f32 -1.442695, %v1755_v32 }
0x22f1   :  { %6208 = vpow2.f32 %v5291_v36 }
0x22f9   :  { %v6207_v34 = vpop.eup %6206 }
0x22fa   :  { %1768 = vrot.lane.b32.xlu1 %v6207_v34, %s6752_s10 }
0x22fb   :  { %v6209_v37 = vpop.eup %6208 }
0x22fc   :  { %v1759_v38 = vadd.f32 1.0, %v6209_v37 }
0x22fe   :  { %6210 = vrcp.f32 %v1759_v38 }
0x2308   :  { %v6211_v39 = vpop.eup %6210 }
0x2309   :  { %v1766_v43 = vmul.f32 %v6211_v39, %v1764_v42 }
0x236c   :  { %v1769_v40 = vpop.permute.xlu1 %1768 }
0x236d   :  { %v1771_v41 = vmul.f32 %v6211_v39, %v1769_v40 }
0x236f   :  { %1773 = vrot.lane.b32.xlu0 %v1771_v41, %s6753_s6 }
0x23e1   :  { %v1774_v44 = vpop.permute.xlu0 %1773 }
0x23e2   :  { %v1776_v45 = vadd.f32 %v1774_v44, %v1766_v43  ;;  %v2109_v43 = vmax.f32 %v7243_v30, 0.0 }
0x23e4   :  { %6212 = vtanh.f32 %v1776_v45  ;;  %v1870_v58 = vrot.slane %v1776_v45, 6 }
0x23ee   :  { %v6213_v46 = vpop.eup %6212 }
0x23ef   :  { %1779 = vrot.lane.b32.xlu1 %v6213_v46, %s6751_s23 }
0x2461   :  { %v1780_v47 = vpop.permute.xlu1 %1779 }
0x2462   :  { %v1782_v48 = vmul.f32 %v6211_v39, %v1780_v47 }
0x2464   :  { %1784 = vrot.lane.b32.xlu0 %v1782_v48, %s6754_s29 }
0x24d6   :  { %v1785_v49 = vpop.permute.xlu0 %1784 }
0x24d7   :  { %5677 = vmatmul.mubr.msk.f32.vlgmr.msra.gmra.mrb[14].mxu0 %vm1261_vm6, %v1785_v49  ;;  %v2112_v49 = vld [vmem:[#allocation10 + $0x8] sm:$0xff] }
0x24d8   :  { %5996 = vmatpush3.bf16.msra.mxu0 %v7180_v60  ;;  %5690 = vmatprep.mubr.msk.f32.mxu0 %vm6748_vm0, %v6749_v1 }
0x24d9   :  { %5700 = vmatprep.subr.mxu0 %v6749_v1 }
0x25aa   :  { %v1854_v13 = vpop.f32.mrb[14].mxu0 }
0x25ab   :  { %v1859_v50 = vrot.slane %v1854_v13, 6  ;;  %v5678_v51 = vpop.f32.mrb[15].mxu0  ;;  %v7282_v13 = vld [vmem:[#allocation11] sm:$0xff] }
0x25ad   :  { %v1861_v52 = vadd.f32 %v1859_v50, %v7198_v7 }
0x25af   :  { %6214 = vtanh.f32 %v1861_v52  ;;  %v5293_v54 = vmul.f32 -1.442695, %v1861_v52 }
0x25b1   :  { %6216 = vpow2.f32 %v5293_v54 }
0x25b9   :  { %v6215_v53 = vpop.eup %6214 }
0x25ba   :  { %1874 = vrot.lane.b32.xlu1 %v6215_v53, %s6752_s10 }
0x25bb   :  { %v6217_v35 = vpop.eup %6216 }
0x25bc   :  { %v1865_v55 = vadd.f32 1.0, %v6217_v35 }
0x25be   :  { %6218 = vrcp.f32 %v1865_v55 }
0x25c8   :  { %v6219_v60 = vpop.eup %6218 }
0x25c9   :  { %v1872_v59 = vmul.f32 %v6219_v60, %v1870_v58 }
0x262c   :  { %v1875_v56 = vpop.permute.xlu1 %1874 }
0x262d   :  { %v1877_v57 = vmul.f32 %v6219_v60, %v1875_v56  ;;  %v5298_v56 = vld [vmem:[#allocation13] ss:$0 sm:$0xff] }
0x262f   :  { %1879 = vrot.lane.b32.xlu0 %v1877_v57, %s6753_s6 }
0x26a1   :  { %v1880_v8 = vpop.permute.xlu0 %1879 }
0x26a2   :  { %v1882_v61 = vadd.f32 %v1880_v8, %v1872_v59 }
0x26a4   :  { %6220 = vtanh.f32 %v1882_v61  ;;  %v1977_v21 = vrot.slane %v1882_v61, 6 }
0x26ae   :  { %v6221_v62 = vpop.eup %6220 }
0x26af   :  { %1885 = vrot.lane.b32.xlu1 %v6221_v62, %s6751_s23 }
0x2721   :  { %v1886_v63 = vpop.permute.xlu1 %1885 }
0x2722   :  { %v1888_v2 = vmul.f32 %v6219_v60, %v1886_v63 }
0x2724   :  { %v1890_v10 = vrot.slane %v1888_v2, 2  ;;  %v2106_v27 = vsel %vm1153_vm4, %v1782_v48, %v1888_v2  ;;  %v2111_v48 = vld [vmem:[#allocation10] sm:$0xff] }
0x2725   :  { %v5997_v50 = vpack.c.bf16 %v2112_v49, %v2111_v48 }
0x2726   :  { %1891 = vrot.lane.b32.xlu0 %v1890_v10, %s6754_s29 }
0x2727   :  { %5998 = vmatprep.subr.bf16.mxu1 %v5997_v50 }
0x2798   :  { %v1892_v3 = vpop.permute.xlu0 %1891 }
0x2799   :  { %5684 = vmatmul.mubr.msk.f32.vlgmr.msra.gmra.mrb[16].mxu1 %vm1261_vm6, %v1892_v3 }
0x279a   :  { %6000 = vmatpush3.bf16.msra.mxu1 %v5997_v50 }
0x279b   :  { %5705 = vmatprep.subr.mxu1 %v6749_v1 }
0x286c   :  { %v1961_v4 = vpop.f32.mrb[16].mxu1 }
0x286d   :  { %v1966_v5 = vrot.slane %v1961_v4, 4  ;;  %v5685_v6 = vpop.f32.mrb[17].mxu1 }
0x286f   :  { %v1968_v9 = vadd.f32 %v1966_v5, %v7198_v7 }
0x2871   :  { %6222 = vtanh.f32 %v1968_v9  ;;  %v5295_v14 = vmul.f32 -1.442695, %v1968_v9 }
0x2873   :  { %6224 = vpow2.f32 %v5295_v14 }
0x287b   :  { %v6223_v12 = vpop.eup %6222 }
0x287c   :  { %1981 = vrot.lane.b32.xlu1 %v6223_v12, %s6752_s10 }
0x287d   :  { %v6225_v16 = vpop.eup %6224 }
0x287e   :  { %v1972_v17 = vadd.f32 1.0, %v6225_v16 }
0x2880   :  { %6226 = vrcp.f32 %v1972_v17 }
0x288a   :  { %v6227_v18 = vpop.eup %6226 }
0x288b   :  { %v1979_v22 = vmul.f32 %v6227_v18, %v1977_v21 }
0x28ee   :  { %v1982_v19 = vpop.permute.xlu1 %1981 }
0x28ef   :  { %v1984_v20 = vmul.f32 %v6227_v18, %v1982_v19 }
0x28f1   :  { %1986 = vrot.lane.b32.xlu0 %v1984_v20, %s6753_s6 }
0x2963   :  { %v1987_v23 = vpop.permute.xlu0 %1986 }
0x2964   :  { %v1989_v24 = vadd.f32 %v1987_v23, %v1979_v22 }
0x2966   :  { %6228 = vtanh.f32 %v1989_v24  ;;  %v2084_v44 = vrot.slane %v1989_v24, 6 }
0x2970   :  { %v6229_v25 = vpop.eup %6228 }
0x2971   :  { %1992 = vrot.lane.b32.xlu1 %v6229_v25, %s6751_s23 }
0x29e3   :  { %v1993_v26 = vpop.permute.xlu1 %1992 }
0x29e4   :  { %v1995_v11 = vmul.f32 %v6227_v18, %v1993_v26 }
0x29e6   :  { %v1997_v28 = vrot.slane %v1995_v11, 4  ;;  %v2107_v29 = vsel %vm231_vm1, %v2106_v27, %v1995_v11 }
0x29e8   :  { %1998 = vrot.lane.b32.xlu0 %v1997_v28, %s6754_s29 }
0x2a5a   :  { %v1999_v31 = vpop.permute.xlu0 %1998 }
0x2a5b   :  { %5691 = vmatmul.mubr.msk.f32.vlgmr.msra.gmra.mrb[16].mxu0 %vm1261_vm6, %v1999_v31 }
0x2a5c   :  { %5702 = vmatprep.mubr.msk.f32.mxu0 %vm6748_vm0, %v6749_v1  ;;  %5701 = vmatpush3.msra.mxu0 %v7282_v13 }
0x2a5d   :  { %5710 = vmatprep.subr.mxu0 %v6749_v1 }
0x2a5f   :  { %5703 = vmatmul.mubr.f32.vlgmr.msra.gmra.mrb[18].mxu0 %v6749_v1 }
0x2a60   :  { %5711 = vmatpush3.msra.mxu0 %v7282_v13  ;;  %5712 = vmatprep.mubr.msk.f32.mxu0 %vm6748_vm0, %v6749_v1 }
0x2a61   :  { %5720 = vmatprep.subr.mxu0 %v6749_v1 }
0x2b2e   :  { %v2068_v15 = vpop.f32.mrb[16].mxu0 }
0x2b2f   :  { %v2073_v32 = vrot.slane %v2068_v15, 2  ;;  %v5692_v33 = vpop.f32.mrb[17].mxu0 }
0x2b31   :  { %v2075_v34 = vadd.f32 %v2073_v32, %v7198_v7 }
0x2b32   :  { %v2275_v55 = vpop.f32.mrb[18].mxu0 }
0x2b33   :  { %6230 = vtanh.f32 %v2075_v34  ;;  %v5297_v37 = vmul.f32 -1.442695, %v2075_v34  ;;  %v5704_v60 = vpop.f32.mrb[19].mxu0 }
0x2b35   :  { %6232 = vpow2.f32 %v5297_v37 }
0x2b3d   :  { %v6231_v36 = vpop.eup %6230 }
0x2b3e   :  { %2088 = vrot.lane.b32.xlu1 %v6231_v36, %s6752_s10 }
0x2b3f   :  { %v6233_v38 = vpop.eup %6232 }
0x2b40   :  { %v2079_v39 = vadd.f32 1.0, %v6233_v38 }
0x2b42   :  { %6234 = vrcp.f32 %v2079_v39 }
0x2b4c   :  { %v6235_v40 = vpop.eup %6234 }
0x2b4d   :  { %v2086_v7 = vmul.f32 %v6235_v40, %v2084_v44 }
0x2bb0   :  { %v2089_v41 = vpop.permute.xlu1 %2088 }
0x2bb1   :  { %v2091_v42 = vmul.f32 %v6235_v40, %v2089_v41 }
0x2bb3   :  { %2093 = vrot.lane.b32.xlu0 %v2091_v42, %s6753_s6 }
0x2bb7   :  { %2123 = vrot.lane.b32.xlu0 %v2109_v43, %s6754_s29 }
0x2c25   :  { %v2094_v45 = vpop.permute.xlu0 %2093 }
0x2c26   :  { %v2096_v46 = vadd.f32 %v2094_v45, %v2086_v7 }
0x2c28   :  { %6236 = vtanh.f32 %v2096_v46 }
0x2c29   :  { %v2124_v47 = vpop.permute.xlu0 %2123 }
0x2c2a   :  { %5697 = vmatprep.mubr.msk.f32.mxu1 %vm1261_vm6, %v2124_v47 }
0x2c32   :  { %v6237_v30 = vpop.eup %6236 }
0x2c33   :  { %2099 = vrot.lane.b32.xlu1 %v6237_v30, %s6751_s23 }
0x2ca5   :  { %v2100_v51 = vpop.permute.xlu1 %2099 }
0x2ca6   :  { %v2102_v52 = vmul.f32 %v6235_v40, %v2100_v51 }
0x2ca8   :  { %v2108_v53 = vsel %vm1156_vm5, %v2107_v29, %v2102_v52 }
0x2ca9   :  { %v2110_v54 = vmax.f32 %v2108_v53, 0.0 }
0x2cab   :  { %2125 = vrot.lane.b32.xlu1 %v2110_v54, %s6754_s29 }
0x2d1d   :  { %v2126_v35 = vpop.permute.xlu1 %2125 }
0x2d1e   :  { %5698 = vmatmul.mubr.msk.f32.vlgmr.msra.gmra.mrb[18].mxu1 %vm1261_vm6, %v2126_v35 }
0x2d1f   :  { %5706 = vmatpush3.msra.mxu1 %v7282_v13  ;;  %5707 = vmatprep.mubr.msk.f32.mxu1 %vm6748_vm0, %v6749_v1 }
0x2d20   :  { %5715 = vmatprep.subr.mxu1 %v6749_v1 }
0x2df1   :  { %v5699_v57 = vpop.f32.mrb[18].mxu1 }
0x2df2   :  { %v7300_v58 = vadd.f32 %v5699_v57, %v5298_v56  ;;  %v2197_v59 = vpop.f32.mrb[19].mxu1 }
0x2df3   :  { %v7302_v8 = vadd.f32 %v5298_v56, %v2197_v59 }
0x2df5   :  { %v2279_v61 = vadd.f32 %v2275_v55, %v7302_v8 }
0x2df7   :  { %6238 = vtanh.f32 %v2279_v61  ;;  %v5301_v63 = vmul.f32 -1.442695, %v2279_v61 }
0x2df9   :  { %6240 = vpow2.f32 %v5301_v63 }
0x2e01   :  { %v6239_v62 = vpop.eup %6238 }
0x2e02   :  { %2289 = vrot.lane.b32.xlu0 %v6239_v62, %s6755_s9 }
0x2e03   :  { %v6241_v2 = vpop.eup %6240 }
0x2e04   :  { %v2283_v10 = vadd.f32 1.0, %v6241_v2 }
0x2e06   :  { %6242 = vrcp.f32 %v2283_v10 }
0x2e10   :  { %v6243_v3 = vpop.eup %6242 }
0x2e11   :  { %v2287_v6 = vmul.f32 0.0, %v6243_v3 }
0x2e74   :  { %v2290_v4 = vpop.permute.xlu0 %2289 }
0x2e75   :  { %v2292_v5 = vmul.f32 %v6243_v3, %v2290_v4 }
0x2e77   :  { %2294 = vrot.lane.b32.xlu1 %v2292_v5, %s6742_s1 }
0x2ee9   :  { %v2295_v9 = vpop.permute.xlu1 %2294 }
0x2eea   :  { %v2297_v12 = vadd.f32 %v2295_v9, %v2287_v6 }
0x2eec   :  { %6244 = vtanh.f32 %v2297_v12  ;;  %v2391_v29 = vrot.slane %v2297_v12, 6 }
0x2ef6   :  { %v6245_v14 = vpop.eup %6244 }
0x2ef7   :  { %2300 = vrot.lane.b32.xlu0 %v6245_v14, %s6753_s6 }
0x2f69   :  { %v2301_v16 = vpop.permute.xlu0 %2300 }
0x2f6a   :  { %v2303_v17 = vmul.f32 %v6243_v3, %v2301_v16 }
0x2f6c   :  { %2305 = vrot.lane.b32.xlu1 %v2303_v17, %s6756_s30 }
0x2fde   :  { %v2306_v18 = vpop.permute.xlu1 %2305 }
0x2fdf   :  { %5708 = vmatmul.mubr.msk.f32.vlgmr.msra.gmra.mrb[20].mxu1 %vm2206_vm7, %v2306_v18 }
0x2fe0   :  { %5716 = vmatpush3.msra.mxu1 %v7282_v13  ;;  %5717 = vmatprep.mubr.msk.f32.mxu1 %vm6748_vm0, %v6749_v1 }
0x2fe1   :  { %5725 = vmatprep.subr.mxu1 %v6749_v1 }
0x30b2   :  { %v2375_v19 = vpop.f32.mrb[20].mxu1 }
0x30b3   :  { %v2380_v20 = vrot.slane %v2375_v19, 6  ;;  %v5709_v21 = vpop.f32.mrb[21].mxu1 }
0x30b5   :  { %v2382_v22 = vadd.f32 %v2380_v20, %v7302_v8 }
0x30b7   :  { %6246 = vtanh.f32 %v2382_v22  ;;  %v5303_v24 = vmul.f32 -1.442695, %v2382_v22 }
0x30b9   :  { %6248 = vpow2.f32 %v5303_v24 }
0x30c1   :  { %v6247_v23 = vpop.eup %6246 }
0x30c2   :  { %2395 = vrot.lane.b32.xlu0 %v6247_v23, %s6755_s9 }
0x30c3   :  { %v6249_v25 = vpop.eup %6248 }
0x30c4   :  { %v2386_v26 = vadd.f32 1.0, %v6249_v25 }
0x30c6   :  { %6250 = vrcp.f32 %v2386_v26 }
0x30d0   :  { %v6251_v11 = vpop.eup %6250 }
0x30d1   :  { %v2393_v31 = vmul.f32 %v6251_v11, %v2391_v29 }
0x3134   :  { %v2396_v27 = vpop.permute.xlu0 %2395 }
0x3135   :  { %v2398_v28 = vmul.f32 %v6251_v11, %v2396_v27 }
0x3137   :  { %2400 = vrot.lane.b32.xlu1 %v2398_v28, %s6742_s1 }
0x31a9   :  { %v2401_v15 = vpop.permute.xlu1 %2400 }
0x31aa   :  { %v2403_v32 = vadd.f32 %v2401_v15, %v2393_v31 }
0x31ac   :  { %6252 = vtanh.f32 %v2403_v32  ;;  %v2498_v49 = vrot.slane %v2403_v32, 6 }
0x31b6   :  { %v6253_v33 = vpop.eup %6252 }
0x31b7   :  { %2406 = vrot.lane.b32.xlu0 %v6253_v33, %s6753_s6 }
0x3229   :  { %v2407_v34 = vpop.permute.xlu0 %2406 }
0x322a   :  { %v2409_v36 = vmul.f32 %v6251_v11, %v2407_v34 }
0x322c   :  { %v2411_v37 = vrot.slane %v2409_v36, 2 }
0x322e   :  { %2412 = vrot.lane.b32.xlu1 %v2411_v37, %s6756_s30 }
0x32a0   :  { %v2413_v38 = vpop.permute.xlu1 %2412 }
0x32a1   :  { %5713 = vmatmul.mubr.msk.f32.vlgmr.msra.gmra.mrb[20].mxu0 %vm2206_vm7, %v2413_v38 }
0x32a2   :  { %5721 = vmatpush3.msra.mxu0 %v7282_v13  ;;  %5722 = vmatprep.mubr.msk.f32.mxu0 %vm6748_vm0, %v6749_v1 }
0x32a3   :  { %5730 = vmatprep.subr.mxu0 %v6749_v1 }
0x3374   :  { %v2482_v39 = vpop.f32.mrb[20].mxu0 }
0x3375   :  { %v2487_v40 = vrot.slane %v2482_v39, 4  ;;  %v5714_v41 = vpop.f32.mrb[21].mxu0 }
0x3377   :  { %v2489_v42 = vadd.f32 %v2487_v40, %v7302_v8 }
0x3379   :  { %6254 = vtanh.f32 %v2489_v42  ;;  %v5305_v44 = vmul.f32 -1.442695, %v2489_v42 }
0x337b   :  { %6256 = vpow2.f32 %v5305_v44 }
0x3383   :  { %v6255_v43 = vpop.eup %6254 }
0x3384   :  { %2502 = vrot.lane.b32.xlu0 %v6255_v43, %s6755_s9 }
0x3385   :  { %v6257_v7 = vpop.eup %6256 }
0x3386   :  { %v2493_v45 = vadd.f32 1.0, %v6257_v7 }
0x3388   :  { %6258 = vrcp.f32 %v2493_v45 }
0x3392   :  { %v6259_v46 = vpop.eup %6258 }
0x3393   :  { %v2500_v50 = vmul.f32 %v6259_v46, %v2498_v49 }
0x33f6   :  { %v2503_v47 = vpop.permute.xlu0 %2502 }
0x33f7   :  { %v2505_v48 = vmul.f32 %v6259_v46, %v2503_v47 }
0x33f9   :  { %2507 = vrot.lane.b32.xlu1 %v2505_v48, %s6742_s1 }
0x346b   :  { %v2508_v30 = vpop.permute.xlu1 %2507 }
0x346c   :  { %v2510_v51 = vadd.f32 %v2508_v30, %v2500_v50 }
0x346e   :  { %6260 = vtanh.f32 %v2510_v51  ;;  %v2605_v5 = vrot.slane %v2510_v51, 6 }
0x3478   :  { %v6261_v52 = vpop.eup %6260 }
0x3479   :  { %2513 = vrot.lane.b32.xlu0 %v6261_v52, %s6753_s6 }
0x34eb   :  { %v2514_v53 = vpop.permute.xlu0 %2513 }
0x34ec   :  { %v2516_v54 = vmul.f32 %v6259_v46, %v2514_v53 }
0x34ee   :  { %v2518_v35 = vrot.slane %v2516_v54, 4 }
0x34f0   :  { %2519 = vrot.lane.b32.xlu1 %v2518_v35, %s6756_s30 }
0x3562   :  { %v2520_v55 = vpop.permute.xlu1 %2519 }
0x3563   :  { %5718 = vmatmul.mubr.msk.f32.vlgmr.msra.gmra.mrb[22].mxu1 %vm2206_vm7, %v2520_v55 }
0x3564   :  { %5726 = vmatpush3.msra.mxu1 %v7282_v13  ;;  %5727 = vmatprep.mubr.msk.f32.mxu1 %vm6748_vm0, %v6749_v1 }
0x3565   :  { %5735 = vmatprep.subr.mxu1 %v6749_v1 }
0x3636   :  { %v2589_v60 = vpop.f32.mrb[22].mxu1 }
0x3637   :  { %v2594_v56 = vrot.slane %v2589_v60, 2  ;;  %v5719_v57 = vpop.f32.mrb[23].mxu1 }
0x3639   :  { %v2596_v59 = vadd.f32 %v2594_v56, %v7302_v8 }
0x363b   :  { %6262 = vtanh.f32 %v2596_v59  ;;  %v5307_v62 = vmul.f32 -1.442695, %v2596_v59 }
0x363d   :  { %6264 = vpow2.f32 %v5307_v62 }
0x3645   :  { %v6263_v61 = vpop.eup %6262 }
0x3646   :  { %2609 = vrot.lane.b32.xlu0 %v6263_v61, %s6755_s9 }
0x3647   :  { %v6265_v63 = vpop.eup %6264 }
0x3648   :  { %v2600_v2 = vadd.f32 1.0, %v6265_v63 }
0x364a   :  { %6266 = vrcp.f32 %v2600_v2 }
0x3654   :  { %v6267_v10 = vpop.eup %6266 }
0x3655   :  { %v2607_v6 = vmul.f32 %v6267_v10, %v2605_v5 }
0x36b8   :  { %v2610_v3 = vpop.permute.xlu0 %2609 }
0x36b9   :  { %v2612_v4 = vmul.f32 %v6267_v10, %v2610_v3 }
0x36bb   :  { %2614 = vrot.lane.b32.xlu1 %v2612_v4, %s6742_s1 }
0x372d   :  { %v2615_v9 = vpop.permute.xlu1 %2614 }
0x372e   :  { %v2617_v12 = vadd.f32 %v2615_v9, %v2607_v6 }
0x3730   :  { %6268 = vtanh.f32 %v2617_v12  ;;  %v2709_v28 = vrot.slane %v2617_v12, 6 }
0x373a   :  { %v6269_v8 = vpop.eup %6268 }
0x373b   :  { %2620 = vrot.lane.b32.xlu0 %v6269_v8, %s6753_s6 }
0x37ad   :  { %v2621_v14 = vpop.permute.xlu0 %2620 }
0x37ae   :  { %v2623_v16 = vmul.f32 %v6267_v10, %v2621_v14 }
0x37b0   :  { %v2625_v17 = vrot.slane %v2623_v16, 6 }
0x37b2   :  { %2626 = vrot.lane.b32.xlu1 %v2625_v17, %s6756_s30 }
0x3824   :  { %v2627_v18 = vpop.permute.xlu1 %2626 }
0x3825   :  { %5723 = vmatmul.mubr.msk.f32.vlgmr.msra.gmra.mrb[22].mxu0 %vm2206_vm7, %v2627_v18 }
0x3826   :  { %5731 = vmatpush3.msra.mxu0 %v7282_v13  ;;  %5732 = vmatprep.mubr.msk.f32.mxu0 %vm6748_vm0, %v6749_v1 }
0x3827   :  { %5740 = vmatprep.subr.mxu0 %v6749_v1 }
0x38f8   :  { %v2696_v19 = vpop.f32.mrb[22].mxu0 }
0x38f9   :  { %v2700_v20 = vadd.f32 %v2696_v19, %v7300_v58  ;;  %v5724_v21 = vpop.f32.mrb[23].mxu0 }
0x38fb   :  { %6270 = vtanh.f32 %v2700_v20  ;;  %v5309_v23 = vmul.f32 -1.442695, %v2700_v20 }
0x38fd   :  { %6272 = vpow2.f32 %v5309_v23 }
0x3905   :  { %v6271_v22 = vpop.eup %6270 }
0x3906   :  { %2713 = vrot.lane.b32.xlu0 %v6271_v22, %s6755_s9 }
0x3907   :  { %v6273_v24 = vpop.eup %6272 }
0x3908   :  { %v2704_v25 = vadd.f32 1.0, %v6273_v24 }
0x390a   :  { %6274 = vrcp.f32 %v2704_v25 }
0x3914   :  { %v6275_v26 = vpop.eup %6274 }
0x3915   :  { %v2711_v29 = vmul.f32 %v6275_v26, %v2709_v28 }
0x3978   :  { %v2714_v11 = vpop.permute.xlu0 %2713 }
0x3979   :  { %v2716_v27 = vmul.f32 %v6275_v26, %v2714_v11 }
0x397b   :  { %2718 = vrot.lane.b32.xlu1 %v2716_v27, %s6742_s1 }
0x39ed   :  { %v2719_v31 = vpop.permute.xlu1 %2718 }
0x39ee   :  { %v2721_v15 = vadd.f32 %v2719_v31, %v2711_v29  ;;  %v3048_v31 = vld [vmem:[#allocation14] sm:$0xff] }
0x39f0   :  { %6276 = vtanh.f32 %v2721_v15  ;;  %v2815_v46 = vrot.slane %v2721_v15, 6 }
0x39fa   :  { %v6277_v32 = vpop.eup %6276 }
0x39fb   :  { %2724 = vrot.lane.b32.xlu0 %v6277_v32, %s6753_s6 }
0x3a6d   :  { %v2725_v33 = vpop.permute.xlu0 %2724 }
0x3a6e   :  { %v2727_v34 = vmul.f32 %v6275_v26, %v2725_v33 }
0x3a70   :  { %2729 = vrot.lane.b32.xlu1 %v2727_v34, %s6756_s30 }
0x3ae2   :  { %v2730_v36 = vpop.permute.xlu1 %2729 }
0x3ae3   :  { %5728 = vmatmul.mubr.msk.f32.vlgmr.msra.gmra.mrb[24].mxu1 %vm2206_vm7, %v2730_v36 }
0x3ae4   :  { %5736 = vmatpush3.msra.mxu1 %v7282_v13  ;;  %5737 = vmatprep.mubr.msk.f32.mxu1 %vm6748_vm0, %v6749_v1 }
0x3ae5   :  { %5745 = vmatprep.subr.mxu1 %v6749_v1 }
0x3bb6   :  { %v2799_v37 = vpop.f32.mrb[24].mxu1 }
0x3bb7   :  { %v2804_v38 = vrot.slane %v2799_v37, 6  ;;  %v5729_v39 = vpop.f32.mrb[25].mxu1  ;;  %v3242_v37 = vld [vmem:[%s7712_s15] sm:$0xff] }
0x3bb8   :  { %v3244_v39 = vld [vmem:[%s7713_s16 + $0x8] sm:$0xff] }
0x3bb9   :  { %v2806_v40 = vadd.f32 %v2804_v38, %v7300_v58  ;;  %v3243_v38 = vld [vmem:[%s7713_s16] sm:$0xff] }
0x3bbb   :  { %6278 = vtanh.f32 %v2806_v40  ;;  %v5311_v42 = vmul.f32 -1.442695, %v2806_v40  ;;  %v7390_v40 = vpack.c.bf16 %v3244_v39, %v3243_v38 }
0x3bbd   :  { %6280 = vpow2.f32 %v5311_v42  ;;  %v5318_v42 = vld [vmem:[#allocation19] ss:$0 sm:$0xff] }
0x3bc5   :  { %v6279_v41 = vpop.eup %6278 }
0x3bc6   :  { %2819 = vrot.lane.b32.xlu0 %v6279_v41, %s6755_s9  ;;  %v5316_v41 = vld [vmem:[#allocation16] ss:$0 sm:$0xff] }
0x3bc7   :  { %v6281_v43 = vpop.eup %6280 }
0x3bc8   :  { %v2810_v44 = vadd.f32 1.0, %v6281_v43 }
0x3bca   :  { %6282 = vrcp.f32 %v2810_v44 }
0x3bd4   :  { %v6283_v13 = vpop.eup %6282 }
0x3bd5   :  { %v2817_v47 = vmul.f32 %v6283_v13, %v2815_v46 }
0x3c38   :  { %v2820_v7 = vpop.permute.xlu0 %2819 }
0x3c39   :  { %v2822_v45 = vmul.f32 %v6283_v13, %v2820_v7 }
0x3c3b   :  { %2824 = vrot.lane.b32.xlu1 %v2822_v45, %s6742_s1 }
0x3cad   :  { %v2825_v48 = vpop.permute.xlu1 %2824 }
0x3cae   :  { %v2827_v49 = vadd.f32 %v2825_v48, %v2817_v47 }
0x3cb0   :  { %6284 = vtanh.f32 %v2827_v49  ;;  %v2922_v10 = vrot.slane %v2827_v49, 6 }
0x3cba   :  { %v6285_v50 = vpop.eup %6284 }
0x3cbb   :  { %2830 = vrot.lane.b32.xlu0 %v6285_v50, %s6753_s6 }
0x3d2d   :  { %v2831_v30 = vpop.permute.xlu0 %2830 }
0x3d2e   :  { %v2833_v51 = vmul.f32 %v6283_v13, %v2831_v30 }
0x3d30   :  { %v2835_v52 = vrot.slane %v2833_v51, 2 }
0x3d32   :  { %2836 = vrot.lane.b32.xlu1 %v2835_v52, %s6756_s30 }
0x3da4   :  { %v2837_v53 = vpop.permute.xlu1 %2836 }
0x3da5   :  { %5733 = vmatmul.mubr.msk.f32.vlgmr.msra.gmra.mrb[24].mxu0 %vm2206_vm7, %v2837_v53 }
0x3da6   :  { %5742 = vmatprep.mubr.msk.f32.mxu0 %vm6748_vm0, %v6749_v1  ;;  %5741 = vmatpush3.msra.mxu0 %v3048_v31 }
0x3da7   :  { %5750 = vmatprep.subr.mxu0 %v3242_v37 }
0x3e78   :  { %v2906_v54 = vpop.f32.mrb[24].mxu0 }
0x3e79   :  { %v2911_v35 = vrot.slane %v2906_v54, 4  ;;  %v5734_v55 = vpop.f32.mrb[25].mxu0  ;;  %v3226_v54 = vld [vmem:[%s7754_s5] sm:$0xff] }
0x3e7b   :  { %v2913_v60 = vadd.f32 %v2911_v35, %v7300_v58  ;;  %v3227_v35 = vld [vmem:[%s7754_s5 + $0x8] sm:$0xff] }
0x3e7d   :  { %6286 = vtanh.f32 %v2913_v60  ;;  %v5313_v57 = vmul.f32 -1.442695, %v2913_v60 }
0x3e7f   :  { %6288 = vpow2.f32 %v5313_v57 }
0x3e87   :  { %v6287_v56 = vpop.eup %6286 }
0x3e88   :  { %2926 = vrot.lane.b32.xlu0 %v6287_v56, %s6755_s9 }
0x3e89   :  { %v6289_v59 = vpop.eup %6288 }
0x3e8a   :  { %v2917_v61 = vadd.f32 1.0, %v6289_v59 }
0x3e8c   :  { %6290 = vrcp.f32 %v2917_v61 }
0x3e96   :  { %v6291_v62 = vpop.eup %6290 }
0x3e97   :  { %v2924_v3 = vmul.f32 %v6291_v62, %v2922_v10 }
0x3efa   :  { %v2927_v63 = vpop.permute.xlu0 %2926 }
0x3efb   :  { %v2929_v2 = vmul.f32 %v6291_v62, %v2927_v63 }
0x3efd   :  { %2931 = vrot.lane.b32.xlu1 %v2929_v2, %s6742_s1 }
0x3f6f   :  { %v2932_v4 = vpop.permute.xlu1 %2931 }
0x3f70   :  { %v2934_v5 = vadd.f32 %v2932_v4, %v2924_v3 }
0x3f72   :  { %6292 = vtanh.f32 %v2934_v5  ;;  %v3029_v11 = vrot.slane %v2934_v5, 6 }
0x3f7c   :  { %v6293_v6 = vpop.eup %6292 }
0x3f7d   :  { %2937 = vrot.lane.b32.xlu0 %v6293_v6, %s6753_s6  ;;  %v5320_v6 = vld [vmem:[%s7714_s17] ss:$0 sm:$0xff] }
0x3fef   :  { %v2938_v9 = vpop.permute.xlu0 %2937 }
0x3ff0   :  { %v2940_v12 = vmul.f32 %v6291_v62, %v2938_v9 }
0x3ff2   :  { %v2942_v8 = vrot.slane %v2940_v12, 4 }
0x3ff4   :  { %2943 = vrot.lane.b32.xlu1 %v2942_v8, %s6756_s30 }
0x4066   :  { %v2944_v14 = vpop.permute.xlu1 %2943 }
0x4067   :  { %5738 = vmatmul.mubr.msk.f32.vlgmr.msra.gmra.mrb[26].mxu1 %vm2206_vm7, %v2944_v14 }
0x4068   :  { %5747 = vmatprep.mubr.msk.f32.mxu1 %vm6748_vm0, %v6749_v1 }
0x413a   :  { %v3013_v16 = vpop.f32.mrb[26].mxu1 }
0x413b   :  { %v3018_v17 = vrot.slane %v3013_v16, 2  ;;  %v5739_v18 = vpop.f32.mrb[27].mxu1 }
0x413d   :  { %v3020_v19 = vadd.f32 %v3018_v17, %v7300_v58  ;;  %v3132_v58 = vld [vmem:[#allocation17] sm:$0xff] }
0x413e   :  { %5746 = vmatpush3.msra.mxu1 %v3132_v58 }
0x413f   :  { %6294 = vtanh.f32 %v3020_v19  ;;  %v5315_v21 = vmul.f32 -1.442695, %v3020_v19  ;;  %6001 = vmatprep.subr.bf16.mxu1 %v6747_v0 }
0x4141   :  { %6296 = vpow2.f32 %v5315_v21 }
0x4149   :  { %v6295_v20 = vpop.eup %6294 }
0x414a   :  { %3033 = vrot.lane.b32.xlu0 %v6295_v20, %s6755_s9 }
0x414b   :  { %v6297_v22 = vpop.eup %6296 }
0x414c   :  { %v3024_v23 = vadd.f32 1.0, %v6297_v22 }
0x414e   :  { %6298 = vrcp.f32 %v3024_v23 }
0x4158   :  { %v6299_v24 = vpop.eup %6298 }
0x4159   :  { %v3031_v27 = vmul.f32 %v6299_v24, %v3029_v11 }
0x41bc   :  { %v3034_v25 = vpop.permute.xlu0 %3033 }
0x41bd   :  { %v3036_v26 = vmul.f32 %v6299_v24, %v3034_v25 }
0x41bf   :  { %3038 = vrot.lane.b32.xlu1 %v3036_v26, %s6742_s1 }
0x4231   :  { %v3039_v28 = vpop.permute.xlu1 %3038 }
0x4232   :  { %v3041_v29 = vadd.f32 %v3039_v28, %v3031_v27 }
0x4234   :  { %6300 = vtanh.f32 %v3041_v29 }
0x423e   :  { %v6301_v15 = vpop.eup %6300 }
0x423f   :  { %3044 = vrot.lane.b32.xlu0 %v6301_v15, %s6753_s6 }
0x42b1   :  { %v3045_v32 = vpop.permute.xlu0 %3044 }
0x42b2   :  { %v3047_v33 = vmul.f32 %v6299_v24, %v3045_v32 }
0x42b4   :  { %v3057_v34 = vrot.slane %v3047_v33, 6 }
0x42b6   :  { %3058 = vrot.lane.b32.xlu1 %v3057_v34, %s6756_s30 }
0x4328   :  { %v3059_v36 = vpop.permute.xlu1 %3058 }
0x4329   :  { %5743 = vmatmul.mubr.msk.f32.vlgmr.msra.gmra.mrb[26].mxu0 %vm2206_vm7, %v3059_v36  ;;  %5748 = vmatmul.mubr.msk.f32.vlgmr.msra.gmra.mrb[28].mxu1 %vm2206_vm7, %v3059_v36 }
0x432a   :  { %5759 = vmatprep.mubr.msk.f32.mxu1 %vm6748_vm0, %v6749_v1  ;;  %5751 = vmatpush3.msra.mxu0 %v3242_v37 }
0x432b   :  { %6004 = vmatprep.subr.bf16.mxu0 %v6747_v0  ;;  %6003 = vmatpush3.bf16.msra.mxu1 %v7390_v40 }
0x432c   :  { %6007 = vmatprep.subr.bf16.mxu1 %v6747_v0 }
0x432e   :  { %5760 = vmatmul.mubr.f32.vlgmr.msra.gmra.mrb[30].mxu1 %v6749_v1 }
0x432f   :  { %6009 = vmatpush3.bf16.msra.mxu1 %v7390_v40  ;;  %5773 = vmatprep.mubr.msk.f32.mxu1 %vm6748_vm0, %v6749_v1 }
0x4330   :  { %6013 = vmatprep.subr.bf16.mxu1 %v6747_v0 }
0x43fc   :  { %v3128_v43 = vpop.f32.mrb[26].mxu0  ;;  %v3206_v44 = vpop.f32.mrb[28].mxu1 }
0x43fd   :  { %v3129_v13 = vadd.f32 %v5316_v41, %v3128_v43  ;;  %v3207_v7 = vadd.f32 %v5318_v42, %v3206_v44  ;;  %v5744_v45 = vpop.f32.mrb[27].mxu0  ;;  %v5749_v46 = vpop.f32.mrb[29].mxu1 }
0x43ff   :  { %v3213_v47 = vmul.f32 0.5, %v3207_v7  ;;  %3211 = vst.msk [vmem:[#allocation20] sm:$0x3] %vm3210_vm8, %v3129_v13  ;;  %3212 = vst.msk [vmem:[#allocation21] sm:$0x3] %vm3210_vm8, %v3207_v7  ;;  %v3217_v49 = vrot.slane %v3129_v13, 6 }
0x4400   :  { %v3219_v30 = vrot.slane %v3129_v13, 4  ;;  %v3221_v59 = vrot.slane %v3129_v13, 2 }
0x4401   :  { %v3214_v48 = vmul.f32 1.442695, %v3213_v47  ;;  %v3223_v51 = vsel %vm1153_vm4, %v3129_v13, %v3217_v49  ;;  %v3399_v4 = vpop.f32.mrb[30].mxu1 }
0x4402   :  { %v3224_v56 = vsel %vm231_vm1, %v3223_v51, %v3219_v30  ;;  %v5761_v5 = vpop.f32.mrb[31].mxu1 }
0x4403   :  { %6302 = vpow2.f32 %v3214_v48  ;;  %v3225_v2 = vsel %vm1156_vm5, %v3224_v56, %v3221_v59 }
0x440d   :  { %v6303_v50 = vpop.eup %6302 }
0x440e   :  { %v3229_v52 = vrot.slane %v6303_v50, 6  ;;  %v3231_v53 = vrot.slane %v6303_v50, 4  ;;  %v3233_v55 = vrot.slane %v6303_v50, 2 }
0x4410   :  { %v3235_v60 = vsel %vm1153_vm4, %v6303_v50, %v3229_v52 }
0x4411   :  { %v3236_v57 = vsel %vm231_vm1, %v3235_v60, %v3231_v53 }
0x4412   :  { %v3237_v61 = vsel %vm1156_vm5, %v3236_v57, %v3233_v55 }
0x4413   :  { %v3238_v62 = vmul.f32 %v3237_v61, %v3226_v54  ;;  %v3239_v63 = vmul.f32 %v3237_v61, %v3227_v35 }
0x4415   :  { %v3240_v10 = vadd.f32 %v3238_v62, %v3225_v2  ;;  %v3241_v3 = vadd.f32 %v3239_v63, %v3225_v2 }
0x4417   :  { %5752 = vmatprep.mubr.msk.f32.mxu0 %vm2206_vm7, %v3240_v10 }
0x4418   :  { %5753 = vmatmul.mubr.msk.f32.vlgmr.msra.gmra.mrb[28].mxu0 %vm2206_vm7, %v3241_v3 }
0x4419   :  { %6006 = vmatpush3.bf16.msra.mxu0 %v7390_v40  ;;  %5766 = vmatprep.mubr.msk.f32.mxu0 %vm6748_vm0, %v6749_v1 }
0x441a   :  { %6010 = vmatprep.subr.bf16.mxu0 %v6747_v0 }
0x44eb   :  { %v5754_v9 = vpop.f32.mrb[28].mxu0 }
0x44ec   :  { %v7420_v12 = vadd.f32 %v5754_v9, %v5320_v6  ;;  %v3324_v8 = vpop.f32.mrb[29].mxu0 }
0x44ed   :  { %v7422_v14 = vadd.f32 %v5320_v6, %v3324_v8 }
0x44ef   :  { %v3403_v16 = vadd.f32 %v3399_v4, %v7422_v14 }
0x44f1   :  { %6304 = vtanh.f32 %v3403_v16  ;;  %v5323_v18 = vmul.f32 -1.442695, %v3403_v16 }
0x44f3   :  { %6306 = vpow2.f32 %v5323_v18 }
0x44fb   :  { %v6305_v17 = vpop.eup %6304 }
0x44fc   :  { %3413 = vrot.lane.b32.xlu0 %v6305_v17, %s6752_s10 }
0x44fd   :  { %v6307_v19 = vpop.eup %6306 }
0x44fe   :  { %v3407_v20 = vadd.f32 1.0, %v6307_v19 }
0x4500   :  { %6308 = vrcp.f32 %v3407_v20 }
0x450a   :  { %v6309_v21 = vpop.eup %6308 }
0x450b   :  { %v3411_v24 = vmul.f32 0.0, %v6309_v21 }
0x456e   :  { %v3414_v22 = vpop.permute.xlu0 %3413 }
0x456f   :  { %v3416_v23 = vmul.f32 %v6309_v21, %v3414_v22 }
0x4571   :  { %3418 = vrot.lane.b32.xlu1 %v3416_v23, %s6753_s6 }
0x45e3   :  { %v3419_v25 = vpop.permute.xlu1 %3418 }
0x45e4   :  { %v3421_v26 = vadd.f32 %v3419_v25, %v3411_v24 }
0x45e6   :  { %6310 = vtanh.f32 %v3421_v26  ;;  %v3515_v42 = vrot.slane %v3421_v26, 6 }
0x45f0   :  { %v6311_v11 = vpop.eup %6310 }
0x45f1   :  { %3424 = vrot.lane.b32.xlu0 %v6311_v11, %s6751_s23 }
0x4663   :  { %v3425_v27 = vpop.permute.xlu0 %3424 }
0x4664   :  { %v7428_v28 = vmul.f32 %v6309_v21, %v3425_v27 }
0x4666   :  { %3429 = vrot.lane.b32.xlu1 %v7428_v28, %s6754_s29 }
0x46d8   :  { %v3430_v29 = vpop.permute.xlu1 %3429 }
0x46d9   :  { %5767 = vmatmul.mubr.msk.f32.vlgmr.msra.gmra.mrb[30].mxu0 %vm1261_vm6, %v3430_v29 }
0x46da   :  { %6012 = vmatpush3.bf16.msra.mxu0 %v7390_v40  ;;  %5780 = vmatprep.mubr.msk.f32.mxu0 %vm6748_vm0, %v6749_v1 }
0x46db   :  { %6016 = vmatprep.subr.bf16.mxu0 %v6747_v0 }
0x47ac   :  { %v3499_v58 = vpop.f32.mrb[30].mxu0 }
0x47ad   :  { %v3504_v31 = vrot.slane %v3499_v58, 6  ;;  %v5768_v15 = vpop.f32.mrb[31].mxu0 }
0x47af   :  { %v3506_v32 = vadd.f32 %v3504_v31, %v7422_v14 }
0x47b1   :  { %6312 = vtanh.f32 %v3506_v32  ;;  %v5325_v34 = vmul.f32 -1.442695, %v3506_v32 }
0x47b3   :  { %6314 = vpow2.f32 %v5325_v34 }
0x47bb   :  { %v6313_v33 = vpop.eup %6312 }
0x47bc   :  { %3519 = vrot.lane.b32.xlu0 %v6313_v33, %s6752_s10 }
0x47bd   :  { %v6315_v36 = vpop.eup %6314 }
0x47be   :  { %v3510_v37 = vadd.f32 1.0, %v6315_v36 }
0x47c0   :  { %6316 = vrcp.f32 %v3510_v37 }
0x47ca   :  { %v6317_v38 = vpop.eup %6316 }
0x47cb   :  { %v3517_v43 = vmul.f32 %v6317_v38, %v3515_v42 }
0x482e   :  { %v3520_v39 = vpop.permute.xlu0 %3519 }
0x482f   :  { %v3522_v41 = vmul.f32 %v6317_v38, %v3520_v39 }
0x4831   :  { %3524 = vrot.lane.b32.xlu1 %v3522_v41, %s6753_s6 }
0x48a3   :  { %v3525_v44 = vpop.permute.xlu1 %3524 }
0x48a4   :  { %v3527_v13 = vadd.f32 %v3525_v44, %v3517_v43 }
0x48a6   :  { %6318 = vtanh.f32 %v3527_v13  ;;  %v3622_v57 = vrot.slane %v3527_v13, 6 }
0x48b0   :  { %v6319_v7 = vpop.eup %6318 }
0x48b1   :  { %3530 = vrot.lane.b32.xlu0 %v6319_v7, %s6751_s23 }
0x4923   :  { %v3531_v45 = vpop.permute.xlu0 %3530 }
0x4924   :  { %v3533_v46 = vmul.f32 %v6317_v38, %v3531_v45 }
0x4926   :  { %v3535_v47 = vrot.slane %v3533_v46, 2  ;;  %v4172_v3 = vsel %vm1153_vm4, %v7428_v28, %v3533_v46 }
0x4928   :  { %3536 = vrot.lane.b32.xlu1 %v3535_v47, %s6754_s29 }
0x499a   :  { %v3537_v48 = vpop.permute.xlu1 %3536 }
0x499b   :  { %5774 = vmatmul.mubr.msk.f32.vlgmr.msra.gmra.mrb[32].mxu1 %vm1261_vm6, %v3537_v48 }
0x499c   :  { %6015 = vmatpush3.bf16.msra.mxu1 %v7390_v40  ;;  %5787 = vmatprep.mubr.msk.f32.mxu1 %vm6748_vm0, %v6749_v1 }
0x499d   :  { %6019 = vmatprep.subr.bf16.mxu1 %v6747_v0 }
0x4a6e   :  { %v3606_v49 = vpop.f32.mrb[32].mxu1 }
0x4a6f   :  { %v3611_v50 = vrot.slane %v3606_v49, 4  ;;  %v5775_v30 = vpop.f32.mrb[33].mxu1 }
0x4a71   :  { %v3613_v51 = vadd.f32 %v3611_v50, %v7422_v14 }
0x4a73   :  { %6320 = vtanh.f32 %v3613_v51  ;;  %v5327_v53 = vmul.f32 -1.442695, %v3613_v51 }
0x4a75   :  { %6322 = vpow2.f32 %v5327_v53 }
0x4a7d   :  { %v6321_v52 = vpop.eup %6320 }
0x4a7e   :  { %3626 = vrot.lane.b32.xlu0 %v6321_v52, %s6752_s10 }
0x4a7f   :  { %v6323_v54 = vpop.eup %6322 }
0x4a80   :  { %v3617_v35 = vadd.f32 1.0, %v6323_v54 }
0x4a82   :  { %6324 = vrcp.f32 %v3617_v35 }
0x4a8c   :  { %v6325_v55 = vpop.eup %6324 }
0x4a8d   :  { %v3624_v59 = vmul.f32 %v6325_v55, %v3622_v57 }
0x4af0   :  { %v3627_v60 = vpop.permute.xlu0 %3626 }
0x4af1   :  { %v3629_v56 = vmul.f32 %v6325_v55, %v3627_v60 }
0x4af3   :  { %3631 = vrot.lane.b32.xlu1 %v3629_v56, %s6753_s6 }
0x4b65   :  { %v3632_v61 = vpop.permute.xlu1 %3631 }
0x4b66   :  { %v3634_v62 = vadd.f32 %v3632_v61, %v3624_v59 }
0x4b68   :  { %6326 = vtanh.f32 %v3634_v62  ;;  %v3729_v25 = vrot.slane %v3634_v62, 6 }
0x4b72   :  { %v6327_v63 = vpop.eup %6326 }
0x4b73   :  { %3637 = vrot.lane.b32.xlu0 %v6327_v63, %s6751_s23 }
0x4be5   :  { %v3638_v2 = vpop.permute.xlu0 %3637 }
0x4be6   :  { %v3640_v10 = vmul.f32 %v6325_v55, %v3638_v2 }
0x4be8   :  { %v3642_v4 = vrot.slane %v3640_v10, 4  ;;  %v4173_v5 = vsel %vm231_vm1, %v4172_v3, %v3640_v10 }
0x4bea   :  { %3643 = vrot.lane.b32.xlu1 %v3642_v4, %s6754_s29 }
0x4c5c   :  { %v3644_v6 = vpop.permute.xlu1 %3643 }
0x4c5d   :  { %5781 = vmatmul.mubr.msk.f32.vlgmr.msra.gmra.mrb[32].mxu0 %vm1261_vm6, %v3644_v6 }
0x4c5e   :  { %6018 = vmatpush3.bf16.msra.mxu0 %v7390_v40  ;;  %5794 = vmatprep.mubr.msk.f32.mxu0 %vm6748_vm0, %v6749_v1 }
0x4c5f   :  { %6022 = vmatprep.subr.bf16.mxu0 %v6747_v0 }
0x4d30   :  { %v3713_v9 = vpop.f32.mrb[32].mxu0 }
0x4d31   :  { %v3718_v8 = vrot.slane %v3713_v9, 2  ;;  %v5782_v16 = vpop.f32.mrb[33].mxu0 }
0x4d33   :  { %v3720_v17 = vadd.f32 %v3718_v8, %v7422_v14 }
0x4d35   :  { %6328 = vtanh.f32 %v3720_v17  ;;  %v5329_v19 = vmul.f32 -1.442695, %v3720_v17 }
0x4d37   :  { %6330 = vpow2.f32 %v5329_v19 }
0x4d3f   :  { %v6329_v18 = vpop.eup %6328 }
0x4d40   :  { %3733 = vrot.lane.b32.xlu0 %v6329_v18, %s6752_s10 }
0x4d41   :  { %v6331_v20 = vpop.eup %6330 }
0x4d42   :  { %v3724_v21 = vadd.f32 1.0, %v6331_v20 }
0x4d44   :  { %6332 = vrcp.f32 %v3724_v21 }
0x4d4e   :  { %v6333_v22 = vpop.eup %6332 }
0x4d4f   :  { %v3731_v26 = vmul.f32 %v6333_v22, %v3729_v25 }
0x4db2   :  { %v3734_v23 = vpop.permute.xlu0 %3733 }
0x4db3   :  { %v3736_v24 = vmul.f32 %v6333_v22, %v3734_v23 }
0x4db5   :  { %3738 = vrot.lane.b32.xlu1 %v3736_v24, %s6753_s6 }
0x4e27   :  { %v3739_v11 = vpop.permute.xlu1 %3738 }
0x4e28   :  { %v3741_v27 = vadd.f32 %v3739_v11, %v3731_v26 }
0x4e2a   :  { %6334 = vtanh.f32 %v3741_v27  ;;  %v3833_v44 = vrot.slane %v3741_v27, 6 }
0x4e34   :  { %v6335_v14 = vpop.eup %6334 }
0x4e35   :  { %3744 = vrot.lane.b32.xlu0 %v6335_v14, %s6751_s23 }
0x4ea7   :  { %v3745_v28 = vpop.permute.xlu0 %3744 }
0x4ea8   :  { %v3747_v29 = vmul.f32 %v6333_v22, %v3745_v28 }
0x4eaa   :  { %v3749_v58 = vrot.slane %v3747_v29, 6  ;;  %v7465_v31 = vsel %vm1156_vm5, %v4173_v5, %v3747_v29 }
0x4eac   :  { %3750 = vrot.lane.b32.xlu1 %v3749_v58, %s6754_s29 }
0x4f1e   :  { %v3751_v15 = vpop.permute.xlu1 %3750 }
0x4f1f   :  { %5788 = vmatmul.mubr.msk.f32.vlgmr.msra.gmra.mrb[34].mxu1 %vm1261_vm6, %v3751_v15 }
0x4f20   :  { %6021 = vmatpush3.bf16.msra.mxu1 %v7390_v40  ;;  %5801 = vmatprep.mubr.msk.f32.mxu1 %vm6748_vm0, %v6749_v1 }
0x4ff2   :  { %v3820_v32 = vpop.f32.mrb[34].mxu1 }
0x4ff3   :  { %v3824_v33 = vadd.f32 %v3820_v32, %v7420_v12  ;;  %v5789_v34 = vpop.f32.mrb[35].mxu1 }
0x4ff5   :  { %6336 = vtanh.f32 %v3824_v33  ;;  %v5331_v37 = vmul.f32 -1.442695, %v3824_v33 }
0x4ff7   :  { %6338 = vpow2.f32 %v5331_v37 }
0x4fff   :  { %v6337_v36 = vpop.eup %6336 }
0x5000   :  { %3837 = vrot.lane.b32.xlu0 %v6337_v36, %s6752_s10 }
0x5001   :  { %v6339_v38 = vpop.eup %6338 }
0x5002   :  { %v3828_v39 = vadd.f32 1.0, %v6339_v38 }
0x5004   :  { %6340 = vrcp.f32 %v3828_v39 }
0x500e   :  { %v6341_v41 = vpop.eup %6340 }
0x500f   :  { %v3835_v13 = vmul.f32 %v6341_v41, %v3833_v44 }
0x5072   :  { %v3838_v42 = vpop.permute.xlu0 %3837 }
0x5073   :  { %v3840_v43 = vmul.f32 %v6341_v41, %v3838_v42 }
0x5075   :  { %3842 = vrot.lane.b32.xlu1 %v3840_v43, %s6753_s6 }
0x50e7   :  { %v3843_v7 = vpop.permute.xlu1 %3842 }
0x50e8   :  { %v3845_v45 = vadd.f32 %v3843_v7, %v3835_v13  ;;  %v4178_v13 = vmax.f32 %v7465_v31, 0.0  ;;  %v4182_v31 = vld [vmem:[%s7716_s19] sm:$0xff] }
0x50ea   :  { %6342 = vtanh.f32 %v3845_v45  ;;  %v3939_v57 = vrot.slane %v3845_v45, 6 }
0x50f4   :  { %v6343_v46 = vpop.eup %6342 }
0x50f5   :  { %3848 = vrot.lane.b32.xlu0 %v6343_v46, %s6751_s23 }
0x5167   :  { %v3849_v47 = vpop.permute.xlu0 %3848 }
0x5168   :  { %v3851_v48 = vmul.f32 %v6341_v41, %v3849_v47 }
0x516a   :  { %3853 = vrot.lane.b32.xlu1 %v3851_v48, %s6754_s29 }
0x51dc   :  { %v3854_v49 = vpop.permute.xlu1 %3853 }
0x51dd   :  { %5795 = vmatmul.mubr.msk.f32.vlgmr.msra.gmra.mrb[34].mxu0 %vm1261_vm6, %v3854_v49  ;;  %v4181_v49 = vld [vmem:[%s7715_s18 + $0x8] sm:$0xff] }
0x51de   :  { %6024 = vmatpush3.bf16.msra.mxu0 %v7390_v40  ;;  %5808 = vmatprep.mubr.msk.f32.mxu0 %vm6748_vm0, %v6749_v1 }
0x51df   :  { %6029 = vmatprep.subr.bf16.mxu0 %v6747_v0 }
0x52b0   :  { %v3923_v50 = vpop.f32.mrb[34].mxu0 }
0x52b1   :  { %v3928_v30 = vrot.slane %v3923_v50, 6  ;;  %v5796_v51 = vpop.f32.mrb[35].mxu0 }
0x52b2   :  { %v4184_v51 = vld [vmem:[%s7716_s19 + $0x10] sm:$0xff] }
0x52b3   :  { %v3930_v52 = vadd.f32 %v3928_v30, %v7420_v12  ;;  %v4183_v30 = vld [vmem:[%s7716_s19 + $0x8] sm:$0xff] }
0x52b5   :  { %6344 = vtanh.f32 %v3930_v52  ;;  %v5333_v54 = vmul.f32 -1.442695, %v3930_v52  ;;  %v4185_v52 = vld [vmem:[%s7716_s19 + $0x18] sm:$0xff] }
0x52b7   :  { %6346 = vpow2.f32 %v5333_v54  ;;  %v7525_v54 = vpack.c.bf16 %v4185_v52, %v4184_v51 }
0x52bf   :  { %v6345_v53 = vpop.eup %6344 }
0x52c0   :  { %3943 = vrot.lane.b32.xlu0 %v6345_v53, %s6752_s10  ;;  %v7522_v53 = vpack.c.bf16 %v4183_v30, %v4182_v31 }
0x52c1   :  { %v6347_v35 = vpop.eup %6346 }
0x52c2   :  { %v3934_v55 = vadd.f32 1.0, %v6347_v35 }
0x52c4   :  { %6348 = vrcp.f32 %v3934_v55 }
0x52ce   :  { %v6349_v40 = vpop.eup %6348 }
0x52cf   :  { %v3941_v59 = vmul.f32 %v6349_v40, %v3939_v57 }
0x5332   :  { %v3944_v60 = vpop.permute.xlu0 %3943 }
0x5333   :  { %v3946_v56 = vmul.f32 %v6349_v40, %v3944_v60 }
0x5335   :  { %3948 = vrot.lane.b32.xlu1 %v3946_v56, %s6753_s6 }
0x53a7   :  { %v3949_v61 = vpop.permute.xlu1 %3948 }
0x53a8   :  { %v3951_v62 = vadd.f32 %v3949_v61, %v3941_v59 }
0x53aa   :  { %6350 = vtanh.f32 %v3951_v62  ;;  %v4046_v23 = vrot.slane %v3951_v62, 6  ;;  %v5338_v62 = vld [vmem:[%s7717_s20] ss:$0 sm:$0xff] }
0x53b4   :  { %v6351_v63 = vpop.eup %6350 }
0x53b5   :  { %3954 = vrot.lane.b32.xlu0 %v6351_v63, %s6751_s23 }
0x5427   :  { %v3955_v2 = vpop.permute.xlu0 %3954 }
0x5428   :  { %v3957_v10 = vmul.f32 %v6349_v40, %v3955_v2 }
0x542a   :  { %v3959_v3 = vrot.slane %v3957_v10, 2  ;;  %v4175_v28 = vsel %vm1153_vm4, %v3851_v48, %v3957_v10  ;;  %v4180_v48 = vld [vmem:[%s7715_s18] sm:$0xff] }
0x542b   :  { %v6025_v50 = vpack.c.bf16 %v4181_v49, %v4180_v48 }
0x542c   :  { %3960 = vrot.lane.b32.xlu1 %v3959_v3, %s6754_s29 }
0x542d   :  { %6026 = vmatprep.subr.bf16.mxu1 %v6025_v50 }
0x549e   :  { %v3961_v4 = vpop.permute.xlu1 %3960 }
0x549f   :  { %5802 = vmatmul.mubr.msk.f32.vlgmr.msra.gmra.mrb[36].mxu1 %vm1261_vm6, %v3961_v4 }
0x54a0   :  { %6028 = vmatpush3.bf16.msra.mxu1 %v6025_v50 }
0x54a1   :  { %6035 = vmatprep.subr.bf16.mxu1 %v6747_v0 }
0x5572   :  { %v4030_v5 = vpop.f32.mrb[36].mxu1 }
0x5573   :  { %v4035_v6 = vrot.slane %v4030_v5, 4  ;;  %v5803_v9 = vpop.f32.mrb[37].mxu1 }
0x5575   :  { %v4037_v8 = vadd.f32 %v4035_v6, %v7420_v12 }
0x5577   :  { %6352 = vtanh.f32 %v4037_v8  ;;  %v5335_v17 = vmul.f32 -1.442695, %v4037_v8 }
0x5579   :  { %6354 = vpow2.f32 %v5335_v17 }
0x5581   :  { %v6353_v16 = vpop.eup %6352 }
0x5582   :  { %4050 = vrot.lane.b32.xlu0 %v6353_v16, %s6752_s10 }
0x5583   :  { %v6355_v18 = vpop.eup %6354 }
0x5584   :  { %v4041_v19 = vadd.f32 1.0, %v6355_v18 }
0x5586   :  { %6356 = vrcp.f32 %v4041_v19 }
0x5590   :  { %v6357_v20 = vpop.eup %6356 }
0x5591   :  { %v4048_v24 = vmul.f32 %v6357_v20, %v4046_v23 }
0x55f4   :  { %v4051_v21 = vpop.permute.xlu0 %4050 }
0x55f5   :  { %v4053_v22 = vmul.f32 %v6357_v20, %v4051_v21 }
0x55f7   :  { %4055 = vrot.lane.b32.xlu1 %v4053_v22, %s6753_s6 }
0x5669   :  { %v4056_v25 = vpop.permute.xlu1 %4055 }
0x566a   :  { %v4058_v26 = vadd.f32 %v4056_v25, %v4048_v24 }
0x566c   :  { %6358 = vtanh.f32 %v4058_v26  ;;  %v4153_v7 = vrot.slane %v4058_v26, 6 }
0x5676   :  { %v6359_v11 = vpop.eup %6358 }
0x5677   :  { %4061 = vrot.lane.b32.xlu0 %v6359_v11, %s6751_s23 }
0x56e9   :  { %v4062_v27 = vpop.permute.xlu0 %4061 }
0x56ea   :  { %v4064_v14 = vmul.f32 %v6357_v20, %v4062_v27 }
0x56ec   :  { %v4066_v29 = vrot.slane %v4064_v14, 4  ;;  %v4176_v58 = vsel %vm231_vm1, %v4175_v28, %v4064_v14 }
0x56ee   :  { %4067 = vrot.lane.b32.xlu1 %v4066_v29, %s6754_s29 }
0x5760   :  { %v4068_v15 = vpop.permute.xlu1 %4067 }
0x5761   :  { %5809 = vmatmul.mubr.msk.f32.vlgmr.msra.gmra.mrb[36].mxu0 %vm1261_vm6, %v4068_v15 }
0x5762   :  { %5826 = vmatprep.mubr.msk.f32.mxu0 %vm6748_vm0, %v6749_v1  ;;  %6031 = vmatpush3.bf16.msra.mxu0 %v7522_v53 }
0x5763   :  { %6032 = vmatprep.subr.bf16.mxu0 %v6747_v0 }
0x5766   :  { %6034 = vmatpush3.bf16.msra.mxu0 %v7525_v54 }
0x5767   :  { %6041 = vmatprep.subr.bf16.mxu0 %v6747_v0 }
0x5769   :  { %5827 = vmatmul.mubr.f32.vlgmr.msra.gmra.mrb[38].mxu0 %v6749_v1 }
0x576a   :  { %6043 = vmatpush3.bf16.msra.mxu0 %v7522_v53  ;;  %5848 = vmatprep.mubr.msk.f32.mxu0 %vm6748_vm0, %v6749_v1 }
0x576b   :  { %6044 = vmatprep.subr.bf16.mxu0 %v6747_v0 }
0x576e   :  { %6046 = vmatpush3.bf16.msra.mxu0 %v7525_v54 }
0x576f   :  { %6053 = vmatprep.subr.bf16.mxu0 %v6747_v0 }
0x5834   :  { %v4137_v32 = vpop.f32.mrb[36].mxu0 }
0x5835   :  { %v4142_v33 = vrot.slane %v4137_v32, 2  ;;  %v5810_v34 = vpop.f32.mrb[37].mxu0 }
0x5837   :  { %v4144_v36 = vadd.f32 %v4142_v33, %v7420_v12 }
0x5839   :  { %6360 = vtanh.f32 %v4144_v36  ;;  %v5337_v38 = vmul.f32 -1.442695, %v4144_v36 }
0x583b   :  { %6362 = vpow2.f32 %v5337_v38 }
0x583c   :  { %v4344_v59 = vpop.f32.mrb[38].mxu0 }
0x583d   :  { %v5828_v61 = vpop.f32.mrb[39].mxu0 }
0x5843   :  { %v6361_v37 = vpop.eup %6360 }
0x5844   :  { %4157 = vrot.lane.b32.xlu0 %v6361_v37, %s6752_s10 }
0x5845   :  { %v6363_v39 = vpop.eup %6362 }
0x5846   :  { %v4148_v41 = vadd.f32 1.0, %v6363_v39 }
0x5848   :  { %6364 = vrcp.f32 %v4148_v41 }
0x5852   :  { %v6365_v42 = vpop.eup %6364 }
0x5853   :  { %v4155_v12 = vmul.f32 %v6365_v42, %v4153_v7 }
0x58b6   :  { %v4158_v43 = vpop.permute.xlu0 %4157 }
0x58b7   :  { %v4160_v44 = vmul.f32 %v6365_v42, %v4158_v43 }
0x58b9   :  { %4162 = vrot.lane.b32.xlu1 %v4160_v44, %s6753_s6 }
0x58bd   :  { %4195 = vrot.lane.b32.xlu1 %v4178_v13, %s6754_s29 }
0x592b   :  { %v4163_v45 = vpop.permute.xlu1 %4162 }
0x592c   :  { %v4165_v46 = vadd.f32 %v4163_v45, %v4155_v12 }
0x592e   :  { %6366 = vtanh.f32 %v4165_v46 }
0x592f   :  { %v4196_v47 = vpop.permute.xlu1 %4195 }
0x5930   :  { %5815 = vmatprep.mubr.msk.f32.mxu1 %vm1261_vm6, %v4196_v47 }
0x5938   :  { %v6367_v35 = vpop.eup %6366 }
0x5939   :  { %4168 = vrot.lane.b32.xlu0 %v6367_v35, %s6751_s23 }
0x59ab   :  { %v4169_v55 = vpop.permute.xlu0 %4168 }
0x59ac   :  { %v4171_v40 = vmul.f32 %v6365_v42, %v4169_v55 }
0x59ae   :  { %v4177_v60 = vsel %vm1156_vm5, %v4176_v58, %v4171_v40 }
0x59af   :  { %v4179_v56 = vmax.f32 %v4177_v60, 0.0 }
0x59b1   :  { %4197 = vrot.lane.b32.xlu0 %v4179_v56, %s6754_s29 }
0x5a23   :  { %v4198_v57 = vpop.permute.xlu0 %4197 }
0x5a24   :  { %5816 = vmatmul.mubr.msk.f32.vlgmr.msra.gmra.mrb[38].mxu1 %vm1261_vm6, %v4198_v57 }
0x5a25   :  { %6037 = vmatpush3.bf16.msra.mxu1 %v7522_v53  ;;  %5837 = vmatprep.mubr.msk.f32.mxu1 %vm6748_vm0, %v6749_v1 }
0x5a26   :  { %6038 = vmatprep.subr.bf16.mxu1 %v6747_v0 }
0x5a29   :  { %6040 = vmatpush3.bf16.msra.mxu1 %v7525_v54 }
0x5a2a   :  { %6047 = vmatprep.subr.bf16.mxu1 %v6747_v0 }
0x5af7   :  { %v5817_v63 = vpop.f32.mrb[38].mxu1 }
0x5af8   :  { %v7551_v2 = vadd.f32 %v5817_v63, %v5338_v62  ;;  %v4269_v10 = vpop.f32.mrb[39].mxu1 }
0x5af9   :  { %v7553_v3 = vadd.f32 %v5338_v62, %v4269_v10 }
0x5afb   :  { %v4348_v4 = vadd.f32 %v4344_v59, %v7553_v3 }
0x5afd   :  { %6368 = vtanh.f32 %v4348_v4  ;;  %v5341_v6 = vmul.f32 -1.442695, %v4348_v4 }
0x5aff   :  { %6370 = vpow2.f32 %v5341_v6 }
0x5b07   :  { %v6369_v5 = vpop.eup %6368 }
0x5b08   :  { %4358 = vrot.lane.b32.xlu1 %v6369_v5, %s6750_s26 }
0x5b09   :  { %v6371_v9 = vpop.eup %6370 }
0x5b0a   :  { %v4352_v8 = vadd.f32 1.0, %v6371_v9 }
0x5b0c   :  { %6372 = vrcp.f32 %v4352_v8 }
0x5b16   :  { %v6373_v16 = vpop.eup %6372 }
0x5b17   :  { %v4356_v19 = vmul.f32 0.0, %v6373_v16 }
0x5b7a   :  { %v4359_v17 = vpop.permute.xlu1 %4358 }
0x5b7b   :  { %v4361_v18 = vmul.f32 %v6373_v16, %v4359_v17 }
0x5b7d   :  { %4363 = vrot.lane.b32.xlu0 %v4361_v18, %s6751_s23 }
0x5bef   :  { %v4364_v20 = vpop.permute.xlu0 %4363 }
0x5bf0   :  { %v4366_v21 = vadd.f32 %v4364_v20, %v4356_v19 }
0x5bf2   :  { %6374 = vtanh.f32 %v4366_v21  ;;  %v4460_v36 = vrot.slane %v4366_v21, 6 }
0x5bfc   :  { %v6375_v22 = vpop.eup %6374 }
0x5bfd   :  { %4369 = vrot.lane.b32.xlu1 %v6375_v22, %s6750_s26 }
0x5c6f   :  { %v4370_v23 = vpop.permute.xlu1 %4369 }
0x5c70   :  { %v7559_v24 = vmul.f32 %v6373_v16, %v4370_v23 }
0x5c72   :  { %4374 = vrot.lane.b32.xlu0 %v7559_v24, %s6751_s23 }
0x5ce4   :  { %v4375_v25 = vpop.permute.xlu0 %4374 }
0x5ce5   :  { %5838 = vmatmul.mubr.msk.f32.vlgmr.msra.gmra.mrb[40].mxu1 %vm310_vm3, %v4375_v25 }
0x5ce6   :  { %6049 = vmatpush3.bf16.msra.mxu1 %v7522_v53  ;;  %5859 = vmatprep.mubr.msk.f32.mxu1 %vm6748_vm0, %v6749_v1 }
0x5ce7   :  { %6050 = vmatprep.subr.bf16.mxu1 %v6747_v0 }
0x5cea   :  { %6052 = vmatpush3.bf16.msra.mxu1 %v7525_v54 }
0x5ceb   :  { %6059 = vmatprep.subr.bf16.mxu1 %v6747_v0 }
0x5db8   :  { %v4444_v26 = vpop.f32.mrb[40].mxu1 }
0x5db9   :  { %v4449_v11 = vrot.slane %v4444_v26, 6  ;;  %v5839_v27 = vpop.f32.mrb[41].mxu1 }
0x5dbb   :  { %v4451_v14 = vadd.f32 %v4449_v11, %v7553_v3 }
0x5dbd   :  { %6376 = vtanh.f32 %v4451_v14  ;;  %v5343_v29 = vmul.f32 -1.442695, %v4451_v14 }
0x5dbf   :  { %6378 = vpow2.f32 %v5343_v29 }
0x5dc7   :  { %v6377_v28 = vpop.eup %6376 }
0x5dc8   :  { %4464 = vrot.lane.b32.xlu1 %v6377_v28, %s6750_s26 }
0x5dc9   :  { %v6379_v58 = vpop.eup %6378 }
0x5dca   :  { %v4455_v15 = vadd.f32 1.0, %v6379_v58 }
0x5dcc   :  { %6380 = vrcp.f32 %v4455_v15 }
0x5dd6   :  { %v6381_v32 = vpop.eup %6380 }
0x5dd7   :  { %v4462_v37 = vmul.f32 %v6381_v32, %v4460_v36 }
0x5e3a   :  { %v4465_v33 = vpop.permute.xlu1 %4464 }
0x5e3b   :  { %v4467_v34 = vmul.f32 %v6381_v32, %v4465_v33 }
0x5e3d   :  { %4469 = vrot.lane.b32.xlu0 %v4467_v34, %s6751_s23 }
0x5eaf   :  { %v4470_v38 = vpop.permute.xlu0 %4469 }
0x5eb0   :  { %v4472_v39 = vadd.f32 %v4470_v38, %v4462_v37 }
0x5eb2   :  { %6382 = vtanh.f32 %v4472_v39  ;;  %v4567_v52 = vrot.slane %v4472_v39, 6 }
0x5ebc   :  { %v6383_v41 = vpop.eup %6382 }
0x5ebd   :  { %4475 = vrot.lane.b32.xlu1 %v6383_v41, %s6750_s26 }
0x5f2f   :  { %v4476_v42 = vpop.permute.xlu1 %4475 }
0x5f30   :  { %v4478_v43 = vmul.f32 %v6381_v32, %v4476_v42 }
0x5f32   :  { %v4480_v44 = vrot.slane %v4478_v43, 2  ;;  %v5117_v59 = vsel %vm1153_vm4, %v7559_v24, %v4478_v43 }
0x5f34   :  { %4481 = vrot.lane.b32.xlu0 %v4480_v44, %s6751_s23 }
0x5fa6   :  { %v4482_v13 = vpop.permute.xlu0 %4481 }
0x5fa7   :  { %5849 = vmatmul.mubr.msk.f32.vlgmr.msra.gmra.mrb[40].mxu0 %vm310_vm3, %v4482_v13 }
0x5fa8   :  { %6055 = vmatpush3.bf16.msra.mxu0 %v7522_v53  ;;  %5870 = vmatprep.mubr.msk.f32.mxu0 %vm6748_vm0, %v6749_v1 }
0x5fa9   :  { %6056 = vmatprep.subr.bf16.mxu0 %v6747_v0 }
0x5fac   :  { %6058 = vmatpush3.bf16.msra.mxu0 %v7525_v54 }
0x5fad   :  { %6065 = vmatprep.subr.bf16.mxu0 %v6747_v0 }
0x607a   :  { %v4551_v7 = vpop.f32.mrb[40].mxu0 }
0x607b   :  { %v4556_v12 = vrot.slane %v4551_v7, 4  ;;  %v5850_v45 = vpop.f32.mrb[41].mxu0 }
0x607d   :  { %v4558_v46 = vadd.f32 %v4556_v12, %v7553_v3 }
0x607f   :  { %6384 = vtanh.f32 %v4558_v46  ;;  %v5345_v48 = vmul.f32 -1.442695, %v4558_v46 }
0x6081   :  { %6386 = vpow2.f32 %v5345_v48 }
0x6089   :  { %v6385_v47 = vpop.eup %6384 }
0x608a   :  { %4571 = vrot.lane.b32.xlu1 %v6385_v47, %s6750_s26 }
0x608b   :  { %v6387_v49 = vpop.eup %6386 }
0x608c   :  { %v4562_v31 = vadd.f32 1.0, %v6387_v49 }
0x608e   :  { %6388 = vrcp.f32 %v4562_v31 }
0x6098   :  { %v6389_v50 = vpop.eup %6388 }
0x6099   :  { %v4569_v35 = vmul.f32 %v6389_v50, %v4567_v52 }
0x60fc   :  { %v4572_v30 = vpop.permute.xlu1 %4571 }
0x60fd   :  { %v4574_v51 = vmul.f32 %v6389_v50, %v4572_v30 }
0x60ff   :  { %4576 = vrot.lane.b32.xlu0 %v4574_v51, %s6751_s23 }
0x6171   :  { %v4577_v55 = vpop.permute.xlu0 %4576 }
0x6172   :  { %v4579_v40 = vadd.f32 %v4577_v55, %v4569_v35 }
0x6174   :  { %6390 = vtanh.f32 %v4579_v40  ;;  %v4674_v21 = vrot.slane %v4579_v40, 6 }
0x617e   :  { %v6391_v60 = vpop.eup %6390 }
0x617f   :  { %4582 = vrot.lane.b32.xlu1 %v6391_v60, %s6750_s26 }
0x61f1   :  { %v4583_v56 = vpop.permute.xlu1 %4582 }
0x61f2   :  { %v4585_v57 = vmul.f32 %v6389_v50, %v4583_v56 }
0x61f4   :  { %v4587_v61 = vrot.slane %v4585_v57, 4  ;;  %v5118_v62 = vsel %vm231_vm1, %v5117_v59, %v4585_v57 }
0x61f6   :  { %4588 = vrot.lane.b32.xlu0 %v4587_v61, %s6751_s23 }
0x6268   :  { %v4589_v63 = vpop.permute.xlu0 %4588 }
0x6269   :  { %5860 = vmatmul.mubr.msk.f32.vlgmr.msra.gmra.mrb[42].mxu1 %vm310_vm3, %v4589_v63 }
0x626a   :  { %6061 = vmatpush3.bf16.msra.mxu1 %v7522_v53  ;;  %5881 = vmatprep.mubr.msk.f32.mxu1 %vm6748_vm0, %v6749_v1 }
0x626b   :  { %6062 = vmatprep.subr.bf16.mxu1 %v6747_v0 }
0x626e   :  { %6064 = vmatpush3.bf16.msra.mxu1 %v7525_v54 }
0x626f   :  { %6071 = vmatprep.subr.bf16.mxu1 %v6747_v0 }
0x633c   :  { %v4658_v10 = vpop.f32.mrb[42].mxu1 }
0x633d   :  { %v4663_v4 = vrot.slane %v4658_v10, 2  ;;  %v5861_v5 = vpop.f32.mrb[43].mxu1 }
0x633f   :  { %v4665_v6 = vadd.f32 %v4663_v4, %v7553_v3 }
0x6341   :  { %6392 = vtanh.f32 %v4665_v6  ;;  %v5347_v8 = vmul.f32 -1.442695, %v4665_v6 }
0x6343   :  { %6394 = vpow2.f32 %v5347_v8 }
0x634b   :  { %v6393_v9 = vpop.eup %6392 }
0x634c   :  { %4678 = vrot.lane.b32.xlu1 %v6393_v9, %s6750_s26 }
0x634d   :  { %v6395_v16 = vpop.eup %6394 }
0x634e   :  { %v4669_v17 = vadd.f32 1.0, %v6395_v16 }
0x6350   :  { %6396 = vrcp.f32 %v4669_v17 }
0x635a   :  { %v6397_v18 = vpop.eup %6396 }
0x635b   :  { %v4676_v22 = vmul.f32 %v6397_v18, %v4674_v21 }
0x63be   :  { %v4679_v19 = vpop.permute.xlu1 %4678 }
0x63bf   :  { %v4681_v20 = vmul.f32 %v6397_v18, %v4679_v19 }
0x63c1   :  { %4683 = vrot.lane.b32.xlu0 %v4681_v20, %s6751_s23 }
0x6433   :  { %v4684_v23 = vpop.permute.xlu0 %4683 }
0x6434   :  { %v4686_v24 = vadd.f32 %v4684_v23, %v4676_v22 }
0x6436   :  { %6398 = vtanh.f32 %v4686_v24  ;;  %v4778_v39 = vrot.slane %v4686_v24, 6 }
0x6440   :  { %v6399_v3 = vpop.eup %6398 }
0x6441   :  { %4689 = vrot.lane.b32.xlu1 %v6399_v3, %s6750_s26 }
0x64b3   :  { %v4690_v25 = vpop.permute.xlu1 %4689 }
0x64b4   :  { %v4692_v26 = vmul.f32 %v6397_v18, %v4690_v25 }
0x64b6   :  { %v4694_v11 = vrot.slane %v4692_v26, 6  ;;  %v7602_v27 = vsel %vm1156_vm5, %v5118_v62, %v4692_v26 }
0x64b8   :  { %4695 = vrot.lane.b32.xlu0 %v4694_v11, %s6751_s23 }
0x652a   :  { %v4696_v14 = vpop.permute.xlu0 %4695 }
0x652b   :  { %5871 = vmatmul.mubr.msk.f32.vlgmr.msra.gmra.mrb[42].mxu0 %vm310_vm3, %v4696_v14 }
0x652c   :  { %6067 = vmatpush3.bf16.msra.mxu0 %v7522_v53  ;;  %5892 = vmatprep.mubr.msk.f32.mxu0 %vm6748_vm0, %v6749_v1 }
0x652d   :  { %6068 = vmatprep.subr.bf16.mxu0 %v6747_v0 }
0x6530   :  { %6070 = vmatpush3.bf16.msra.mxu0 %v7525_v54 }
0x65fe   :  { %v4765_v28 = vpop.f32.mrb[42].mxu0 }
0x65ff   :  { %v4769_v29 = vadd.f32 %v4765_v28, %v7551_v2  ;;  %v5872_v58 = vpop.f32.mrb[43].mxu0 }
0x6601   :  { %6400 = vtanh.f32 %v4769_v29  ;;  %v5349_v32 = vmul.f32 -1.442695, %v4769_v29 }
0x6603   :  { %6402 = vpow2.f32 %v5349_v32 }
0x660b   :  { %v6401_v15 = vpop.eup %6400 }
0x660c   :  { %4782 = vrot.lane.b32.xlu1 %v6401_v15, %s6750_s26 }
0x660d   :  { %v6403_v33 = vpop.eup %6402 }
0x660e   :  { %v4773_v34 = vadd.f32 1.0, %v6403_v33 }
0x6610   :  { %6404 = vrcp.f32 %v4773_v34 }
0x661a   :  { %v6405_v36 = vpop.eup %6404 }
0x661b   :  { %v4780_v41 = vmul.f32 %v6405_v36, %v4778_v39 }
0x667e   :  { %v4783_v37 = vpop.permute.xlu1 %4782 }
0x667f   :  { %v4785_v38 = vmul.f32 %v6405_v36, %v4783_v37 }
0x6681   :  { %4787 = vrot.lane.b32.xlu0 %v4785_v38, %s6751_s23  ;;  %v5123_v38 = vmax.f32 %v7602_v27, 0.0  ;;  %v5127_v27 = vld [vmem:[%s7718_s21 + $0x10] sm:$0xff] }
0x66f3   :  { %v4788_v42 = vpop.permute.xlu0 %4787 }
0x66f4   :  { %v4790_v43 = vadd.f32 %v4788_v42, %v4780_v41 }
0x66f6   :  { %6406 = vtanh.f32 %v4790_v43 }
0x6700   :  { %v6407_v44 = vpop.eup %6406 }
0x6701   :  { %4793 = vrot.lane.b32.xlu1 %v6407_v44, %s6750_s26  ;;  %v5125_v44 = vld [vmem:[%s7718_s21] sm:$0xff] }
0x6773   :  { %v4794_v13 = vpop.permute.xlu1 %4793 }
0x6774   :  { %v7615_v7 = vmul.f32 %v6405_v36, %v4794_v13  ;;  %v5126_v13 = vld [vmem:[%s7718_s21 + $0x8] sm:$0xff] }
0x6776   :  { %4798 = vrot.lane.b32.xlu0 %v7615_v7, %s6751_s23 }
0x67e8   :  { %v4799_v12 = vpop.permute.xlu0 %4798 }
0x67e9   :  { %5882 = vmatmul.mubr.msk.f32.vlgmr.msra.gmra.mrb[44].mxu1 %vm310_vm3, %v4799_v12  ;;  %v5128_v12 = vld [vmem:[%s7718_s21 + $0x18] sm:$0xff]  ;;  %s5231_s21 = sshll.u32 %s6757_s2, 4  ;;  %s5232_s21 = int_to_ptr.vmem [resolvable:$true] %s5231_s21 }
0x67ea   :  { %6073 = vmatpush3.bf16.msra.mxu1 %v7522_v53  ;;  %5903 = vmatprep.mubr.msk.f32.mxu1 %vm6748_vm0, %v6749_v1  ;;  %s6674_s17 = scalar_lea.vmem %s5232_s21, 32  ;;  %p6679_p5 = scmp.lt.s32.totalorder %s5232_s21, %s5232_s21 }
0x67eb   :  { %6074 = vmatprep.subr.bf16.mxu1 %v6747_v0  ;;  %v4884_v0 = vrot.slane %v4790_v43, 6  ;;  %p6675_p4 = scmp.ne.s32.totalorder %s5232_s21, %s6674_s17  ;;  %p6680_p6 = scmp.lt.s32.totalorder %s6674_s17, %s6674_s17 }
0x67ed   :  { %p6681_p7 = por %p6680_p6, %p6679_p5 }
0x67ee   :  { %6076 = vmatpush3.bf16.msra.mxu1 %v7525_v54 }
0x67ef   :  { %p6682_p8 = pnand %p6681_p7, %p6675_p4 }
0x68bc   :  { %v4868_v45 = vpop.f32.mrb[44].mxu1 }
0x68bd   :  { %v4873_v46 = vrot.slane %v4868_v45, 6  ;;  %v5883_v47 = vpop.f32.mrb[45].mxu1  ;;  %v6081_v45 = vpack.c.bf16 %v5128_v12, %v5127_v27 }
0x68bf   :  { %v4875_v48 = vadd.f32 %v4873_v46, %v7551_v2 }
0x68c1   :  { %6408 = vtanh.f32 %v4875_v48  ;;  %v5351_v31 = vmul.f32 -1.442695, %v4875_v48 }
0x68c3   :  { %6410 = vpow2.f32 %v5351_v31 }
0x68cb   :  { %v6409_v49 = vpop.eup %6408 }
0x68cc   :  { %4888 = vrot.lane.b32.xlu1 %v6409_v49, %s6750_s26 }
0x68cd   :  { %v6411_v50 = vpop.eup %6410 }
0x68ce   :  { %v4879_v53 = vadd.f32 1.0, %v6411_v50 }
0x68d0   :  { %6412 = vrcp.f32 %v4879_v53 }
0x68da   :  { %v6413_v30 = vpop.eup %6412 }
0x68db   :  { %v4886_v54 = vmul.f32 %v6413_v30, %v4884_v0 }
0x693e   :  { %v4889_v1 = vpop.permute.xlu1 %4888 }
0x693f   :  { %v4891_v51 = vmul.f32 %v6413_v30, %v4889_v1 }
0x6941   :  { %4893 = vrot.lane.b32.xlu0 %v4891_v51, %s6751_s23 }
0x69b3   :  { %v4894_v52 = vpop.permute.xlu0 %4893 }
0x69b4   :  { %v4896_v35 = vadd.f32 %v4894_v52, %v4886_v54 }
0x69b6   :  { %6414 = vtanh.f32 %v4896_v35  ;;  %v4991_v17 = vrot.slane %v4896_v35, 6 }
0x69c0   :  { %v6415_v55 = vpop.eup %6414 }
0x69c1   :  { %4899 = vrot.lane.b32.xlu1 %v6415_v55, %s6750_s26 }
0x6a33   :  { %v4900_v40 = vpop.permute.xlu1 %4899 }
0x6a34   :  { %v4902_v60 = vmul.f32 %v6413_v30, %v4900_v40 }
0x6a36   :  { %v4904_v56 = vrot.slane %v4902_v60, 2  ;;  %v5120_v24 = vsel %vm1153_vm4, %v7615_v7, %v4902_v60  ;;  %v6077_v7 = vpack.c.bf16 %v5126_v13, %v5125_v44 }
0x6a38   :  { %4905 = vrot.lane.b32.xlu0 %v4904_v56, %s6751_s23  ;;  %6078 = vmatprep.subr.bf16.mxu0 %v6077_v7 }
0x6aaa   :  { %v4906_v57 = vpop.permute.xlu0 %4905 }
0x6aab   :  { %5893 = vmatmul.mubr.msk.f32.vlgmr.msra.gmra.mrb[44].mxu0 %vm310_vm3, %v4906_v57 }
0x6aac   :  { %6080 = vmatpush3.bf16.msra.mxu0 %v6077_v7 }
0x6aad   :  { %6082 = vmatprep.subr.bf16.mxu0 %v6081_v45 }
0x6ab0   :  { %6084 = vmatpush3.bf16.msra.mxu0 %v6081_v45 }
0x6b7e   :  { %v4975_v59 = vpop.f32.mrb[44].mxu0 }
0x6b7f   :  { %v4980_v61 = vrot.slane %v4975_v59, 4  ;;  %v5894_v62 = vpop.f32.mrb[45].mxu0 }
0x6b81   :  { %v4982_v63 = vadd.f32 %v4980_v61, %v7551_v2 }
0x6b83   :  { %6416 = vtanh.f32 %v4982_v63  ;;  %v5353_v4 = vmul.f32 -1.442695, %v4982_v63 }
0x6b85   :  { %6418 = vpow2.f32 %v5353_v4 }
0x6b8d   :  { %v6417_v10 = vpop.eup %6416 }
0x6b8e   :  { %4995 = vrot.lane.b32.xlu1 %v6417_v10, %s6750_s26 }
0x6b8f   :  { %v6419_v5 = vpop.eup %6418 }
0x6b90   :  { %v4986_v6 = vadd.f32 1.0, %v6419_v5 }
0x6b92   :  { %6420 = vrcp.f32 %v4986_v6 }
0x6b9c   :  { %v6421_v9 = vpop.eup %6420 }
0x6b9d   :  { %v4993_v18 = vmul.f32 %v6421_v9, %v4991_v17 }
0x6c00   :  { %v4996_v8 = vpop.permute.xlu1 %4995 }
0x6c01   :  { %v4998_v16 = vmul.f32 %v6421_v9, %v4996_v8 }
0x6c03   :  { %5000 = vrot.lane.b32.xlu0 %v4998_v16, %s6751_s23 }
0x6c75   :  { %v5001_v19 = vpop.permute.xlu0 %5000 }
0x6c76   :  { %v5003_v20 = vadd.f32 %v5001_v19, %v4993_v18 }
0x6c78   :  { %6422 = vtanh.f32 %v5003_v20  ;;  %v5098_v39 = vrot.slane %v5003_v20, 6 }
0x6c82   :  { %v6423_v21 = vpop.eup %6422 }
0x6c83   :  { %5006 = vrot.lane.b32.xlu1 %v6423_v21, %s6750_s26 }
0x6cf5   :  { %v5007_v22 = vpop.permute.xlu1 %5006 }
0x6cf6   :  { %v5009_v23 = vmul.f32 %v6421_v9, %v5007_v22 }
0x6cf8   :  { %v5011_v3 = vrot.slane %v5009_v23, 4  ;;  %v5121_v25 = vsel %vm231_vm1, %v5120_v24, %v5009_v23 }
0x6cfa   :  { %5012 = vrot.lane.b32.xlu0 %v5011_v3, %s6751_s23 }
0x6d6c   :  { %v5013_v26 = vpop.permute.xlu0 %5012 }
0x6d6d   :  { %5904 = vmatmul.mubr.msk.f32.vlgmr.msra.gmra.mrb[46].mxu1 %vm310_vm3, %v5013_v26 }
0x6e40   :  { %v5082_v11 = vpop.f32.mrb[46].mxu1 }
0x6e41   :  { %v5087_v14 = vrot.slane %v5082_v11, 2  ;;  %v5905_v28 = vpop.f32.mrb[47].mxu1 }
0x6e43   :  { %v5089_v29 = vadd.f32 %v5087_v14, %v7551_v2 }
0x6e45   :  { %6424 = vtanh.f32 %v5089_v29  ;;  %v5355_v15 = vmul.f32 -1.442695, %v5089_v29 }
0x6e47   :  { %6426 = vpow2.f32 %v5355_v15 }
0x6e4f   :  { %v6425_v58 = vpop.eup %6424 }
0x6e50   :  { %5102 = vrot.lane.b32.xlu1 %v6425_v58, %s6750_s26 }
0x6e51   :  { %v6427_v32 = vpop.eup %6426 }
0x6e52   :  { %v5093_v33 = vadd.f32 1.0, %v6427_v32 }
0x6e54   :  { %6428 = vrcp.f32 %v5093_v33 }
0x6e5e   :  { %v6429_v34 = vpop.eup %6428 }
0x6e5f   :  { %v5100_v2 = vmul.f32 %v6429_v34, %v5098_v39 }
0x6ec2   :  { %v5103_v36 = vpop.permute.xlu1 %5102 }
0x6ec3   :  { %v5105_v37 = vmul.f32 %v6429_v34, %v5103_v36 }
0x6ec5   :  { %5107 = vrot.lane.b32.xlu0 %v5105_v37, %s6751_s23 }
0x6ec9   :  { %5138 = vrot.lane.b32.xlu0 %v5123_v38, %s6751_s23 }
0x6f37   :  { %v5108_v41 = vpop.permute.xlu0 %5107 }
0x6f38   :  { %v5110_v42 = vadd.f32 %v5108_v41, %v5100_v2 }
0x6f3a   :  { %6430 = vtanh.f32 %v5110_v42 }
0x6f3b   :  { %v5139_v43 = vpop.permute.xlu0 %5138 }
0x6f3c   :  { %5914 = vmatprep.mubr.msk.f32.mxu0 %vm310_vm3, %v5139_v43 }
0x6f44   :  { %v6431_v46 = vpop.eup %6430 }
0x6f45   :  { %5113 = vrot.lane.b32.xlu1 %v6431_v46, %s6750_s26 }
0x6fb7   :  { %v5114_v47 = vpop.permute.xlu1 %5113 }
0x6fb8   :  { %v5116_v48 = vmul.f32 %v6429_v34, %v5114_v47 }
0x6fba   :  { %v5122_v49 = vsel %vm1156_vm5, %v5121_v25, %v5116_v48 }
0x6fbb   :  { %v5124_v31 = vmax.f32 %v5122_v49, 0.0 }
0x6fbd   :  { %5140 = vrot.lane.b32.xlu1 %v5124_v31, %s6751_s23 }
0x702f   :  { %v5141_v50 = vpop.permute.xlu1 %5140 }
0x7030   :  { %5915 = vmatmul.mubr.msk.f32.vlgmr.msra.gmra.mrb[46].mxu0 %vm310_vm3, %v5141_v50 }
0x7031   :  { %6685 = shalt.err (!%p6682_p8)
}
0x7032   :  { %s6686_s23 = scalar_lea.hbm %s7721_s24, 32 }
0x7033   :  { %p6687_p9 = scmp.ne.s32.totalorder %s7721_s24, %s6686_s23  ;;  %p6690_p10 = scmp.lt.u32.totalorder %s6686_s23, %s7721_s24 }
0x7035   :  { %p6692_p11 = pnand %p6690_p10, %p6687_p9 }
0x7037   :  { %6695 = shalt.err (!%p6692_p11)
}
0x7038   :  { %5234 = dma.vmem_to_hbm [thread:$0]  %s5232_s21, 32, %s7721_s24, [#allocation4]  }
0x7039   :  { %s6696_s1 = scalar_lea.vmem %s5242_s7, 32  ;;  %p6701_p13 = scmp.lt.s32.totalorder %s5242_s7, %s5242_s7 }
0x703a   :  { %p6697_p12 = scmp.ne.s32.totalorder %s5242_s7, %s6696_s1  ;;  %p6702_p0 = scmp.lt.s32.totalorder %s6696_s1, %s6696_s1 }
0x703c   :  { %p6703_p1 = por %p6702_p0, %p6701_p13 }
0x703e   :  { %p6704_p2 = pnand %p6703_p1, %p6697_p12 }
0x7040   :  { %6707 = shalt.err (!%p6704_p2)
}
0x7041   :  { %s6708_s4 = scalar_lea.hbm %s7722_s25, 32 }
0x7042   :  { %p6709_p3 = scmp.ne.s32.totalorder %s7722_s25, %s6708_s4  ;;  %p6712_p4 = scmp.lt.u32.totalorder %s6708_s4, %s7722_s25 }
0x7044   :  { %p6714_p5 = pnand %p6712_p4, %p6709_p3 }
0x7046   :  { %6717 = shalt.err (!%p6714_p5)
}
0x7047   :  { %5244 = dma.vmem_to_hbm [thread:$0]  %s5242_s7, 32, %s7722_s25, [#allocation22]   ;;  %v5356_v53 = vld [vmem:[%s7719_s22] ss:$0 sm:$0xff] }
0x7048   :  { %s7755_s12 = sld [smem:[#allocation41_spill]] }
0x7103   :  { %v5916_v30 = vpop.f32.mrb[46].mxu0 }
0x7104   :  { %v5218_v1 = vadd.f32 %v5916_v30, %v5356_v53  ;;  %v5212_v51 = vpop.f32.mrb[47].mxu0 }
0x7105   :  { %v5213_v0 = vadd.f32 %v5356_v53, %v5212_v51 }
0x7106   :  { %5222 = vst.msk [vmem:[%s7755_s12 + $0x8] sm:$0xff] %vm224_vm2, %v5218_v1 }
0x7107   :  { %5221 = vst.msk [vmem:[%s7755_s12] sm:$0xff] %vm224_vm2, %v5213_v0 }
0x7108   :  { %6730 = dma.done.wait [#allocation4], 32  }
0x7109   :  { %6731 = vsyncadd [#allocation4], 4294967264 }
0x710a   :  { %6732 = dma.done.wait [#allocation22], 32  }
0x710b   :  { %6733 = vsyncadd [#allocation22], 4294967264 }
0x710c   :  { %5253 = vsyncpa [#allocation3], 1 }
0x710d   :  { %5254 = vsyncpa [#allocation6], 1 }
0x710e   :  { %5255 = vsyncpa [#allocation9], 1 }
0x710f   :  { %5256 = vsyncpa [#allocation12], 1 }
0x7110   :  { %5257 = vsyncpa [#allocation15], 1 }
0x7111   :  { %5258 = vsyncpa [#allocation18], 1 }
0x7112   :  { %5259 = vsyncpa [#allocation4], 1 }
0x7113   :  { %5260 = vsyncpa [#allocation22], 1 }

</bundles_post_ra>
